<compile_context>
chip_gen: v5e
topology: v5e:2x2
jax: 0.10.0
libtpu: 0.0.40
codegen_flags: <defaults>
</compile_context>

<pallas_src>
import functools

import jax
import jax.numpy as jnp
from jax.experimental import pallas as pl
from jax.experimental.pallas import tpu as pltpu


def _gelu(x):
    # TODO(synk): PyTorch nn.GELU() defaults to the exact erf form; erf
    # lowering on Mosaic is not guaranteed, so we use the tanh approximation
    # (matches nn.GELU(approximate='tanh'), |diff| < ~1e-3).
    c = 0.7978845608028654  # sqrt(2/pi)
    return 0.5 * x * (1.0 + jnp.tanh(c * (x + 0.044715 * x * x * x)))


def ffn_kernel(x_ref, m_ref, w1_ref, dw_ref, db_ref, w2_ref, b2_ref, out_ref,
               *, width, lanes):
    """One (batch, row-slab) grid step.

    x_ref  : [1, 1, Cin+1, S]  bf16  slab of R+2 padded rows, S = (R+2)*W;
                                     last channel is the ones/bias channel.
    m_ref  : [2, L]            f32   column masks (dx=-1 valid, dx=+1 valid)
    w1_ref : [Ch, Cin+1]       bf16  pointwise1 weight with bias folded in
    dw_ref : [Ch, 9]           f32   depthwise taps, tap = ky*3 + kx
    db_ref : [Ch, 1]           f32
    w2_ref : [Cout, Ch]        bf16
    b2_ref : [Cout, 1]         f32
    out_ref: [1, Cout, L]      f32   L = R*W center lanes
    """
    W = width
    L = lanes

    # ---------------- pointwise1 on the slab (MXU, bf16 -> f32 acc) --------
    xs = x_ref[0, 0]                                         # [Cin+1, S] bf16
    f = jnp.dot(w1_ref[...], xs, preferred_element_type=jnp.float32)  # [Ch, S]

    cxm = m_ref[0:1, :]                                      # [1, L]
    cxp = m_ref[1:2, :]

    # ---------------- depthwise 3x3 (halo rows handle the zero padding) ----
    # Kernel row ky reads slab rows [ky, ky+R): a static lane slice of f.
    # dx = +-1 are lane rolls masked at the x = 0 / W-1 columns (the wrapped
    # values are masked away, so roll wrap-around is harmless).  Each kernel
    # row is accumulated immediately to keep the live set small.
    acc = None
    for ky in range(3):
        v = f[:, ky * W: ky * W + L]                         # [Ch, L]
        c = v * dw_ref[:, 3 * ky + 1: 3 * ky + 2]
        c = c + cxm * pltpu.roll(v, 1, axis=1) * dw_ref[:, 3 * ky: 3 * ky + 1]
        c = c + cxp * pltpu.roll(v, L - 1, axis=1) * dw_ref[:, 3 * ky + 2: 3 * ky + 3]
        acc = c if acc is None else acc + c
    acc = acc + db_ref[...]

    # ------------------------------ GELU (EUP) ------------------------------
    h = _gelu(acc)

    # ---------------- pointwise2 (MXU, bf16 -> f32 acc) ---------------------
    out = jnp.dot(w2_ref[...], h.astype(jnp.bfloat16),
                  preferred_element_type=jnp.float32) + b2_ref[...]
    out_ref[0] = out.astype(out_ref.dtype)


def _choose_tile_rows(H, W, target_lanes):
    """Rows per spatial tile: R | H, R*W % 128 == 0, R*W <= target_lanes,
    preferring >= 2 tiles so the grid can pipeline / use both v7x cores."""
    divisors = [r for r in range(1, H + 1) if H % r == 0]
    valid = [r for r in divisors if (r * W) % 128 == 0]
    if not valid:
        # TODO(synk): pad W (and masks) to a multiple of 128 for fully generic
        # shapes; fall back to a single whole-image tile for now.
        return H
    pref = [r for r in valid if H // r >= 2] or valid
    fit = [r for r in pref if r * W <= target_lanes] or [min(pref)]
    return max(fit)


def ffn_forward(x_nchw, params, *, target_lanes=2048):
    """x_nchw: [N, Cin, H, W] -> [N, Cout, H, W] float32."""
    N, Cin, H, W = x_nchw.shape
    w1, b1, dw, db, w2, b2 = params
    Ch, Cout = w1.shape[0], w2.shape[0]
    HW = H * W

    R = _choose_tile_rows(H, W, target_lanes)
    T = H // R
    L = R * W               # center lanes per tile
    S = (R + 2) * W         # slab lanes (center rows + 1 halo row above/below)

    # ---- input: ones channel (bias folding), zero halo rows, overlapping slabs
    ones = jnp.ones((N, 1, H, W), x_nchw.dtype)
    x_aug = jnp.concatenate([x_nchw, ones], axis=1)                   # [N,Cin+1,H,W]
    x_aug = jnp.pad(x_aug, ((0, 0), (0, 0), (1, 1), (0, 0)))          # [N,Cin+1,H+2,W]
    x_slab = jnp.stack(
        [x_aug[:, :, t * R: t * R + R + 2, :] for t in range(T)],
        axis=1)                                                       # [N,T,Cin+1,R+2,W]
    x_slab = x_slab.reshape(N, T, Cin + 1, S).astype(jnp.bfloat16)

    # ---- column border masks (hoisted out of the kernel) -------------------
    xcol = jnp.arange(L, dtype=jnp.int32) % W
    masks = jnp.stack([(xcol >= 1).astype(jnp.float32),
                       (xcol <= W - 2).astype(jnp.float32)])          # [2, L]

    # ---- weights ------------------------------------------------------------
    w1a = jnp.concatenate([w1, b1[:, None]], axis=1).astype(jnp.bfloat16)  # [Ch,Cin+1]
    dwf = dw.reshape(Ch, 9).astype(jnp.float32)
    dbf = db.reshape(Ch, 1).astype(jnp.float32)
    w2b = w2.astype(jnp.bfloat16)
    b2f = b2.reshape(Cout, 1).astype(jnp.float32)

    kernel = functools.partial(ffn_kernel, width=W, lanes=L)

    flops = N * HW * (2 * Ch * (Cin + 1) + 30 * Ch + 2 * Cout * Ch)
    cost = pl.CostEstimate(
        flops=int(flops),
        transcendentals=int(N * HW * Ch),
        bytes_accessed=int(x_slab.size * 2 + N * Cout * HW * 4
                           + (w1a.size + w2b.size) * 2
                           + (dwf.size + dbf.size + b2f.size + masks.size) * 4))

    out = pl.pallas_call(
        kernel,
        out_shape=jax.ShapeDtypeStruct((N, Cout, T * L), jnp.float32),
        grid_spec=pltpu.PrefetchScalarGridSpec(
            num_scalar_prefetch=0,
            grid=(N, T),
            in_specs=[
                pl.BlockSpec((1, 1, Cin + 1, S), lambda n, t: (n, t, 0, 0)),
                pl.BlockSpec((2, L), lambda n, t: (0, 0)),
                pl.BlockSpec((Ch, Cin + 1), lambda n, t: (0, 0)),
                pl.BlockSpec((Ch, 9), lambda n, t: (0, 0)),
                pl.BlockSpec((Ch, 1), lambda n, t: (0, 0)),
                pl.BlockSpec((Cout, Ch), lambda n, t: (0, 0)),
                pl.BlockSpec((Cout, 1), lambda n, t: (0, 0)),
            ],
            out_specs=pl.BlockSpec((1, Cout, L), lambda n, t: (n, 0, t)),
        ),
        compiler_params=pltpu.CompilerParams(
            dimension_semantics=("parallel", "parallel"),
            vmem_limit_bytes=48 * 1024 * 1024),
        cost_estimate=cost,
    )(x_slab, masks, w1a, dwf, dbf, w2b, b2f)

    return out.reshape(N, Cout, H, W)


# ------------------------------ parameters ---------------------------------
def init_params(key, c_in=32, c_hidden=128, c_out=32):
    ks = jax.random.split(key, 6)

    def w(k, shape, scale):
        return (scale * jax.random.normal(k, shape)).astype(jnp.float32)

    w1 = w(ks[0], (c_hidden, c_in), 0.1)       # pointwise1 weight [Ch, Cin]
    b1 = w(ks[1], (c_hidden,), 0.02)
    dw = w(ks[2], (c_hidden, 3, 3), 0.1)       # depthwise weight  [Ch, 3, 3]
    db = w(ks[3], (c_hidden,), 0.02)
    w2 = w(ks[4], (c_out, c_hidden), 0.1)      # pointwise2 weight [Cout, Ch]
    b2 = w(ks[5], (c_out,), 0.02)
    return (w1, b1, dw, db, w2, b2)


# --------------------------- pure-JAX reference -----------------------------
def reference_forward(x_nchw, params):
    """Same math as the kernel (bf16 matmul operands, f32 accumulation)."""
    w1, b1, dw, db, w2, b2 = params
    Ch = w1.shape[0]
    x = jnp.transpose(x_nchw, (0, 2, 3, 1)).astype(jnp.bfloat16)      # NHWC
    f = jnp.einsum('nhwc,dc->nhwd', x, w1.astype(jnp.bfloat16),
                   preferred_element_type=jnp.float32) + b1           # pointwise1
    k = jnp.transpose(dw, (1, 2, 0))[:, :, None, :].astype(jnp.float32)
    f = jax.lax.conv_general_dilated(
        f, k, (1, 1), ((1, 1), (1, 1)),
        dimension_numbers=('NHWC', 'HWIO', 'NHWC'),
        feature_group_count=Ch) + db                                  # depthwise
    f = _gelu(f)
    out = jnp.einsum('nhwc,dc->nhwd', f.astype(jnp.bfloat16),
                     w2.astype(jnp.bfloat16),
                     preferred_element_type=jnp.float32) + b2         # pointwise2
    return jnp.transpose(out, (0, 3, 1, 2))


# --------------------------------- main --------------------------------------
if __name__ == "__main__":
    key = jax.random.PRNGKey(0)
    k_img, k_par = jax.random.split(key)

    N, Cin, H, W = 2, 32, 16, 16
    x = jax.random.normal(k_img, (N, Cin, H, W), jnp.float32)
    params = init_params(k_par, c_in=Cin, c_hidden=128, c_out=Cin)

    out = jax.block_until_ready(ffn_forward(x, params))
    assert out.shape == (N, Cin, H, W), out.shape

    ref = jax.block_until_ready(reference_forward(x, params))
    err = float(jnp.max(jnp.abs(out - ref)))
    if not err < 2e-2:
        raise AssertionError(f"mismatch vs reference: max abs err = {err}")

    print("KERNEL_OK")
</pallas_src>

<mosaic_0001>
module attributes {stable_mosaic.version = 11 : i64} {
  func.func @ffn_kernel(%arg0: i32, %arg1: i32, %arg2: memref<1x1x33x160xbf16, #tpu.memory_space<vmem>>, %arg3: memref<2x128xf32, #tpu.memory_space<vmem>>, %arg4: memref<128x33xbf16, #tpu.memory_space<vmem>>, %arg5: memref<128x9xf32, #tpu.memory_space<vmem>>, %arg6: memref<128x1xf32, #tpu.memory_space<vmem>>, %arg7: memref<32x128xbf16, #tpu.memory_space<vmem>>, %arg8: memref<32x1xf32, #tpu.memory_space<vmem>>, %arg9: memref<1x32x128xf32, #tpu.memory_space<vmem>>) attributes {dimension_semantics = [#tpu.dimension_semantics<parallel>, #tpu.dimension_semantics<parallel>], iteration_bounds = array<i64: 2, 2>, scalar_prefetch = 0 : i64, scratch_operands = 0 : i64, tpu.core_type = #tpu.core_type<tc>, window_params = [{transform_indices = @transform_0, window_bounds = array<i64: 1, 1, 33, 160>}, {pipeline_mode = #tpu.pipeline_mode<synchronous>, transform_indices = @transform_1, window_bounds = array<i64: 2, 128>}, {pipeline_mode = #tpu.pipeline_mode<synchronous>, transform_indices = @transform_2, window_bounds = array<i64: 128, 33>}, {pipeline_mode = #tpu.pipeline_mode<synchronous>, transform_indices = @transform_3, window_bounds = array<i64: 128, 9>}, {pipeline_mode = #tpu.pipeline_mode<synchronous>, transform_indices = @transform_4, window_bounds = array<i64: 128, 1>}, {pipeline_mode = #tpu.pipeline_mode<synchronous>, transform_indices = @transform_5, window_bounds = array<i64: 32, 128>}, {pipeline_mode = #tpu.pipeline_mode<synchronous>, transform_indices = @transform_6, window_bounds = array<i64: 32, 1>}, {transform_indices = @transform_7, window_bounds = array<i64: 1, 32, 128>}]} {
    %c0 = arith.constant 0 : index
    %c0_0 = arith.constant 0 : index
    %c0_1 = arith.constant 0 : index
    %c0_2 = arith.constant 0 : index
    %0 = vector.load %arg2[%c0, %c0_0, %c0_1, %c0_2] : memref<1x1x33x160xbf16, #tpu.memory_space<vmem>>, vector<1x1x33x160xbf16>
    %1 = vector.shape_cast %0 : vector<1x1x33x160xbf16> to vector<33x160xbf16>
    %c0_3 = arith.constant 0 : index
    %c0_4 = arith.constant 0 : index
    %2 = vector.load %arg4[%c0_3, %c0_4] : memref<128x33xbf16, #tpu.memory_space<vmem>>, vector<128x33xbf16>
    %cst = arith.constant dense<0.000000e+00> : vector<128x160xf32>
    %3 = tpu.matmul %2, %1, %cst {dimension_numbers = #tpu.dot_dimension_numbers<[1], [0], [0], [1], [0, 0, 1, 1], [], []>} : vector<128x33xbf16>, vector<33x160xbf16>, vector<128x160xf32> -> vector<128x160xf32>
    %c0_5 = arith.constant 0 : index
    %c0_6 = arith.constant 0 : index
    %4 = vector.load %arg3[%c0_5, %c0_6] : memref<2x128xf32, #tpu.memory_space<vmem>>, vector<1x128xf32>
    %c1 = arith.constant 1 : index
    %c0_7 = arith.constant 0 : index
    %5 = vector.load %arg3[%c1, %c0_7] : memref<2x128xf32, #tpu.memory_space<vmem>>, vector<1x128xf32>
    %6 = vector.extract_strided_slice %3 {offsets = [0, 0], sizes = [128, 128], strides = [1, 1]} : vector<128x160xf32> to vector<128x128xf32>
    %c0_8 = arith.constant 0 : index
    %c1_9 = arith.constant 1 : index
    %7 = vector.load %arg5[%c0_8, %c1_9] : memref<128x9xf32, #tpu.memory_space<vmem>>, vector<128x1xf32>
    %8 = vector.broadcast %7 : vector<128x1xf32> to vector<128x128xf32>
    %9 = arith.mulf %6, %8 : vector<128x128xf32>
    %c1_i32 = arith.constant 1 : i32
    %10 = tpu.dynamic_rotate %6 by %c1_i32 dim 1 : vector<128x128xf32>, i32 -> vector<128x128xf32>
    %11 = vector.broadcast %4 : vector<1x128xf32> to vector<128x128xf32>
    %12 = arith.mulf %11, %10 : vector<128x128xf32>
    %c0_10 = arith.constant 0 : index
    %c0_11 = arith.constant 0 : index
    %13 = vector.load %arg5[%c0_10, %c0_11] : memref<128x9xf32, #tpu.memory_space<vmem>>, vector<128x1xf32>
    %14 = vector.broadcast %13 : vector<128x1xf32> to vector<128x128xf32>
    %15 = arith.mulf %12, %14 : vector<128x128xf32>
    %16 = arith.addf %9, %15 : vector<128x128xf32>
    %c127_i32 = arith.constant 127 : i32
    %17 = tpu.dynamic_rotate %6 by %c127_i32 dim 1 : vector<128x128xf32>, i32 -> vector<128x128xf32>
    %18 = vector.broadcast %5 : vector<1x128xf32> to vector<128x128xf32>
    %19 = arith.mulf %18, %17 : vector<128x128xf32>
    %c0_12 = arith.constant 0 : index
    %c2 = arith.constant 2 : index
    %20 = vector.load %arg5[%c0_12, %c2] : memref<128x9xf32, #tpu.memory_space<vmem>>, vector<128x1xf32>
    %21 = vector.broadcast %20 : vector<128x1xf32> to vector<128x128xf32>
    %22 = arith.mulf %19, %21 : vector<128x128xf32>
    %23 = arith.addf %16, %22 : vector<128x128xf32>
    %24 = vector.extract_strided_slice %3 {offsets = [0, 16], sizes = [128, 128], strides = [1, 1]} : vector<128x160xf32> to vector<128x128xf32>
    %c0_13 = arith.constant 0 : index
    %c4 = arith.constant 4 : index
    %25 = vector.load %arg5[%c0_13, %c4] : memref<128x9xf32, #tpu.memory_space<vmem>>, vector<128x1xf32>
    %26 = vector.broadcast %25 : vector<128x1xf32> to vector<128x128xf32>
    %27 = arith.mulf %24, %26 : vector<128x128xf32>
    %c1_i32_14 = arith.constant 1 : i32
    %28 = tpu.dynamic_rotate %24 by %c1_i32_14 dim 1 : vector<128x128xf32>, i32 -> vector<128x128xf32>
    %29 = vector.broadcast %4 : vector<1x128xf32> to vector<128x128xf32>
    %30 = arith.mulf %29, %28 : vector<128x128xf32>
    %c0_15 = arith.constant 0 : index
    %c3 = arith.constant 3 : index
    %31 = vector.load %arg5[%c0_15, %c3] : memref<128x9xf32, #tpu.memory_space<vmem>>, vector<128x1xf32>
    %32 = vector.broadcast %31 : vector<128x1xf32> to vector<128x128xf32>
    %33 = arith.mulf %30, %32 : vector<128x128xf32>
    %34 = arith.addf %27, %33 : vector<128x128xf32>
    %c127_i32_16 = arith.constant 127 : i32
    %35 = tpu.dynamic_rotate %24 by %c127_i32_16 dim 1 : vector<128x128xf32>, i32 -> vector<128x128xf32>
    %36 = vector.broadcast %5 : vector<1x128xf32> to vector<128x128xf32>
    %37 = arith.mulf %36, %35 : vector<128x128xf32>
    %c0_17 = arith.constant 0 : index
    %c5 = arith.constant 5 : index
    %38 = vector.load %arg5[%c0_17, %c5] : memref<128x9xf32, #tpu.memory_space<vmem>>, vector<128x1xf32>
    %39 = vector.broadcast %38 : vector<128x1xf32> to vector<128x128xf32>
    %40 = arith.mulf %37, %39 : vector<128x128xf32>
    %41 = arith.addf %34, %40 : vector<128x128xf32>
    %42 = arith.addf %23, %41 : vector<128x128xf32>
    %43 = vector.extract_strided_slice %3 {offsets = [0, 32], sizes = [128, 128], strides = [1, 1]} : vector<128x160xf32> to vector<128x128xf32>
    %c0_18 = arith.constant 0 : index
    %c7 = arith.constant 7 : index
    %44 = vector.load %arg5[%c0_18, %c7] : memref<128x9xf32, #tpu.memory_space<vmem>>, vector<128x1xf32>
    %45 = vector.broadcast %44 : vector<128x1xf32> to vector<128x128xf32>
    %46 = arith.mulf %43, %45 : vector<128x128xf32>
    %c1_i32_19 = arith.constant 1 : i32
    %47 = tpu.dynamic_rotate %43 by %c1_i32_19 dim 1 : vector<128x128xf32>, i32 -> vector<128x128xf32>
    %48 = vector.broadcast %4 : vector<1x128xf32> to vector<128x128xf32>
    %49 = arith.mulf %48, %47 : vector<128x128xf32>
    %c0_20 = arith.constant 0 : index
    %c6 = arith.constant 6 : index
    %50 = vector.load %arg5[%c0_20, %c6] : memref<128x9xf32, #tpu.memory_space<vmem>>, vector<128x1xf32>
    %51 = vector.broadcast %50 : vector<128x1xf32> to vector<128x128xf32>
    %52 = arith.mulf %49, %51 : vector<128x128xf32>
    %53 = arith.addf %46, %52 : vector<128x128xf32>
    %c127_i32_21 = arith.constant 127 : i32
    %54 = tpu.dynamic_rotate %43 by %c127_i32_21 dim 1 : vector<128x128xf32>, i32 -> vector<128x128xf32>
    %55 = vector.broadcast %5 : vector<1x128xf32> to vector<128x128xf32>
    %56 = arith.mulf %55, %54 : vector<128x128xf32>
    %c0_22 = arith.constant 0 : index
    %c8 = arith.constant 8 : index
    %57 = vector.load %arg5[%c0_22, %c8] : memref<128x9xf32, #tpu.memory_space<vmem>>, vector<128x1xf32>
    %58 = vector.broadcast %57 : vector<128x1xf32> to vector<128x128xf32>
    %59 = arith.mulf %56, %58 : vector<128x128xf32>
    %60 = arith.addf %53, %59 : vector<128x128xf32>
    %61 = arith.addf %42, %60 : vector<128x128xf32>
    %c0_23 = arith.constant 0 : index
    %c0_24 = arith.constant 0 : index
    %62 = vector.load %arg6[%c0_23, %c0_24] : memref<128x1xf32, #tpu.memory_space<vmem>>, vector<128x1xf32>
    %63 = vector.broadcast %62 : vector<128x1xf32> to vector<128x128xf32>
    %64 = arith.addf %61, %63 : vector<128x128xf32>
    %cst_25 = arith.constant 5.000000e-01 : f32
    %65 = vector.broadcast %cst_25 : f32 to vector<128x128xf32>
    %66 = arith.mulf %65, %64 : vector<128x128xf32>
    %cst_26 = arith.constant 4.471500e-02 : f32
    %67 = vector.broadcast %cst_26 : f32 to vector<128x128xf32>
    %68 = arith.mulf %67, %64 : vector<128x128xf32>
    %69 = arith.mulf %68, %64 : vector<128x128xf32>
    %70 = arith.mulf %69, %64 : vector<128x128xf32>
    %71 = arith.addf %64, %70 : vector<128x128xf32>
    %cst_27 = arith.constant 0.797884583 : f32
    %72 = vector.broadcast %cst_27 : f32 to vector<128x128xf32>
    %73 = arith.mulf %72, %71 : vector<128x128xf32>
    %74 = math.tanh %73 : vector<128x128xf32>
    %cst_28 = arith.constant 1.000000e+00 : f32
    %75 = vector.broadcast %cst_28 : f32 to vector<128x128xf32>
    %76 = arith.addf %75, %74 : vector<128x128xf32>
    %77 = arith.mulf %66, %76 : vector<128x128xf32>
    %c0_29 = arith.constant 0 : index
    %c0_30 = arith.constant 0 : index
    %78 = vector.load %arg7[%c0_29, %c0_30] : memref<32x128xbf16, #tpu.memory_space<vmem>>, vector<32x128xbf16>
    %79 = arith.truncf %77 : vector<128x128xf32> to vector<128x128xbf16>
    %cst_31 = arith.constant dense<0.000000e+00> : vector<32x128xf32>
    %80 = tpu.matmul %78, %79, %cst_31 {dimension_numbers = #tpu.dot_dimension_numbers<[1], [0], [0], [1], [0, 0, 1, 1], [], []>} : vector<32x128xbf16>, vector<128x128xbf16>, vector<32x128xf32> -> vector<32x128xf32>
    %c0_32 = arith.constant 0 : index
    %c0_33 = arith.constant 0 : index
    %81 = vector.load %arg8[%c0_32, %c0_33] : memref<32x1xf32, #tpu.memory_space<vmem>>, vector<32x1xf32>
    %82 = vector.broadcast %81 : vector<32x1xf32> to vector<32x128xf32>
    %83 = arith.addf %80, %82 : vector<32x128xf32>
    %c0_34 = arith.constant 0 : index
    %c0_35 = arith.constant 0 : index
    %c0_36 = arith.constant 0 : index
    %84 = vector.load %arg9[%c0_34, %c0_35, %c0_36] : memref<1x32x128xf32, #tpu.memory_space<vmem>>, vector<1x32x128xf32>
    %85 = vector.shape_cast %84 : vector<1x32x128xf32> to vector<32x128xf32>
    %86 = vector.shape_cast %83 : vector<32x128xf32> to vector<1x32x128xf32>
    tpu.vector_store %arg9[%c0_34, %c0_35, %c0_36], %86 {strides = array<i32>} : memref<1x32x128xf32, #tpu.memory_space<vmem>>, vector<1x32x128xf32>,
    return
  }
  func.func @transform_0(%arg0: i32, %arg1: i32) -> (i32, i32, i32, i32) {
    %c0_i32 = arith.constant 0 : i32
    %c0_i32_0 = arith.constant 0 : i32
    %c0_i32_1 = arith.constant 0 : i32
    return %arg0, %arg1, %c0_i32, %c0_i32_0 : i32, i32, i32, i32
  }
  func.func @transform_1(%arg0: i32, %arg1: i32) -> (i32, i32) {
    %c0_i32 = arith.constant 0 : i32
    %c0_i32_0 = arith.constant 0 : i32
    %c0_i32_1 = arith.constant 0 : i32
    return %c0_i32, %c0_i32_0 : i32, i32
  }
  func.func @transform_2(%arg0: i32, %arg1: i32) -> (i32, i32) {
    %c0_i32 = arith.constant 0 : i32
    %c0_i32_0 = arith.constant 0 : i32
    %c0_i32_1 = arith.constant 0 : i32
    return %c0_i32, %c0_i32_0 : i32, i32
  }
  func.func @transform_3(%arg0: i32, %arg1: i32) -> (i32, i32) {
    %c0_i32 = arith.constant 0 : i32
    %c0_i32_0 = arith.constant 0 : i32
    %c0_i32_1 = arith.constant 0 : i32
    return %c0_i32, %c0_i32_0 : i32, i32
  }
  func.func @transform_4(%arg0: i32, %arg1: i32) -> (i32, i32) {
    %c0_i32 = arith.constant 0 : i32
    %c0_i32_0 = arith.constant 0 : i32
    %c0_i32_1 = arith.constant 0 : i32
    return %c0_i32, %c0_i32_0 : i32, i32
  }
  func.func @transform_5(%arg0: i32, %arg1: i32) -> (i32, i32) {
    %c0_i32 = arith.constant 0 : i32
    %c0_i32_0 = arith.constant 0 : i32
    %c0_i32_1 = arith.constant 0 : i32
    return %c0_i32, %c0_i32_0 : i32, i32
  }
  func.func @transform_6(%arg0: i32, %arg1: i32) -> (i32, i32) {
    %c0_i32 = arith.constant 0 : i32
    %c0_i32_0 = arith.constant 0 : i32
    %c0_i32_1 = arith.constant 0 : i32
    return %c0_i32, %c0_i32_0 : i32, i32
  }
  func.func @transform_7(%arg0: i32, %arg1: i32) -> (i32, i32, i32) {
    %c0_i32 = arith.constant 0 : i32
    %c0_i32_0 = arith.constant 0 : i32
    return %arg0, %c0_i32, %arg1 : i32, i32, i32
  }
}

</mosaic_0001>

<bundles_post_ra>
// kernel: tpu_custom_call.1
= control target key start
LH: loop header
LB: loop body
LE: loop exit
PB: predicated region body
PF: predicated region fallthrough
CT: control target
= control target key end

     0   :  { %12 = vsyncpa [#allocation3], 0  ;;  %s5521_s0 = inlined_call_operand.vmem [shape: bf16[2,2,33,160], index: 0, kind: input, shape index: {}]   ;;  %s5522_s1 = inlined_call_operand.vmem [shape: f32[2,128], index: 1, kind: input, shape index: {}]   ;;  %s5523_s2 = inlined_call_operand.vmem [shape: bf16[128,33], index: 2, kind: input, shape index: {}]   ;;  %s5524_s3 = inlined_call_operand.vmem [shape: f32[128,9], index: 3, kind: input, shape index: {}]   ;;  %s5525_s4 = inlined_call_operand.vmem [shape: f32[128,1], index: 4, kind: input, shape index: {}]   ;;  %s5526_s5 = inlined_call_operand.vmem [shape: bf16[32,128], index: 5, kind: input, shape index: {}]   ;;  %s5527_s6 = inlined_call_operand.vmem [shape: f32[32,1], index: 6, kind: input, shape index: {}]   ;;  %s5528_s7 = inlined_call_operand.hbm [shape: f32[2,32,256], index: 7, kind: output, shape index: {}]  }
   0x1   :  { %14 = vsyncpa [#allocation3 + $0x1], 0  ;;  %s3400_s24 = smov 0   ;;  %s3402_s25 = smov 0  }
   0x2   :  { %s3404_s26 = smov 0   ;;  %s3406_s27 = smov 0  }
   0x3   :  { %s3408_s28 = smov 0   ;;  %s3410_s29 = smov 0  }
   0x4   :  { %s3412_s30 = smov 0   ;;  %s3414_s8 = smov 0  }
   0x5 LB: > { %5637 = sst [smem:[#allocation5_spill]] %s3336_s30  ;;  %s2958_s9 = sadd.s32 4294967295, %s3340_s8   ;;  %s3340_s8 = sphi %s3414_s8, %s20_s8   ;;  %s3336_s30 = sphi %s3412_s30, %s5989_s30   ;;  %s3332_s29 = sphi %s3410_s29, %s5994_s29   ;;  %s3328_s28 = sphi %s3408_s28, %s5987_s28   ;;  %s3324_s27 = sphi %s3406_s27, %s5993_s27   ;;  %s3320_s26 = sphi %s3404_s26, %s5992_s26   ;;  %s3316_s25 = sphi %s3402_s25, %s5991_s25   ;;  %s3312_s24 = sphi %s3400_s24, %s5990_s24  }
   0x6   : > { %s2959_s10 = sadd.s32 4294967294, %s3340_s8   ;;  %s29_s11 = sadd.s32 1, %s3332_s29 }
   0x7   : > { %p30_p0 = scmp.ge.s32.totalorder %s29_s11, 2  ;;  %s32_s12 = sadd.s32 1, %s3336_s30 }
   0x8   : > { %p205_p1 = scmp.ne.s32.totalorder %s3320_s26, %s3316_s25  ;;  %p206_p2 = scmp.eq.s32.totalorder %s2958_s9, 3 }
   0x9   : > { %s5996_s11 = smov (%p30_p0, %s29_s11), 0  ;;  %s5998_s12 = smov (!%p30_p0, %s32_s12), %s3336_s30 }
   0xa   : > { %5638 = sst [smem:[#allocation6_spill]] %s5996_s11  ;;  %s191_s13 = ssub.s32 %s3332_s29, %s5996_s11 }
   0xb   : > { %p3451_p3 = por %p206_p2, %p205_p1  ;;  %p34_p4 = scmp.ge.s32.totalorder %s5998_s12, 2 }
   0xc   : > { %p211_p5 = scmp.ne.s32.totalorder %s3316_s25, %s3312_s24  ;;  %p212_p6 = scmp.eq.s32.totalorder %s2959_s10, 3 }
   0xd   : > { %p2962_p7 = scmp.ge.s32.totalorder %s3340_s8, 1  ;;  %s6000_s12 = smov (%p34_p4, %s5998_s12), 0 }
   0xe   : > { %5640 = sst [smem:[#allocation7_spill]] %s6000_s12  ;;  %p3460_p8 = por %p212_p6, %p211_p5 }
   0xf   : > { %p260_p9 = scmp.lt.s32.totalorder %s3340_s8, 5  ;;  %s190_s16 = ssub.s32 %s3336_s30, %s6000_s12 }
  0x10   : > { %s195_s17 = sadd.s32 1, %s3320_s26  ;;  %s192_s18 = sor.u32 %s191_s13, %s190_s16 }
  0x11   : > { %p261_p10 = pnand %p2962_p7, %p260_p9  ;;  %p193_p11 = scmp.eq.s32.totalorder %s192_s18, 0 }
  0x13   : > { %s3469_s19 = scalar_select %p193_p11, %s3320_s26, %s195_s17  }
  0x14   : > { %264 = sbr.rel (%p261_p10) target bundleno = 2126 (0x84e), region = 48 }
  0x19   : > { %v3474_v0 = vld [vmem:[%s5524_s3 + $0x10] sm:$0xff]  ;;  %v3479_v1 = vld [vmem:[%s5524_s3 + $0x20] sm:$0xff]  ;;  %p296_p12 = scmp.lt.s32.totalorder %s3328_s28, 1  ;;  %p298_p13 = scmp.lt.s32.totalorder %s3324_s27, 1  ;;  %v3342_v2 = vmov 1   ;;  %v3496_v4 = vld [vmem:[%s5524_s3 + $0x18] sm:$0xff] }
  0x1a   : > { %3157 = vset.pattern.permute.xlu1 %v3342_v2  ;;  %3158 = vset.pattern.permute.xlu2 %v3342_v2  ;;  %v3486_v3 = vld [vmem:[%s5524_s3] sm:$0xff]  ;;  %v3501_v5 = vld [vmem:[%s5524_s3 + $0x28] sm:$0xff]  ;;  %vm417_vm0 = vcmask 1040384   ;;  %v5532_v9 = vmov 0   ;;  %v3529_v15 = vld [vmem:[%s5524_s3 + $0x38] sm:$0xff]  ;;  %vm392_vm1 = vcmask 269312  }
  0x1b   : > { %554 = vperm.xlu1 %3157, %v3474_v0   ;;  %564 = vperm.xlu2 %3158, %v3479_v1   ;;  %s297_s13 = scalar_select %p296_p12, %s3328_s28, 1  ;;  %v3511_v6 = vld [vmem:[%s5524_s3 + $0x8] sm:$0xff]  ;;  %v3520_v10 = vsel %vm417_vm0, 65535, %v5532_v9  ;;  %v3534_v16 = vld [vmem:[%s5524_s3 + $0x40] sm:$0xff]  ;;  %v3539_v18 = vld [vmem:[%s5524_s3 + $0x30] sm:$0xff]  ;;  %v3344_v34 = vmov 2  }
  0x1c   : > { %3156 = vset.pattern.permute.xlu0 %v3342_v2  ;;  %s299_s16 = scalar_select %p298_p13, %s3324_s27, 1  ;;  %v3549_v22 = vld [vmem:[%s5524_s3 + $0x50] sm:$0xff]  ;;  %v3554_v23 = vld [vmem:[%s5523_s2] sm:$0xff]  ;;  %v3559_v24 = vld [vmem:[%s5523_s2 + $0x28] sm:$0xff]  ;;  %vm1120_vm2 = vcmask 916480   ;;  %vm1905_vm3 = vcmask 785408  }
  0x1d   : > { %544 = vperm.xlu0 %3156, %v3486_v3   ;;  %s3066_s17 = smul.u32 20, %s297_s13  ;;  %v3564_v25 = vld [vmem:[%s5524_s3 + $0x58] sm:$0xff]  ;;  %v3575_v27 = vld [vmem:[%s5524_s3 + $0x48] sm:$0xff]  ;;  %v3593_v29 = vld [vmem:[%s5524_s3 + $0x70] sm:$0xff]  ;;  %s3346_s11 = smov 127  }
  0x1e   : > { %s3065_s18 = smul.u32 10, %s299_s16  ;;  %v3569_v26 = vld [vmem:[%s5523_s2 + $0x38] sm:$0xff]  ;;  %v3588_v28 = vld [vmem:[%s5524_s3 + $0x68] sm:$0xff]  ;;  %v3599_v30 = vld [vmem:[%s5524_s3 + $0x60] sm:$0xff]  ;;  %s3348_s12 = smov 112  }
  0x1f   : > { %v3047_v31 = vld [vmem:[%s5523_s2 + $0x8] sm:$0xff]  ;;  %v3609_v32 = vld [vmem:[%s5523_s2 + $0x30] sm:$0xff]  ;;  %v3615_v33 = vld [vmem:[%s5524_s3 + $0x78] sm:$0xff]  ;;  %s3350_s20 = smov 16   ;;  %s3353_s22 = smov 96  }
  0x20   : > { %s302_s9 = sadd.s32 %s3066_s17, %s3065_s18  ;;  %v3048_v35 = vld [vmem:[%s5523_s2 + $0x10] sm:$0xff]  ;;  %v3049_v36 = vld [vmem:[%s5523_s2 + $0x18] sm:$0xff]  ;;  %v3050_v39 = vld [vmem:[%s5523_s2 + $0x20] sm:$0xff]  ;;  %s3355_s13 = smov 32  }
  0x21   : > { %s2964_s10 = sshll.u32 %s302_s9, 2  ;;  %s3038_s21 = sshll.u32 %s3328_s28, 3 }
  0x22   : > { %s3506_s30 = scalar_lea.vmem %s5521_s0, %s2964_s10  ;;  %s2868_s23 = sadd.s32 %s3324_s27, %s3038_s21 }
  0x23   : > { %559 = vperm.xlu1 %3157, %v3496_v4   ;;  %569 = vperm.xlu2 %3158, %v3501_v5   ;;  %v3516_v7 = vld [vmem:[%s3506_s30 + $0x20] sm:$0x11]  ;;  %v3007_v12 = vld [vmem:[%s3506_s30 + $0x10] sm:$0xf]  ;;  %v3045_v13 = vld [vmem:[%s3506_s30 + $0x14] sm:$0xf0] }
  0x24   : > { %v380_v8 = vunpack.c.l.b16 %v3516_v7  ;;  %v3008_v17 = vor.u32 %v3045_v13, %v3007_v12  ;;  %v2999_v19 = vld [vmem:[%s3506_s30] sm:$0xf]  ;;  %v3043_v20 = vld [vmem:[%s3506_s30 + $0x4] sm:$0xf0]  ;;  %v381_v37 = vunpack.c.h.b16 %v3516_v7  ;;  %v3044_v41 = vld [vmem:[%s3506_s30 + $0x14] sm:$0xf] }
  0x25   : > { %549 = vperm.xlu0 %3156, %v3511_v6   ;;  %v3000_v21 = vor.u32 %v3043_v20, %v2999_v19  ;;  %v3009_v42 = vld [vmem:[%s3506_s30 + $0x18] sm:$0xf0]  ;;  %v3042_v44 = vld [vmem:[%s3506_s30 + $0x4] sm:$0xf]  ;;  %v3001_v45 = vld [vmem:[%s3506_s30 + $0x8] sm:$0xf0] }
  0x26   : > { %v386_v11 = vpack.c.b16 %v380_v8, %v380_v8  ;;  %v387_v38 = vpack.c.b16 %v381_v37, %v381_v37  ;;  %v3012_v43 = vor.u32 %v3044_v41, %v3009_v42  ;;  %v3004_v47 = vor.u32 %v3042_v44, %v3001_v45  ;;  %s3345_s30 = smov 1   ;;  %s3039_s9 = sshll.u32 %s2868_s23, 3 }
  0x27   : > { %v3347_v19 = vmov 4   ;;  %s2870_s10 = scalar_lea.hbm %s5528_s7, %s3039_s9  ;;  %s3266_s21 = scalar_lea.hbm %s5528_s7, 128 }
  0x28   : > { %v421_v14 = vand.u32 %v3520_v10, %v386_v11  ;;  %v424_v40 = vand.u32 %v3520_v10, %v387_v38 }
  0x2a   : > { %431 = vmatpush.bf16.msra.mxu0 %v421_v14  ;;  %3056 = vmatpush.bf16.msra.mxu2 %v421_v14 }
  0x2b   : > { %3057 = vmatpush.bf16.msra.mxu3 %v421_v14  ;;  %579 = vperm.xlu1 %3157, %v3529_v15  }
  0x2c   : > { %584 = vperm.xlu2 %3158, %v3534_v16   ;;  %480 = vmatpush.bf16.msra.mxu1 %v424_v40 }
  0x2d   : > { %574 = vperm.xlu0 %3156, %v3539_v18  }
  0x2e   : > { %432 = vmatpush.bf16.msra.mxu0 %v3008_v17  ;;  %3058 = vmatpush.bf16.msra.mxu2 %v3008_v17 }
  0x2f   : > { %3059 = vmatpush.bf16.msra.mxu3 %v3008_v17 }
  0x30   : > { %481 = vmatpush.bf16.msra.mxu1 %v3012_v43 }
  0x32   : > { %433 = vmatpush.bf16.msra.mxu0 %v3000_v21  ;;  %3060 = vmatpush.bf16.msra.mxu2 %v3000_v21 }
  0x33   : > { %3061 = vmatpush.bf16.msra.mxu3 %v3000_v21  ;;  %594 = vperm.xlu1 %3157, %v3549_v22  }
  0x34   : > { %599 = vperm.xlu2 %3158, %v3564_v25   ;;  %482 = vmatpush.bf16.msra.mxu1 %v3004_v47 }
  0x35   : > { %3013 = vmatmul.msk.bf16.vlgmr.msra.gmra.mxu0 %vm392_vm1, %v3554_v23  ;;  %3018 = vmatmul.msk.bf16.vlgmr.msra.gmra.mxu2 %vm392_vm1, %v3559_v24 }
  0x36   : > { %3020 = vmatmul.msk.bf16.vlgmr.msra.gmra.mxu3 %vm392_vm1, %v3569_v26  ;;  %589 = vperm.xlu0 %3156, %v3575_v27  }
  0x37   : > { %3062 = vmatpush.bf16.msrb.mxu3 %v424_v40  ;;  %3021 = vmatmul.msk.bf16.vlgmr.msra.gmra.mxu1 %vm392_vm1, %v3554_v23 }
  0x3b   : > { %609 = vperm.xlu1 %3157, %v3588_v28   ;;  %3063 = vmatpush.bf16.msrb.mxu3 %v3012_v43 }
  0x3c   : > { %614 = vperm.xlu2 %3158, %v3593_v29  }
  0x3e   : > { %604 = vperm.xlu0 %3156, %v3599_v30  }
  0x3f   : > { %3064 = vmatpush.bf16.msrb.mxu3 %v3004_v47 }
  0x43   : > { %3160 = vset.pattern.permute.xlu1 %v5532_v9 }
  0x44   : > { %696 = vperm.xlu1 %3160, %v3474_v0   ;;  %3159 = vset.pattern.permute.xlu2 %v5532_v9 }
  0x45   : > { %3014 = vmatmul.msk.bf16.gmra.mxu0 %vm392_vm1, %v3047_v31  ;;  %3019 = vmatmul.msk.bf16.gmra.mxu2 %vm392_vm1, %v3609_v32 }
  0x46   : > { %688 = vperm.xlu2 %3159, %v3486_v3   ;;  %619 = vperm.xlu0 %3156, %v3615_v33  }
  0x47   : > { %3026 = vmatmul.msk.bf16.vlgmr.msrb.gmra.mxu3 %vm392_vm1, %v3559_v24  ;;  %3022 = vmatmul.msk.bf16.gmra.mxu1 %vm392_vm1, %v3047_v31 }
  0x4c   : > { %704 = vperm.xlu1 %3160, %v3479_v1  }
  0x4e   : > { %700 = vperm.xlu2 %3159, %v3496_v4   ;;  %3162 = vset.pattern.permute.xlu0 %v3344_v34 }
  0x4f   : > { %837 = vperm.xlu0 %3162, %v3511_v6  }
  0x54   : > { %716 = vperm.xlu1 %3160, %v3529_v15  }
  0x55   : > { %3015 = vmatmul.msk.bf16.gmra.mxu0 %vm392_vm1, %v3048_v35 }
  0x56   : > { %708 = vperm.xlu2 %3159, %v3501_v5  }
  0x57   : > { %857 = vperm.xlu0 %3162, %v3539_v18   ;;  %3027 = vmatmul.msk.bf16.gmra.mxu3 %vm392_vm1, %v3609_v32 }
  0x58   : > { %3023 = vmatmul.msk.bf16.gmra.mxu1 %vm392_vm1, %v3048_v35 }
  0x5c   : > { %728 = vperm.xlu1 %3160, %v3549_v22  }
  0x5e   : > { %720 = vperm.xlu2 %3159, %v3534_v16  }
  0x5f   : > { %869 = vperm.xlu0 %3162, %v3575_v27  }
  0x64   : > { %740 = vperm.xlu1 %3160, %v3588_v28  }
  0x65   : > { %3016 = vmatmul.msk.bf16.gmra.mxu0 %vm392_vm1, %v3049_v36 }
  0x66   : > { %732 = vperm.xlu2 %3159, %v3564_v25  }
  0x67   : > { %881 = vperm.xlu0 %3162, %v3599_v30   ;;  %3028 = vmatmul.msk.bf16.gmra.mxu3 %vm392_vm1, %v3569_v26 }
  0x68   : > { %3024 = vmatmul.msk.bf16.gmra.mxu1 %vm392_vm1, %v3049_v36 }
  0x6c   : > { %3163 = vset.pattern.permute.xlu1 %v3344_v34 }
  0x6d   : > { %841 = vperm.xlu1 %3163, %v3474_v0  }
  0x6e   : > { %744 = vperm.xlu2 %3159, %v3593_v29  }
  0x75   : > { %3017 = vmatmul.msk.bf16.gmra.mxu0 %vm392_vm1, %v3050_v39  ;;  %849 = vperm.xlu1 %3163, %v3479_v1   ;;  %v3657_v46 = vpop.permute.xlu2 %564 }
  0x76   : > { %3161 = vset.pattern.permute.xlu2 %v3344_v34  ;;  %5642 = vst [vmem:[#allocation8_spill] sm:$0xff] %v3657_v46 }
  0x77   : > { %833 = vperm.xlu2 %3161, %v3486_v3  }
  0x78   : > { %3025 = vmatmul.msk.bf16.gmra.mxu1 %vm392_vm1, %v3050_v39 }
  0x7d   : > { %861 = vperm.xlu1 %3163, %v3529_v15   ;;  %v3666_v48 = vpop.permute.xlu2 %569 }
  0x7e   : > { %5643 = vst [vmem:[#allocation9_spill] sm:$0xff] %v3666_v48 }
  0x7f   : > { %845 = vperm.xlu2 %3161, %v3496_v4  }
  0x85   : > { %873 = vperm.xlu1 %3163, %v3549_v22  }
  0x86   : > { %v3670_v49 = vpop.permute.xlu2 %584 }
  0x87   : > { %853 = vperm.xlu2 %3161, %v3501_v5   ;;  %5644 = vst [vmem:[#allocation10_spill] sm:$0xff] %v3670_v49 }
  0x8d   : > { %885 = vperm.xlu1 %3163, %v3588_v28   ;;  %v3674_v50 = vpop.permute.xlu1 %554 }
  0x8e   : > { %5645 = vst [vmem:[#allocation11_spill] sm:$0xff] %v3674_v50  ;;  %v3679_v51 = vpop.permute.xlu2 %599 }
  0x8f   : > { %865 = vperm.xlu2 %3161, %v3534_v16   ;;  %5646 = vst [vmem:[#allocation12_spill] sm:$0xff] %v3679_v51  ;;  %v3737_v11 = vpop.permute.xlu0 %544 }
  0x90   : > { %5663 = vst [vmem:[#allocation29_spill] sm:$0xff] %v3737_v11 }
  0x95   : > { %v3682_v52 = vpop.permute.xlu1 %559  ;;  %3164 = vset.pattern.permute.xlu1 %v3347_v19 }
  0x96   : > { %5647 = vst [vmem:[#allocation13_spill] sm:$0xff] %v3682_v52  ;;  %v3685_v53 = vpop.permute.xlu2 %614 }
  0x97   : > { %877 = vperm.xlu2 %3161, %v3564_v25   ;;  %5648 = vst [vmem:[#allocation14_spill] sm:$0xff] %v3685_v53  ;;  %v3755_v20 = vpop.permute.xlu0 %549 }
  0x98   : > { %5668 = vst [vmem:[#allocation34_spill] sm:$0xff] %v3755_v20 }
  0x9d   : > { %v3689_v54 = vpop.permute.xlu1 %579 }
  0x9e   : > { %5649 = vst [vmem:[#allocation15_spill] sm:$0xff] %v3689_v54 }
  0x9f   : > { %v3771_v31 = vpop.permute.xlu0 %574 }
  0xa0   : > { %v3691_v55 = vpop.permute.xlu2 %688  ;;  %5673 = vst [vmem:[#allocation39_spill] sm:$0xff] %v3771_v31 }
  0xa1   : > { %5650 = vst [vmem:[#allocation16_spill] sm:$0xff] %v3691_v55 }
  0xa5   : > { %v3693_v56 = vpop.permute.xlu1 %594 }
  0xa6   : > { %5651 = vst [vmem:[#allocation17_spill] sm:$0xff] %v3693_v56 }
  0xa8   : > { %v3698_v58 = vpop.permute.xlu2 %700  ;;  %v3785_v36 = vpop.permute.xlu0 %589 }
  0xa9   : > { %5653 = vst [vmem:[#allocation19_spill] sm:$0xff] %v3698_v58 }
  0xaa   : > { %5677 = vst [vmem:[#allocation43_spill] sm:$0xff] %v3785_v36 }
  0xad   : > { %v3702_v59 = vpop.permute.xlu1 %609 }
  0xae   : > { %5654 = vst [vmem:[#allocation20_spill] sm:$0xff] %v3702_v59 }
  0xb0   : > { %v3714_v62 = vpop.permute.xlu2 %708  ;;  %v3802_v40 = vpop.permute.xlu0 %604 }
  0xb1   : > { %5657 = vst [vmem:[#allocation23_spill] sm:$0xff] %v3714_v62 }
  0xb2   : > { %v3696_v57 = vpop.f32.mrf.mxu0  ;;  %5681 = vst [vmem:[#allocation47_spill] sm:$0xff] %v3802_v40 }
  0xb3   : > { %5652 = vst [vmem:[#allocation18_spill] sm:$0xff] %v3696_v57  ;;  %638 = vrot.lane.b32.xlu1 %v3696_v57, %s3345_s30 }
  0xb4   : > { %v3855_v58 = vpop.f32.mrf.mxu1 }
  0xb5   : > { %5697 = vst [vmem:[#allocation63_spill] sm:$0xff] %v3855_v58 }
  0xb6   : > { %v3717_v63 = vpop.permute.xlu1 %696 }
  0xb7   : > { %5658 = vst [vmem:[#allocation24_spill] sm:$0xff] %v3717_v63 }
  0xb8   : > { %v3704_v60 = vpop.f32.mrf.mxu2  ;;  %v3731_v10 = vpop.permute.xlu2 %720 }
  0xb9   : > { %5655 = vst [vmem:[#allocation21_spill] sm:$0xff] %v3704_v60  ;;  %v3706_v61 = vpop.f32.mrf.mxu3  ;;  %658 = vrot.lane.b32.xlu2 %v3704_v60, %s3345_s30  ;;  %v3816_v44 = vpop.permute.xlu0 %619 }
  0xba   : > { %5656 = vst [vmem:[#allocation22_spill] sm:$0xff] %v3706_v61  ;;  %666 = vrot.lane.b32.xlu0 %v3706_v61, %s3345_s30  ;;  %v3721_v2 = vpop.f32.mrf.mxu0 }
  0xbb   : > { %783 = vrot.lane.b32.xlu1 %v3696_v57, %s3346_s11  ;;  %5659 = vst [vmem:[#allocation25_spill] sm:$0xff] %v3721_v2 }
  0xbc   : > { %5662 = vst [vmem:[#allocation28_spill] sm:$0xff] %v3731_v10 }
  0xbd   : > { %5685 = vst [vmem:[#allocation51_spill] sm:$0xff] %v3816_v44 }
  0xbe   : > { %v3741_v12 = vpop.permute.xlu1 %704 }
  0xbf   : > { %5664 = vst [vmem:[#allocation30_spill] sm:$0xff] %v3741_v12 }
  0xc0   : > { %v3729_v8 = vpop.f32.mrf.mxu2  ;;  %v3747_v17 = vpop.permute.xlu2 %732 }
  0xc1   : > { %803 = vrot.lane.b32.xlu2 %v3704_v60, %s3346_s11  ;;  %v3723_v7 = vpop.f32.mrf.mxu3  ;;  %5661 = vst [vmem:[#allocation27_spill] sm:$0xff] %v3729_v8  ;;  %v3829_v20 = vpop.permute.xlu0 %837 }
  0xc2   : > { %5660 = vst [vmem:[#allocation26_spill] sm:$0xff] %v3723_v7  ;;  %811 = vrot.lane.b32.xlu0 %v3706_v61, %s3346_s11  ;;  %v3743_v13 = vpop.f32.mrf.mxu0 }
  0xc3   : > { %668 = vrot.lane.b32.xlu1 %v3723_v7, %s3345_s30  ;;  %5665 = vst [vmem:[#allocation31_spill] sm:$0xff] %v3743_v13 }
  0xc4   : > { %5667 = vst [vmem:[#allocation33_spill] sm:$0xff] %v3747_v17 }
  0xc5   : > { %5689 = vst [vmem:[#allocation55_spill] sm:$0xff] %v3829_v20 }
  0xc6   : > { %v3757_v21 = vpop.permute.xlu1 %716 }
  0xc7   : > { %5669 = vst [vmem:[#allocation35_spill] sm:$0xff] %v3757_v21 }
  0xc8   : > { %v3745_v14 = vpop.f32.mrf.mxu2  ;;  %v3767_v26 = vpop.permute.xlu2 %744 }
  0xc9   : > { %640 = vrot.lane.b32.xlu2 %v3721_v2, %s3345_s30  ;;  %5666 = vst [vmem:[#allocation32_spill] sm:$0xff] %v3745_v14 }
  0xca   : > { %660 = vrot.lane.b32.xlu0 %v3729_v8, %s3345_s30  ;;  %v3759_v23 = vpop.f32.mrf.mxu0  ;;  %5672 = vst [vmem:[#allocation38_spill] sm:$0xff] %v3767_v26 }
  0xcb   : > { %813 = vrot.lane.b32.xlu1 %v3723_v7, %s3346_s11  ;;  %5670 = vst [vmem:[#allocation36_spill] sm:$0xff] %v3759_v23 }
  0xce   : > { %v3773_v32 = vpop.permute.xlu1 %728 }
  0xcf   : > { %5674 = vst [vmem:[#allocation40_spill] sm:$0xff] %v3773_v32 }
  0xd0   : > { %v3761_v24 = vpop.f32.mrf.mxu2 }
  0xd1   : > { %785 = vrot.lane.b32.xlu2 %v3721_v2, %s3346_s11  ;;  %5671 = vst [vmem:[#allocation37_spill] sm:$0xff] %v3761_v24  ;;  %v3781_v35 = vpop.permute.xlu2 %833 }
  0xd2   : > { %805 = vrot.lane.b32.xlu0 %v3729_v8, %s3346_s11  ;;  %v3775_v34 = vpop.f32.mrf.mxu0  ;;  %5676 = vst [vmem:[#allocation42_spill] sm:$0xff] %v3781_v35 }
  0xd3   : > { %662 = vrot.lane.b32.xlu1 %v3745_v14, %s3345_s30  ;;  %5675 = vst [vmem:[#allocation41_spill] sm:$0xff] %v3775_v34 }
  0xd6   : > { %v3789_v37 = vpop.permute.xlu1 %740 }
  0xd7   : > { %5678 = vst [vmem:[#allocation44_spill] sm:$0xff] %v3789_v37 }
  0xd9   : > { %664 = vrot.lane.b32.xlu2 %v3761_v24, %s3345_s30  ;;  %v3796_v39 = vpop.permute.xlu2 %845 }
  0xda   : > { %642 = vrot.lane.b32.xlu0 %v3743_v13, %s3345_s30  ;;  %v3791_v38 = vpop.f32.mrf.mxu0  ;;  %5680 = vst [vmem:[#allocation46_spill] sm:$0xff] %v3796_v39 }
  0xdb   : > { %807 = vrot.lane.b32.xlu1 %v3745_v14, %s3346_s11  ;;  %5679 = vst [vmem:[#allocation45_spill] sm:$0xff] %v3791_v38 }
  0xdf   : > { %v3805_v41 = vpop.permute.xlu1 %841 }
  0xe0   : > { %5682 = vst [vmem:[#allocation48_spill] sm:$0xff] %v3805_v41 }
  0xe1   : > { %809 = vrot.lane.b32.xlu2 %v3761_v24, %s3346_s11  ;;  %v3809_v43 = vpop.permute.xlu2 %853 }
  0xe2   : > { %787 = vrot.lane.b32.xlu0 %v3743_v13, %s3346_s11  ;;  %v3807_v42 = vpop.f32.mrf.mxu0  ;;  %5684 = vst [vmem:[#allocation50_spill] sm:$0xff] %v3809_v43  ;;  %v3867_v43 = vpop.f32.mrf.mxu1 }
  0xe3   : > { %644 = vrot.lane.b32.xlu1 %v3759_v23, %s3345_s30  ;;  %5683 = vst [vmem:[#allocation49_spill] sm:$0xff] %v3807_v42 }
  0xe4   : > { %5701 = vst [vmem:[#allocation67_spill] sm:$0xff] %v3867_v43 }
  0xe7   : > { %v3818_v45 = vpop.permute.xlu1 %849 }
  0xe8   : > { %5686 = vst [vmem:[#allocation52_spill] sm:$0xff] %v3818_v45 }
  0xe9   : > { %646 = vrot.lane.b32.xlu2 %v3775_v34, %s3345_s30  ;;  %v3822_v9 = vpop.permute.xlu2 %865 }
  0xea   : > { %893 = vperm.xlu0 %3162, %v3615_v33   ;;  %v3820_v47 = vpop.f32.mrf.mxu0  ;;  %5688 = vst [vmem:[#allocation54_spill] sm:$0xff] %v3822_v9  ;;  %v3878_v46 = vpop.f32.mrf.mxu1 }
  0xeb   : > { %789 = vrot.lane.b32.xlu1 %v3759_v23, %s3346_s11  ;;  %5687 = vst [vmem:[#allocation53_spill] sm:$0xff] %v3820_v47 }
  0xec   : > { %5705 = vst [vmem:[#allocation71_spill] sm:$0xff] %v3878_v46 }
  0xef   : > { %v3831_v35 = vpop.permute.xlu1 %861 }
  0xf0   : > { %5690 = vst [vmem:[#allocation56_spill] sm:$0xff] %v3831_v35 }
  0xf1   : > { %791 = vrot.lane.b32.xlu2 %v3775_v34, %s3346_s11  ;;  %v3839_v11 = vpop.permute.xlu2 %877 }
  0xf2   : > { %648 = vrot.lane.b32.xlu0 %v3791_v38, %s3345_s30  ;;  %v3833_v55 = vpop.f32.mrf.mxu0  ;;  %5692 = vst [vmem:[#allocation58_spill] sm:$0xff] %v3839_v11 }
  0xf3   : > { %929 = vperm.xlu1 %3164, %v3486_v3   ;;  %3166 = vset.pattern.permute.xlu0 %v3347_v19  ;;  %5691 = vst [vmem:[#allocation57_spill] sm:$0xff] %v3833_v55 }
  0xf7   : > { %v3845_v39 = vpop.permute.xlu1 %873 }
  0xf8   : > { %5694 = vst [vmem:[#allocation60_spill] sm:$0xff] %v3845_v39 }
  0xf9   : > { %889 = vperm.xlu2 %3161, %v3593_v29  }
  0xfa   : > { %793 = vrot.lane.b32.xlu0 %v3791_v38, %s3346_s11  ;;  %v3847_v20 = vpop.f32.mrf.mxu0 }
  0xfb   : > { %650 = vrot.lane.b32.xlu1 %v3807_v42, %s3345_s30  ;;  %5695 = vst [vmem:[#allocation61_spill] sm:$0xff] %v3847_v20 }
  0xff   : > { %v3865_v63 = vpop.permute.xlu1 %885 }
 0x100   : > { %5700 = vst [vmem:[#allocation66_spill] sm:$0xff] %v3865_v63 }
 0x101   : > { %652 = vrot.lane.b32.xlu2 %v3820_v47, %s3345_s30 }
 0x102   : > { %937 = vperm.xlu0 %3166, %v3474_v0   ;;  %3165 = vset.pattern.permute.xlu2 %v3347_v19  ;;  %v3842_v19 = vpop.permute.xlu0 %857 }
 0x103   : > { %795 = vrot.lane.b32.xlu1 %v3807_v42, %s3346_s11  ;;  %5693 = vst [vmem:[#allocation59_spill] sm:$0xff] %v3842_v19 }
 0x109   : > { %797 = vrot.lane.b32.xlu2 %v3820_v47, %s3346_s11 }
 0x10a   : > { %654 = vrot.lane.b32.xlu0 %v3833_v55, %s3345_s30  ;;  %v3858_v41 = vpop.permute.xlu0 %869 }
 0x10b   : > { %941 = vperm.xlu1 %3164, %v3496_v4   ;;  %5698 = vst [vmem:[#allocation64_spill] sm:$0xff] %v3858_v41 }
 0x111   : > { %933 = vperm.xlu2 %3165, %v3511_v6  }
 0x112   : > { %799 = vrot.lane.b32.xlu0 %v3833_v55, %s3346_s11  ;;  %v3874_v62 = vpop.permute.xlu0 %881 }
 0x113   : > { %v3851_v52 = vpop.permute.xlu2 %658  ;;  %656 = vrot.lane.b32.xlu1 %v3847_v20, %s3345_s30  ;;  %5703 = vst [vmem:[#allocation69_spill] sm:$0xff] %v3874_v62 }
 0x114   : > { %5696 = vst [vmem:[#allocation62_spill] sm:$0xff] %v3851_v52 }
 0x119   : > { %945 = vperm.xlu2 %3165, %v3479_v1  }
 0x11a   : > { %957 = vperm.xlu0 %3166, %v3529_v15  }
 0x11b   : > { %v3861_v50 = vpop.permute.xlu2 %803  ;;  %801 = vrot.lane.b32.xlu1 %v3847_v20, %s3346_s11 }
 0x11c   : > { %5699 = vst [vmem:[#allocation65_spill] sm:$0xff] %v3861_v50 }
 0x121   : > { %953 = vperm.xlu2 %3165, %v3539_v18  }
 0x122   : > { %969 = vperm.xlu0 %3166, %v3549_v22  }
 0x123   : > { %v3871_v48 = vpop.permute.xlu2 %640  ;;  %949 = vperm.xlu1 %3164, %v3501_v5  }
 0x124   : > { %5702 = vst [vmem:[#allocation68_spill] sm:$0xff] %v3871_v48  ;;  %v3890_v48 = vpop.f32.mrf.mxu1 }
 0x125   : > { %v3876_v45 = vpop.permute.xlu1 %638  ;;  %5709 = vst [vmem:[#allocation75_spill] sm:$0xff] %v3890_v48 }
 0x126   : > { %5704 = vst [vmem:[#allocation70_spill] sm:$0xff] %v3876_v45 }
 0x129   : > { %965 = vperm.xlu2 %3165, %v3575_v27  }
 0x12a   : > { %981 = vperm.xlu0 %3166, %v3588_v28  }
 0x12b   : > { %v3882_v12 = vpop.permute.xlu2 %785  ;;  %961 = vperm.xlu1 %3164, %v3534_v16  }
 0x12c   : > { %5706 = vst [vmem:[#allocation72_spill] sm:$0xff] %v3882_v12  ;;  %v3885_v35 = vpop.permute.xlu0 %666 }
 0x12d   : > { %5707 = vst [vmem:[#allocation73_spill] sm:$0xff] %v3885_v35  ;;  %v3887_v54 = vpop.permute.xlu1 %783 }
 0x12e   : > { %5708 = vst [vmem:[#allocation74_spill] sm:$0xff] %v3887_v54  ;;  %v3904_v54 = vpop.f32.mrf.mxu1 }
 0x12f   : > { %5713 = vst [vmem:[#allocation79_spill] sm:$0xff] %v3904_v54 }
 0x131   : > { %977 = vperm.xlu2 %3165, %v3599_v30  }
 0x132   : > { %1056 = vrot.lane.b32.xlu0 %v3696_v57, %s3348_s12 }
 0x133   : > { %v3894_v45 = vpop.permute.xlu2 %664  ;;  %973 = vperm.xlu1 %3164, %v3564_v25  }
 0x134   : > { %5710 = vst [vmem:[#allocation76_spill] sm:$0xff] %v3894_v45  ;;  %v3897_v21 = vpop.permute.xlu0 %811 }
 0x135   : > { %5711 = vst [vmem:[#allocation77_spill] sm:$0xff] %v3897_v21  ;;  %v3899_v12 = vpop.permute.xlu1 %668 }
 0x136   : > { %5712 = vst [vmem:[#allocation78_spill] sm:$0xff] %v3899_v12  ;;  %v3923_v10 = vpop.f32.mrf.mxu1 }
 0x137   : > { %5719 = vst [vmem:[#allocation85_spill] sm:$0xff] %v3923_v10 }
 0x139   : > { %989 = vperm.xlu2 %3165, %v3615_v33  }
 0x13a   : > { %1062 = vrot.lane.b32.xlu0 %v3867_v43, %s3348_s12 }
 0x13b   : > { %v3906_v19 = vpop.permute.xlu2 %809  ;;  %985 = vperm.xlu1 %3164, %v3593_v29  }
 0x13c   : > { %5714 = vst [vmem:[#allocation80_spill] sm:$0xff] %v3906_v19  ;;  %v3909_v31 = vpop.permute.xlu0 %660 }
 0x13d   : > { %5715 = vst [vmem:[#allocation81_spill] sm:$0xff] %v3909_v31  ;;  %v3911_v41 = vpop.permute.xlu1 %813 }
 0x13e   : > { %5716 = vst [vmem:[#allocation82_spill] sm:$0xff] %v3911_v41  ;;  %v3939_v17 = vpop.f32.mrf.mxu1 }
 0x13f   : > { %5724 = vst [vmem:[#allocation90_spill] sm:$0xff] %v3939_v17 }
 0x141   : > { %1060 = vrot.lane.b32.xlu2 %v3721_v2, %s3348_s12 }
 0x142   : > { %1068 = vrot.lane.b32.xlu0 %v3759_v23, %s3348_s12 }
 0x143   : > { %v3917_v36 = vpop.permute.xlu2 %646  ;;  %1058 = vrot.lane.b32.xlu1 %v3855_v58, %s3348_s12 }
 0x144   : > { %5717 = vst [vmem:[#allocation83_spill] sm:$0xff] %v3917_v36  ;;  %v3921_v9 = vpop.permute.xlu0 %805 }
 0x145   : > { %5718 = vst [vmem:[#allocation84_spill] sm:$0xff] %v3921_v9  ;;  %v3925_v49 = vpop.permute.xlu1 %662  ;;  %v3959_v9 = vpop.f32.mrf.mxu3 }
 0x146   : > { %5720 = vst [vmem:[#allocation86_spill] sm:$0xff] %v3925_v49 }
 0x147   : > { %5729 = vst [vmem:[#allocation95_spill] sm:$0xff] %v3959_v9 }
 0x149   : > { %1066 = vrot.lane.b32.xlu2 %v3878_v46, %s3348_s12 }
 0x14a   : > { %1074 = vrot.lane.b32.xlu0 %v3904_v54, %s3348_s12 }
 0x14b   : > { %v3931_v11 = vpop.permute.xlu2 %791  ;;  %1064 = vrot.lane.b32.xlu1 %v3743_v13, %s3348_s12 }
 0x14c   : > { %5721 = vst [vmem:[#allocation87_spill] sm:$0xff] %v3931_v11  ;;  %v3935_v36 = vpop.permute.xlu0 %642 }
 0x14d   : > { %5722 = vst [vmem:[#allocation88_spill] sm:$0xff] %v3935_v36  ;;  %v3937_v51 = vpop.permute.xlu1 %807  ;;  %v3953_v36 = vpop.f32.mrf.mxu1 }
 0x14e   : > { %5723 = vst [vmem:[#allocation89_spill] sm:$0xff] %v3937_v51 }
 0x14f   : > { %5728 = vst [vmem:[#allocation94_spill] sm:$0xff] %v3953_v36 }
 0x151   : > { %1072 = vrot.lane.b32.xlu2 %v3775_v34, %s3348_s12 }
 0x152   : > { %1080 = vrot.lane.b32.xlu0 %v3807_v42, %s3348_s12 }
 0x153   : > { %v3945_v39 = vpop.permute.xlu2 %889  ;;  %1070 = vrot.lane.b32.xlu1 %v3890_v48, %s3348_s12 }
 0x154   : > { %5725 = vst [vmem:[#allocation91_spill] sm:$0xff] %v3945_v39  ;;  %v3949_v11 = vpop.permute.xlu0 %787 }
 0x155   : > { %5726 = vst [vmem:[#allocation92_spill] sm:$0xff] %v3949_v11  ;;  %v3951_v56 = vpop.permute.xlu1 %644  ;;  %v3983_v63 = vpop.f32.mrf.mxu1 }
 0x156   : > { %5727 = vst [vmem:[#allocation93_spill] sm:$0xff] %v3951_v56 }
 0x157   : > { %5736 = vst [vmem:[#allocation102_spill] sm:$0xff] %v3983_v63 }
 0x159   : > { %1078 = vrot.lane.b32.xlu2 %v3923_v10, %s3348_s12 }
 0x15a   : > { %1086 = vrot.lane.b32.xlu0 %v3953_v36, %s3348_s12 }
 0x15b   : > { %v3961_v32 = vpop.permute.xlu2 %652  ;;  %1076 = vrot.lane.b32.xlu1 %v3791_v38, %s3348_s12 }
 0x15c   : > { %5730 = vst [vmem:[#allocation96_spill] sm:$0xff] %v3961_v32  ;;  %v3965_v31 = vpop.permute.xlu0 %893  ;;  %v3979_v32 = vpop.f32.mrf.mxu3 }
 0x15d   : > { %5731 = vst [vmem:[#allocation97_spill] sm:$0xff] %v3965_v31  ;;  %v3967_v11 = vpop.permute.xlu1 %789  ;;  %v4001_v37 = vpop.f32.mrf.mxu1 }
 0x15e   : > { %5732 = vst [vmem:[#allocation98_spill] sm:$0xff] %v3967_v11 }
 0x15f   : > { %5735 = vst [vmem:[#allocation101_spill] sm:$0xff] %v3979_v32 }
 0x160   : > { %5740 = vst [vmem:[#allocation106_spill] sm:$0xff] %v4001_v37 }
 0x161   : > { %1084 = vrot.lane.b32.xlu2 %v3820_v47, %s3348_s12 }
 0x162   : > { %1092 = vrot.lane.b32.xlu0 %v3847_v20, %s3348_s12 }
 0x163   : > { %v3973_v56 = vpop.permute.xlu2 %797  ;;  %1082 = vrot.lane.b32.xlu1 %v3939_v17, %s3348_s12 }
 0x164   : > { %5733 = vst [vmem:[#allocation99_spill] sm:$0xff] %v3973_v56  ;;  %v3977_v50 = vpop.permute.xlu0 %648  ;;  %v3997_v59 = vpop.f32.mrf.mxu3 }
 0x165   : > { %5734 = vst [vmem:[#allocation100_spill] sm:$0xff] %v3977_v50  ;;  %v3981_v52 = vpop.permute.xlu1 %929 }
 0x166   : > { %5739 = vst [vmem:[#allocation105_spill] sm:$0xff] %v3997_v59 }
 0x169   : > { %1090 = vrot.lane.b32.xlu2 %v3983_v63, %s3348_s12 }
 0x16a   : > { %1098 = vrot.lane.b32.xlu0 %v3959_v9, %s3348_s12 }
 0x16b   : > { %v3989_v11 = vpop.permute.xlu2 %933  ;;  %1088 = vrot.lane.b32.xlu1 %v3833_v55, %s3348_s12  ;;  %v4174_v55 = vld [vmem:[%s5522_s1] ss:$0 sm:$0xff] }
 0x16c   : > { %v3993_v56 = vpop.permute.xlu0 %793 }
 0x16d   : > { %5737 = vst [vmem:[#allocation103_spill] sm:$0xff] %v3993_v56  ;;  %v3995_v50 = vpop.permute.xlu1 %650 }
 0x16e   : > { %5738 = vst [vmem:[#allocation104_spill] sm:$0xff] %v3995_v50  ;;  %v4013_v50 = vpop.f32.mrf.mxu3 }
 0x16f   : > { %5743 = vst [vmem:[#allocation109_spill] sm:$0xff] %v4013_v50 }
 0x171   : > { %1096 = vrot.lane.b32.xlu2 %v3704_v60, %s3348_s12 }
 0x172   : > { %1104 = vrot.lane.b32.xlu0 %v3745_v14, %s3348_s12 }
 0x173   : > { %v4005_v62 = vpop.permute.xlu2 %945  ;;  %1094 = vrot.lane.b32.xlu1 %v4001_v37, %s3348_s12 }
 0x174   : > { %5741 = vst [vmem:[#allocation107_spill] sm:$0xff] %v4005_v62  ;;  %v4009_v19 = vpop.permute.xlu0 %937 }
 0x175   : > { %v4011_v56 = vpop.permute.xlu1 %795 }
 0x176   : > { %5742 = vst [vmem:[#allocation108_spill] sm:$0xff] %v4011_v56  ;;  %v4039_v41 = vpop.f32.mrf.mxu3 }
 0x177   : > { %5749 = vst [vmem:[#allocation115_spill] sm:$0xff] %v4039_v41 }
 0x179   : > { %1102 = vrot.lane.b32.xlu2 %v3979_v32, %s3348_s12 }
 0x17a   : > { %1110 = vrot.lane.b32.xlu0 %v4013_v50, %s3348_s12 }
 0x17b   : > { %v4019_v45 = vpop.permute.xlu2 %953  ;;  %1100 = vrot.lane.b32.xlu1 %v3729_v8, %s3348_s12 }
 0x17c   : > { %5744 = vst [vmem:[#allocation110_spill] sm:$0xff] %v4019_v45  ;;  %v4023_v40 = vpop.permute.xlu0 %654 }
 0x17d   : > { %5745 = vst [vmem:[#allocation111_spill] sm:$0xff] %v4023_v40  ;;  %v4025_v51 = vpop.permute.xlu1 %941 }
 0x17e   : > { %v4051_v39 = vpop.f32.mrf.mxu3 }
 0x17f   : > { %5753 = vst [vmem:[#allocation119_spill] sm:$0xff] %v4051_v39 }
 0x181   : > { %1108 = vrot.lane.b32.xlu2 %v3761_v24, %s3348_s12 }
 0x182   : > { %1116 = vrot.lane.b32.xlu0 %v3723_v7, %s3348_s12 }
 0x183   : > { %v4031_v56 = vpop.permute.xlu2 %965  ;;  %1106 = vrot.lane.b32.xlu1 %v3997_v59, %s3348_s12 }
 0x184   : > { %5746 = vst [vmem:[#allocation112_spill] sm:$0xff] %v4031_v56  ;;  %v4035_v49 = vpop.permute.xlu0 %799 }
 0x185   : > { %5747 = vst [vmem:[#allocation113_spill] sm:$0xff] %v4035_v49  ;;  %v4037_v31 = vpop.permute.xlu1 %656 }
 0x186   : > { %5748 = vst [vmem:[#allocation114_spill] sm:$0xff] %v4037_v31 }
 0x189   : > { %1114 = vrot.lane.b32.xlu2 %v4039_v41, %s3348_s12 }
 0x18b   : > { %v4043_v40 = vpop.permute.xlu2 %977  ;;  %1112 = vrot.lane.b32.xlu1 %v3706_v61, %s3348_s12 }
 0x18c   : > { %5750 = vst [vmem:[#allocation116_spill] sm:$0xff] %v4043_v40  ;;  %v4047_v44 = vpop.permute.xlu0 %957 }
 0x18d   : > { %5751 = vst [vmem:[#allocation117_spill] sm:$0xff] %v4047_v44  ;;  %v4049_v12 = vpop.permute.xlu1 %801 }
 0x18e   : > { %5752 = vst [vmem:[#allocation118_spill] sm:$0xff] %v4049_v12 }
 0x193   : > { %v4053_v53 = vpop.permute.xlu2 %989  ;;  %1118 = vrot.lane.b32.xlu1 %v4051_v39, %s3348_s12 }
 0x194   : > { %5754 = vst [vmem:[#allocation120_spill] sm:$0xff] %v4053_v53  ;;  %v4057_v31 = vpop.permute.xlu0 %969 }
 0x195   : > { %5755 = vst [vmem:[#allocation121_spill] sm:$0xff] %v4057_v31  ;;  %v4059_v49 = vpop.permute.xlu1 %949 }
 0x196   : > { %5756 = vst [vmem:[#allocation122_spill] sm:$0xff] %v4059_v49 }
 0x19b   : > { %v1061_v21 = vpop.permute.xlu2 %1060 }
 0x19c   : > { %v4061_v26 = vpop.permute.xlu0 %981 }
 0x19d   : > { %5757 = vst [vmem:[#allocation123_spill] sm:$0xff] %v4061_v26  ;;  %v4063_v35 = vpop.permute.xlu1 %961 }
 0x19e   : > { %5758 = vst [vmem:[#allocation124_spill] sm:$0xff] %v4063_v35 }
 0x1a3   : > { %v1067_v12 = vpop.permute.xlu2 %1066 }
 0x1a4   : > { %v1057_v7 = vpop.permute.xlu0 %1056 }
 0x1a5   : > { %v4065_v41 = vpop.permute.xlu1 %973 }
 0x1a6   : > { %5759 = vst [vmem:[#allocation125_spill] sm:$0xff] %v4065_v41 }
 0x1ab   : > { %v1073_v39 = vpop.permute.xlu2 %1072 }
 0x1ac   : > { %v1063_v61 = vpop.permute.xlu0 %1062 }
 0x1ad   : > { %v4067_v50 = vpop.permute.xlu1 %985  ;;  %v4070_v53 = vsel %vm1120_vm2, %v1061_v21, %v1063_v61 }
 0x1ae   : > { %5760 = vst [vmem:[#allocation126_spill] sm:$0xff] %v4067_v50  ;;  %1155 = vrot.lane.b32.xlu0 %v4070_v53, %s3345_s30 }
 0x1b3   : > { %v1079_v40 = vpop.permute.xlu2 %1078 }
 0x1b4   : > { %v1069_v24 = vpop.permute.xlu0 %1068 }
 0x1b5   : > { %v1059_v59 = vpop.permute.xlu1 %1058 }
 0x1b6   : > { %v4075_v26 = vsel %vm1120_vm2, %v1057_v7, %v1059_v59 }
 0x1b7   : > { %1153 = vrot.lane.b32.xlu2 %v4075_v26, %s3345_s30 }
 0x1bb   : > { %v1085_v59 = vpop.permute.xlu2 %1084 }
 0x1bc   : > { %v1075_v14 = vpop.permute.xlu0 %1074 }
 0x1bd   : > { %v1065_v32 = vpop.permute.xlu1 %1064  ;;  %v4080_v50 = vsel %vm1120_vm2, %v1073_v39, %v1075_v14 }
 0x1be   : > { %1161 = vrot.lane.b32.xlu0 %v4080_v50, %s3345_s30  ;;  %v4085_v61 = vsel %vm1120_vm2, %v1065_v32, %v1067_v12 }
 0x1bf   : > { %1157 = vrot.lane.b32.xlu1 %v4085_v61, %s3345_s30 }
 0x1c3   : > { %v1091_v9 = vpop.permute.xlu2 %1090 }
 0x1c4   : > { %v1081_v7 = vpop.permute.xlu0 %1080 }
 0x1c5   : > { %v1071_v21 = vpop.permute.xlu1 %1070 }
 0x1c6   : > { %v4090_v41 = vsel %vm1120_vm2, %v1069_v24, %v1071_v21  ;;  %v3349_v21 = vmov 3  }
 0x1c7   : > { %1159 = vrot.lane.b32.xlu2 %v4090_v41, %s3345_s30  ;;  %3167 = vset.pattern.permute.xlu0 %v3349_v21 }
 0x1c8   : > { %3168 = vset.pattern.permute.xlu1 %v3349_v21  ;;  %3169 = vset.pattern.permute.xlu2 %v3349_v21 }
 0x1cc   : > { %v1087_v14 = vpop.permute.xlu0 %1086 }
 0x1cd   : > { %v1077_v39 = vpop.permute.xlu1 %1076  ;;  %v4095_v8 = vsel %vm1120_vm2, %v1085_v59, %v1087_v14  ;;  %v1097_v59 = vpop.permute.xlu2 %1096 }
 0x1ce   : > { %1167 = vrot.lane.b32.xlu0 %v4095_v8, %s3345_s30  ;;  %v4100_v12 = vsel %vm1120_vm2, %v1077_v39, %v1079_v40 }
 0x1cf   : > { %1163 = vrot.lane.b32.xlu1 %v4100_v12, %s3345_s30 }
 0x1d4   : > { %v1093_v24 = vpop.permute.xlu0 %1092 }
 0x1d5   : > { %v1083_v32 = vpop.permute.xlu1 %1082 }
 0x1d6   : > { %v4105_v31 = vsel %vm1120_vm2, %v1081_v7, %v1083_v32  ;;  %v1103_v7 = vpop.permute.xlu2 %1102 }
 0x1d7   : > { %1165 = vrot.lane.b32.xlu2 %v4105_v31, %s3345_s30 }
 0x1dc   : > { %v1099_v14 = vpop.permute.xlu0 %1098 }
 0x1dd   : > { %v1089_v60 = vpop.permute.xlu1 %1088  ;;  %v4110_v40 = vsel %vm1120_vm2, %v1097_v59, %v1099_v14 }
 0x1de   : > { %1173 = vrot.lane.b32.xlu0 %v4110_v40, %s3345_s30  ;;  %v4115_v39 = vsel %vm1120_vm2, %v1089_v60, %v1091_v9  ;;  %v1109_v59 = vpop.permute.xlu2 %1108 }
 0x1df   : > { %1169 = vrot.lane.b32.xlu1 %v4115_v39, %s3345_s30 }
 0x1e4   : > { %v1105_v32 = vpop.permute.xlu0 %1104 }
 0x1e5   : > { %v1095_v21 = vpop.permute.xlu1 %1094 }
 0x1e6   : > { %v4120_v37 = vsel %vm1120_vm2, %v1093_v24, %v1095_v21  ;;  %v1115_v21 = vpop.permute.xlu2 %1114 }
 0x1e7   : > { %1171 = vrot.lane.b32.xlu2 %v4120_v37, %s3345_s30 }
 0x1ec   : > { %v1111_v14 = vpop.permute.xlu0 %1110 }
 0x1ed   : > { %v4125_v56 = vsel %vm1120_vm2, %v1109_v59, %v1111_v14  ;;  %v1101_v20 = vpop.permute.xlu1 %1100 }
 0x1ee   : > { %1179 = vrot.lane.b32.xlu0 %v4125_v56, %s3345_s30  ;;  %v4130_v9 = vsel %vm1120_vm2, %v1101_v20, %v1103_v7 }
 0x1ef   : > { %1175 = vrot.lane.b32.xlu1 %v4130_v9, %s3345_s30 }
 0x1f4   : > { %v1117_v20 = vpop.permute.xlu0 %1116 }
 0x1f5   : > { %v1107_v60 = vpop.permute.xlu1 %1106 }
 0x1f6   : > { %1202 = vperm.xlu0 %3167, %v3486_v3   ;;  %v4136_v24 = vsel %vm1120_vm2, %v1105_v32, %v1107_v60 }
 0x1f7   : > { %1177 = vrot.lane.b32.xlu2 %v4136_v24, %s3345_s30 }
 0x1fd   : > { %v1113_v59 = vpop.permute.xlu1 %1112 }
 0x1fe   : > { %1222 = vperm.xlu0 %3167, %v3501_v5   ;;  %v4142_v14 = vsel %vm1120_vm2, %v1113_v59, %v1115_v21 }
 0x1ff   : > { %1181 = vrot.lane.b32.xlu1 %v4142_v14, %s3345_s30 }
 0x205   : > { %v1119_v7 = vpop.permute.xlu1 %1118 }
 0x206   : > { %1234 = vperm.xlu0 %3167, %v3534_v16   ;;  %v4148_v3 = vsel %vm1120_vm2, %v1117_v20, %v1119_v7 }
 0x207   : > { %1206 = vperm.xlu1 %3168, %v3511_v6   ;;  %1183 = vrot.lane.b32.xlu2 %v4148_v3, %s3345_s30 }
 0x20e   : > { %1246 = vperm.xlu0 %3167, %v3564_v25  }
 0x20f   : > { %1214 = vperm.xlu1 %3168, %v3496_v4   ;;  %1210 = vperm.xlu2 %3169, %v3474_v0  }
 0x211   : > { %v1154_v4 = vpop.permute.xlu2 %1153 }
 0x212   : > { %v1185_v36 = vmul.f32 %v4174_v55, %v1154_v4 }
 0x216   : > { %1258 = vperm.xlu0 %3167, %v3593_v29  }
 0x217   : > { %1226 = vperm.xlu1 %3168, %v3539_v18   ;;  %1218 = vperm.xlu2 %3169, %v3479_v1  }
 0x21f   : > { %1238 = vperm.xlu1 %3168, %v3575_v27   ;;  %1230 = vperm.xlu2 %3169, %v3529_v15  }
 0x220   : > { %v1156_v0 = vpop.permute.xlu0 %1155 }
 0x221   : > { %v1160_v5 = vpop.permute.xlu2 %1159  ;;  %v1186_v4 = vmul.f32 %v4174_v55, %v1156_v0 }
 0x227   : > { %1250 = vperm.xlu1 %3168, %v3599_v30   ;;  %1242 = vperm.xlu2 %3169, %v3549_v22  }
 0x22f   : > { %1262 = vperm.xlu1 %3168, %v3615_v33   ;;  %1254 = vperm.xlu2 %3169, %v3588_v28  }
 0x230   : > { %v1162_v6 = vpop.permute.xlu0 %1161 }
 0x231   : > { %v1166_v32 = vpop.permute.xlu2 %1165  ;;  %v1158_v60 = vpop.permute.xlu1 %1157 }
 0x232   : > { %v1187_v44 = vmul.f32 %v4174_v55, %v1158_v60 }
 0x240   : > { %v1168_v18 = vpop.permute.xlu0 %1167 }
 0x241   : > { %v1172_v1 = vpop.permute.xlu2 %1171  ;;  %v1164_v59 = vpop.permute.xlu1 %1163 }
 0x242   : > { %v1190_v49 = vmul.f32 %v4174_v55, %v1164_v59 }
 0x250   : > { %v1174_v21 = vpop.permute.xlu0 %1173 }
 0x251   : > { %v4165_v20 = vpop.permute.xlu2 %1177  ;;  %v1170_v63 = vpop.permute.xlu1 %1169 }
 0x252   : > { %v1193_v60 = vmul.f32 %v4174_v55, %v1170_v63 }
 0x260   : > { %v4167_v7 = vpop.permute.xlu0 %1179 }
 0x261   : > { %v4169_v35 = vpop.permute.xlu2 %1183  ;;  %v1176_v17 = vpop.permute.xlu1 %1175 }
 0x268   : > { %v1203_v47 = vpop.permute.xlu0 %1202 }
 0x269   : > { %v1265_v45 = vmul.f32 %v1203_v47, %v1185_v36  ;;  %v1211_v42 = vpop.permute.xlu2 %1210 }
 0x26a   : > { %v1267_v10 = vmul.f32 %v1211_v42, %v1187_v44 }
 0x26b   : > { %1297 = vrot.lane.b32.xlu2 %v1265_v45, %s3350_s20  ;;  %v1189_v45 = vmul.f32 %v4174_v55, %v1162_v6 }
 0x26c   : > { %1301 = vrot.lane.b32.xlu1 %v1267_v10, %s3350_s20  ;;  %v1188_v10 = vmul.f32 %v4174_v55, %v1160_v5  ;;  %v1192_v5 = vmul.f32 %v4174_v55, %v1168_v18 }
 0x270   : > { %v1223_v38 = vpop.permute.xlu0 %1222 }
 0x271   : > { %v1182_v54 = vpop.permute.xlu1 %1181  ;;  %v1270_v62 = vmul.f32 %v1223_v38, %v1190_v49  ;;  %v1219_v36 = vpop.permute.xlu2 %1218  ;;  %v1196_v49 = vmul.f32 %v4174_v55, %v1176_v17 }
 0x272   : > { %v1269_v0 = vmul.f32 %v1219_v36, %v1189_v45  ;;  %v1199_v6 = vmul.f32 %v4174_v55, %v1182_v54 }
 0x274   : > { %1307 = vrot.lane.b32.xlu1 %v1270_v62, %s3350_s20 }
 0x278   : > { %v1235_v34 = vpop.permute.xlu0 %1234 }
 0x279   : > { %v1207_v47 = vpop.permute.xlu1 %1206  ;;  %v1273_v42 = vmul.f32 %v1235_v34, %v1193_v60  ;;  %v1231_v48 = vpop.permute.xlu2 %1230  ;;  %v1191_v34 = vmul.f32 %v4174_v55, %v1166_v32  ;;  %v1195_v32 = vmul.f32 %v4174_v55, %v1174_v21  ;;  %v1198_v21 = vmul.f32 %v4174_v55, %v4167_v7 }
 0x27a   : > { %v1266_v44 = vmul.f32 %v1207_v47, %v1186_v4  ;;  %v1272_v60 = vmul.f32 %v1231_v48, %v1192_v5  ;;  %v3351_v48 = vmov 5  }
 0x27b   : > { %3170 = vset.pattern.permute.xlu1 %v3351_v48  ;;  %3172 = vset.pattern.permute.xlu0 %v3351_v48 }
 0x27c   : > { %1313 = vrot.lane.b32.xlu1 %v1273_v42, %s3350_s20  ;;  %1299 = vrot.lane.b32.xlu0 %v1266_v44, %s3350_s20  ;;  %v1194_v44 = vmul.f32 %v4174_v55, %v1172_v1  ;;  %v1197_v1 = vmul.f32 %v4174_v55, %v4165_v20 }
 0x27d   : > { %3171 = vset.pattern.permute.xlu2 %v3351_v48 }
 0x280   : > { %v1247_v62 = vpop.permute.xlu0 %1246 }
 0x281   : > { %v1215_v38 = vpop.permute.xlu1 %1214  ;;  %v1276_v59 = vmul.f32 %v1247_v62, %v1196_v49  ;;  %v1243_v42 = vpop.permute.xlu2 %1242 }
 0x282   : > { %v1268_v63 = vmul.f32 %v1215_v38, %v1188_v10  ;;  %v1275_v18 = vmul.f32 %v1243_v42, %v1195_v32 }
 0x284   : > { %1319 = vrot.lane.b32.xlu1 %v1276_v59, %s3350_s20  ;;  %1305 = vrot.lane.b32.xlu0 %v1269_v0, %s3350_s20 }
 0x285   : > { %1303 = vrot.lane.b32.xlu2 %v1268_v63, %s3350_s20 }
 0x288   : > { %v1259_v4 = vpop.permute.xlu0 %1258 }
 0x289   : > { %v1227_v17 = vpop.permute.xlu1 %1226  ;;  %v1279_v47 = vmul.f32 %v1259_v4, %v1199_v6  ;;  %v1255_v54 = vpop.permute.xlu2 %1254 }
 0x28a   : > { %v1271_v36 = vmul.f32 %v1227_v17, %v1191_v34  ;;  %v1278_v62 = vmul.f32 %v1255_v54, %v1198_v21 }
 0x28c   : > { %1325 = vrot.lane.b32.xlu1 %v1279_v47, %s3350_s20  ;;  %1311 = vrot.lane.b32.xlu0 %v1272_v60, %s3350_s20 }
 0x28d   : > { %1309 = vrot.lane.b32.xlu2 %v1271_v36, %s3350_s20  ;;  %v4331_v36 = vld [vmem:[%s5522_s1 + $0x1] ss:$0 sm:$0xff] }
 0x291   : > { %v1239_v10 = vpop.permute.xlu1 %1238 }
 0x292   : > { %v1274_v45 = vmul.f32 %v1239_v10, %v1194_v44 }
 0x294   : > { %1379 = vrot.lane.b32.xlu1 %v4070_v53, %s3346_s11  ;;  %1317 = vrot.lane.b32.xlu0 %v1275_v18, %s3350_s20  ;;  %v1200_v53 = vmul.f32 %v4174_v55, %v4169_v35  ;;  %v4244_v55 = vld [vmem:[%s5524_s3 + $0x18] sm:$0xff] }
 0x295   : > { %1315 = vrot.lane.b32.xlu2 %v1274_v45, %s3350_s20 }
 0x299   : > { %v1251_v49 = vpop.permute.xlu1 %1250 }
 0x29a   : > { %v1277_v38 = vmul.f32 %v1251_v49, %v1197_v1 }
 0x29c   : > { %1385 = vrot.lane.b32.xlu1 %v4080_v50, %s3346_s11  ;;  %1323 = vrot.lane.b32.xlu0 %v1278_v62, %s3350_s20  ;;  %v4234_v50 = vld [vmem:[%s5524_s3] sm:$0xff] }
 0x29d   : > { %1321 = vrot.lane.b32.xlu2 %v1277_v38, %s3350_s20 }
 0x2a1   : > { %v1263_v0 = vpop.permute.xlu1 %1262 }
 0x2a2   : > { %v1280_v59 = vmul.f32 %v1263_v0, %v1200_v53 }
 0x2a4   : > { %1391 = vrot.lane.b32.xlu1 %v4095_v8, %s3346_s11  ;;  %1377 = vrot.lane.b32.xlu0 %v4075_v26, %s3346_s11  ;;  %v4265_v8 = vld [vmem:[%s5524_s3 + $0x10] sm:$0xff]  ;;  %v4271_v26 = vld [vmem:[%s5524_s3 + $0x8] sm:$0xff] }
 0x2a5   : > { %1327 = vrot.lane.b32.xlu2 %v1280_v59, %s3350_s20 }
 0x2ac   : > { %1397 = vrot.lane.b32.xlu1 %v4110_v40, %s3346_s11  ;;  %1383 = vrot.lane.b32.xlu0 %v4090_v41, %s3346_s11 }
 0x2ad   : > { %1381 = vrot.lane.b32.xlu2 %v4085_v61, %s3346_s11 }
 0x2b4   : > { %1403 = vrot.lane.b32.xlu1 %v4125_v56, %s3346_s11  ;;  %1389 = vrot.lane.b32.xlu0 %v4105_v31, %s3346_s11  ;;  %v4254_v56 = vld [vmem:[%s5524_s3 + $0x28] sm:$0xff] }
 0x2b5   : > { %1387 = vrot.lane.b32.xlu2 %v4100_v12, %s3346_s11 }
 0x2bc   : > { %1426 = vperm.xlu1 %3170, %v4234_v50   ;;  %1395 = vrot.lane.b32.xlu0 %v4120_v37, %s3346_s11 }
 0x2bd   : > { %1393 = vrot.lane.b32.xlu2 %v4115_v39, %s3346_s11 }
 0x2c4   : > { %1438 = vperm.xlu1 %3170, %v4244_v55   ;;  %1401 = vrot.lane.b32.xlu0 %v4136_v24, %s3346_s11 }
 0x2c5   : > { %1399 = vrot.lane.b32.xlu2 %v4130_v9, %s3346_s11  ;;  %v4274_v31 = vpop.permute.xlu2 %1297 }
 0x2cc   : > { %1446 = vperm.xlu1 %3170, %v4254_v56   ;;  %1407 = vrot.lane.b32.xlu0 %v4148_v3, %s3346_s11 }
 0x2cd   : > { %1405 = vrot.lane.b32.xlu2 %v4142_v14, %s3346_s11 }
 0x2d4   : > { %1458 = vperm.xlu1 %3170, %v3534_v16   ;;  %1434 = vperm.xlu0 %3172, %v4265_v8   ;;  %v4281_v16 = vld [vmem:[%s5524_s3 + $0x20] sm:$0xff] }
 0x2d5   : > { %1430 = vperm.xlu2 %3171, %v4271_v26  }
 0x2dc   : > { %1470 = vperm.xlu1 %3170, %v3564_v25   ;;  %1454 = vperm.xlu0 %3172, %v3529_v15   ;;  %v4293_v25 = vld [vmem:[%s5524_s3 + $0x30] sm:$0xff] }
 0x2dd   : > { %1442 = vperm.xlu2 %3171, %v4281_v16  }
 0x2de   : > { %v4284_v35 = vpop.permute.xlu1 %1301 }
 0x2df   : > { %v4286_v37 = vpop.permute.xlu2 %1303 }
 0x2e4   : > { %1482 = vperm.xlu1 %3170, %v3593_v29   ;;  %1466 = vperm.xlu0 %3172, %v3549_v22  }
 0x2e5   : > { %1450 = vperm.xlu2 %3171, %v4293_v25  }
 0x2e6   : > { %v4296_v15 = vpop.permute.xlu1 %1307 }
 0x2e7   : > { %v4298_v41 = vpop.permute.xlu2 %1309 }
 0x2ec   : > { %1478 = vperm.xlu0 %3172, %v3588_v28  }
 0x2ed   : > { %1462 = vperm.xlu2 %3171, %v3575_v27  }
 0x2ee   : > { %v4302_v61 = vpop.permute.xlu0 %1299  ;;  %v4304_v29 = vpop.permute.xlu1 %1313 }
 0x2ef   : > { %v4306_v22 = vpop.permute.xlu2 %1315 }
 0x2f5   : > { %1474 = vperm.xlu2 %3171, %v3599_v30  }
 0x2f6   : > { %v4309_v12 = vpop.permute.xlu0 %1305  ;;  %v4311_v40 = vpop.permute.xlu1 %1319 }
 0x2f7   : > { %v4313_v39 = vpop.permute.xlu2 %1321 }
 0x2fd   : > { %1486 = vperm.xlu2 %3171, %v3615_v33  }
 0x2fe   : > { %v4316_v9 = vpop.permute.xlu0 %1311  ;;  %v4318_v28 = vpop.permute.xlu1 %1325 }
 0x2ff   : > { %v4320_v27 = vpop.permute.xlu2 %1327 }
 0x306   : > { %v4322_v24 = vpop.permute.xlu0 %1317  ;;  %v1380_v14 = vpop.permute.xlu1 %1379 }
 0x307   : > { %v1382_v3 = vpop.permute.xlu2 %1381  ;;  %v1410_v44 = vmul.f32 %v4331_v36, %v1380_v14 }
 0x30e   : > { %v4324_v20 = vpop.permute.xlu0 %1323  ;;  %v1386_v30 = vpop.permute.xlu1 %1385 }
 0x30f   : > { %v1388_v7 = vpop.permute.xlu2 %1387  ;;  %v1413_v1 = vmul.f32 %v4331_v36, %v1386_v30 }
 0x316   : > { %v1378_v63 = vpop.permute.xlu0 %1377  ;;  %v1392_v34 = vpop.permute.xlu1 %1391 }
 0x317   : > { %v1394_v5 = vpop.permute.xlu2 %1393  ;;  %v1409_v42 = vmul.f32 %v4331_v36, %v1378_v63 }
 0x31e   : > { %v1384_v6 = vpop.permute.xlu0 %1383  ;;  %v1398_v4 = vpop.permute.xlu1 %1397 }
 0x31f   : > { %v1400_v33 = vpop.permute.xlu2 %1399  ;;  %v1412_v54 = vmul.f32 %v4331_v36, %v1384_v6  ;;  %v1411_v6 = vmul.f32 %v4331_v36, %v1382_v3 }
 0x326   : > { %v1390_v17 = vpop.permute.xlu0 %1389  ;;  %v1404_v60 = vpop.permute.xlu1 %1403 }
 0x327   : > { %v4326_v47 = vpop.permute.xlu2 %1405  ;;  %v1415_v0 = vmul.f32 %v4331_v36, %v1390_v17  ;;  %v1414_v17 = vmul.f32 %v4331_v36, %v1388_v7  ;;  %v1419_v7 = vmul.f32 %v4331_v36, %v1398_v4 }
 0x32e   : > { %v1396_v32 = vpop.permute.xlu0 %1395  ;;  %v1427_v10 = vpop.permute.xlu1 %1426 }
 0x32f   : > { %v1431_v18 = vpop.permute.xlu2 %1430  ;;  %v1489_v45 = vmul.f32 %v1427_v10, %v1409_v42  ;;  %v1418_v30 = vmul.f32 %v4331_v36, %v1396_v32 }
 0x330   : > { %v1490_v48 = vmul.f32 %v1431_v18, %v1410_v44 }
 0x331   : > { %1521 = vrot.lane.b32.xlu0 %v1489_v45, %s3350_s20 }
 0x332   : > { %1523 = vrot.lane.b32.xlu1 %v1490_v48, %s3350_s20  ;;  %v1416_v48 = vmul.f32 %v4331_v36, %v1392_v34 }
 0x336   : > { %v1402_v21 = vpop.permute.xlu0 %1401  ;;  %v1439_v49 = vpop.permute.xlu1 %1438 }
 0x337   : > { %v1443_v62 = vpop.permute.xlu2 %1442  ;;  %v1492_v38 = vmul.f32 %v1439_v49, %v1412_v54  ;;  %v1421_v54 = vmul.f32 %v4331_v36, %v1402_v21 }
 0x338   : > { %v1493_v53 = vmul.f32 %v1443_v62, %v1413_v1 }
 0x339   : > { %1527 = vrot.lane.b32.xlu0 %v1492_v38, %s3350_s20 }
 0x33a   : > { %1529 = vrot.lane.b32.xlu1 %v1493_v53, %s3350_s20  ;;  %v1417_v53 = vmul.f32 %v4331_v36, %v1394_v5  ;;  %v1422_v5 = vmul.f32 %v4331_v36, %v1404_v60  ;;  %v994_v60 = vmul.f32 %v3989_v11, %v3721_v2 }
 0x33e   : > { %v1408_v59 = vpop.permute.xlu0 %1407  ;;  %v1447_v42 = vpop.permute.xlu1 %1446 }
 0x33f   : > { %v1451_v14 = vpop.permute.xlu2 %1450  ;;  %v1494_v49 = vmul.f32 %v1447_v42, %v1414_v17  ;;  %v1424_v34 = vmul.f32 %v4331_v36, %v1408_v59  ;;  %v1420_v42 = vmul.f32 %v4331_v36, %v1400_v33  ;;  %v992_v17 = vmul.f32 %v3981_v52, %v3696_v57 }
 0x340   : > { %v1495_v63 = vmul.f32 %v1451_v14, %v1415_v0  ;;  %v993_v33 = vmul.f32 %v3981_v52, %v3855_v58  ;;  %v995_v52 = vmul.f32 %v3989_v11, %v3867_v43  ;;  %v998_v11 = vmul.f32 %v4025_v51, %v3759_v23 }
 0x342   : > { %1533 = vrot.lane.b32.xlu0 %v1495_v63, %s3350_s20 }
 0x346   : > { %v1435_v44 = vpop.permute.xlu0 %1434  ;;  %v1459_v32 = vpop.permute.xlu1 %1458 }
 0x347   : > { %v1491_v10 = vmul.f32 %v1435_v44, %v1411_v6  ;;  %v1463_v18 = vpop.permute.xlu2 %1462  ;;  %v1497_v21 = vmul.f32 %v1459_v32, %v1417_v53  ;;  %v996_v32 = vmul.f32 %v4009_v19, %v3743_v13 }
 0x348   : > { %v1498_v45 = vmul.f32 %v1463_v18, %v1418_v30  ;;  %v1423_v18 = vmul.f32 %v4331_v36, %v4326_v47 }
 0x349   : > { %1525 = vrot.lane.b32.xlu2 %v1491_v10, %s3350_s20  ;;  %v1349_v53 = vadd.f32 %v4284_v35, %v996_v32  ;;  %v5769_v32 = vld [vmem:[#allocation110_spill] sm:$0xff] }
 0x34a   : > { %1539 = vrot.lane.b32.xlu0 %v1498_v45, %s3350_s20 }
 0x34e   : > { %v1455_v1 = vpop.permute.xlu0 %1454  ;;  %v1471_v30 = vpop.permute.xlu1 %1470 }
 0x34f   : > { %v1496_v3 = vmul.f32 %v1455_v1, %v1416_v48  ;;  %v1475_v62 = vpop.permute.xlu2 %1474  ;;  %v1500_v4 = vmul.f32 %v1471_v30, %v1420_v42  ;;  %v1345_v48 = vadd.f32 %v4274_v31, %v992_v17  ;;  %v1347_v1 = vadd.f32 %v4302_v61, %v994_v60  ;;  %v5763_v30 = vld [vmem:[#allocation107_spill] sm:$0xff]  ;;  %v5765_v17 = vld [vmem:[#allocation45_spill] sm:$0xff] }
 0x350   : > { %v1501_v38 = vmul.f32 %v1475_v62, %v1421_v54  ;;  %v1346_v54 = vadd.f32 %v4274_v31, %v993_v33  ;;  %v997_v31 = vmul.f32 %v4009_v19, %v3878_v46  ;;  %v5761_v19 = vld [vmem:[#allocation75_spill] sm:$0xff]  ;;  %v5766_v33 = vld [vmem:[#allocation122_spill] sm:$0xff] }
 0x351   : > { %1535 = vrot.lane.b32.xlu1 %v1496_v3, %s3350_s20  ;;  %1531 = vrot.lane.b32.xlu2 %v1494_v49, %s3350_s20  ;;  %v1002_v60 = vmul.f32 %v5766_v33, %v5765_v17 }
 0x352   : > { %1545 = vrot.lane.b32.xlu0 %v1501_v38, %s3350_s20 }
 0x356   : > { %v1467_v0 = vpop.permute.xlu0 %1466  ;;  %v1483_v59 = vpop.permute.xlu1 %1482 }
 0x357   : > { %v1499_v14 = vmul.f32 %v1467_v0, %v1419_v7  ;;  %v1487_v63 = vpop.permute.xlu2 %1486  ;;  %v1503_v45 = vmul.f32 %v1483_v59, %v1423_v18  ;;  %v1348_v7 = vadd.f32 %v4302_v61, %v995_v52  ;;  %v5768_v52 = vld [vmem:[#allocation49_spill] sm:$0xff] }
 0x358   : > { %v1504_v6 = vmul.f32 %v1487_v63, %v1424_v34  ;;  %v1350_v34 = vadd.f32 %v4284_v35, %v997_v31  ;;  %v999_v63 = vmul.f32 %v4025_v51, %v5761_v19  ;;  %v1351_v35 = vadd.f32 %v4286_v37, %v998_v11  ;;  %v5764_v51 = vld [vmem:[#allocation79_spill] sm:$0xff] }
 0x359   : > { %1541 = vrot.lane.b32.xlu1 %v1499_v14, %s3350_s20  ;;  %1537 = vrot.lane.b32.xlu2 %v1497_v21, %s3350_s20  ;;  %v1004_v31 = vmul.f32 %v5769_v32, %v5768_v52 }
 0x35a   : > { %1551 = vrot.lane.b32.xlu0 %v1504_v6, %s3350_s20  ;;  %v5762_v6 = vld [vmem:[#allocation41_spill] sm:$0xff] }
 0x35b   : > { %v1000_v61 = vmul.f32 %v5763_v30, %v5762_v6 }
 0x35e   : > { %v1479_v44 = vpop.permute.xlu0 %1478 }
 0x35f   : > { %v1502_v10 = vmul.f32 %v1479_v44, %v1422_v5  ;;  %v1352_v5 = vadd.f32 %v4286_v37, %v999_v63 }
 0x361   : > { %1547 = vrot.lane.b32.xlu1 %v1502_v10, %s3350_s20  ;;  %1543 = vrot.lane.b32.xlu2 %v1500_v4, %s3350_s20  ;;  %v1353_v4 = vadd.f32 %v4309_v12, %v1000_v61 }
 0x369   : > { %1549 = vrot.lane.b32.xlu2 %v1503_v45, %s3350_s20  ;;  %v1001_v45 = vmul.f32 %v5763_v30, %v5764_v51  ;;  %s2873_s20 = sshll.u32 %s2870_s10, 4  ;;  %s2874_s20 = int_to_ptr.hbm [resolvable:$true] %s2873_s20 }
 0x36a   : > { %s3260_s27 = sshra.s32 %s2874_s20, 4  ;;  %s3261_s27 = int_to_ptr.hbm [resolvable:$true] %s3260_s27 }
 0x36b   : > { %s3262_s17 = scalar_lea.hbm %s3261_s27, 32  ;;  %p3267_p4 = scmp.lt.s32.totalorder %s3261_s27, %s5528_s7 }
 0x36c   : > { %p3263_p0 = scmp.ne.s32.totalorder %s3261_s27, %s3262_s17  ;;  %p3268_p5 = scmp.lt.s32.totalorder %s3266_s21, %s3262_s17 }
 0x36e   : > { %p3264_p1 = pnand %p3263_p0, %p3451_p3  ;;  %p3269_p6 = por %p3268_p5, %p3267_p4 }
 0x370   : > { %p3265_p2 = pneg %p3264_p1 }
 0x372   : > { %p3270_p7 = pnand %p3269_p6, %p3265_p2 }
 0x3a3   : > { %v1522_v49 = vpop.permute.xlu0 %1521  ;;  %v1526_v38 = vpop.permute.xlu2 %1525 }
 0x3a4   : > { %v1569_v47 = vadd.f32 %v1522_v49, %v1345_v48  ;;  %v1570_v36 = vadd.f32 %v1522_v49, %v1346_v54  ;;  %v1524_v3 = vpop.permute.xlu1 %1523  ;;  %v1573_v0 = vadd.f32 %v1526_v38, %v1349_v53  ;;  %v1574_v14 = vadd.f32 %v1526_v38, %v1350_v34  ;;  %v5767_v48 = vld [vmem:[#allocation85_spill] sm:$0xff]  ;;  %v5770_v38 = vld [vmem:[#allocation90_spill] sm:$0xff] }
 0x3a5   : > { %v1571_v62 = vadd.f32 %v1524_v3, %v1347_v1  ;;  %v1572_v21 = vadd.f32 %v1524_v3, %v1348_v7  ;;  %v1003_v37 = vmul.f32 %v5766_v33, %v5767_v48  ;;  %v1355_v1 = vadd.f32 %v4296_v15, %v1002_v60  ;;  %v5771_v7 = vld [vmem:[#allocation53_spill] sm:$0xff] }
 0x3a6   : > { %1633 = vrot.lane.b32.xlu1 %v1569_v47, %s3348_s12  ;;  %1635 = vrot.lane.b32.xlu2 %v1570_v36, %s3348_s12  ;;  %v1354_v49 = vadd.f32 %v4309_v12, %v1001_v45  ;;  %v1005_v53 = vmul.f32 %v5769_v32, %v5770_v38  ;;  %v5772_v34 = vld [vmem:[#allocation117_spill] sm:$0xff] }
 0x3a7   : > { %1637 = vrot.lane.b32.xlu0 %v1571_v62, %s3348_s12  ;;  %v1356_v47 = vadd.f32 %v4296_v15, %v1003_v37  ;;  %v1006_v12 = vmul.f32 %v5772_v34, %v5771_v7  ;;  %v1357_v15 = vadd.f32 %v4298_v41, %v1004_v31 }
 0x3ab   : > { %v1528_v42 = vpop.permute.xlu0 %1527  ;;  %v1532_v54 = vpop.permute.xlu2 %1531 }
 0x3ac   : > { %v1530_v44 = vpop.permute.xlu1 %1529  ;;  %v1575_v10 = vadd.f32 %v1528_v42, %v1351_v35  ;;  %v1576_v59 = vadd.f32 %v1528_v42, %v1352_v5  ;;  %v1579_v36 = vadd.f32 %v1532_v54, %v1355_v1  ;;  %v1580_v62 = vadd.f32 %v1532_v54, %v1356_v47  ;;  %v5773_v42 = vld [vmem:[#allocation94_spill] sm:$0xff]  ;;  %v5774_v5 = vld [vmem:[#allocation57_spill] sm:$0xff] }
 0x3ad   : > { %v1577_v18 = vadd.f32 %v1530_v44, %v1353_v4  ;;  %v1578_v3 = vadd.f32 %v1530_v44, %v1354_v49  ;;  %v1007_v35 = vmul.f32 %v5772_v34, %v5773_v42  ;;  %v5775_v44 = vld [vmem:[#allocation124_spill] sm:$0xff]  ;;  %v5777_v1 = vld [vmem:[#allocation61_spill] sm:$0xff] }
 0x3ae   : > { %1641 = vrot.lane.b32.xlu2 %v1573_v0, %s3348_s12  ;;  %1639 = vrot.lane.b32.xlu1 %v1572_v21, %s3348_s12  ;;  %v1358_v21 = vadd.f32 %v4298_v41, %v1005_v53  ;;  %v1008_v4 = vmul.f32 %v5775_v44, %v5774_v5  ;;  %v5778_v49 = vld [vmem:[#allocation112_spill] sm:$0xff] }
 0x3af   : > { %1643 = vrot.lane.b32.xlu0 %v1574_v14, %s3348_s12  ;;  %v1359_v14 = vadd.f32 %v4316_v9, %v1006_v12  ;;  %v1360_v45 = vadd.f32 %v4316_v9, %v1007_v35  ;;  %v1010_v47 = vmul.f32 %v5778_v49, %v5777_v1  ;;  %v5780_v9 = vld [vmem:[#allocation21_spill] sm:$0xff] }
 0x3b1   : > { %v1363_v53 = vadd.f32 %v4306_v22, %v1010_v47  ;;  %v5788_v47 = vld [vmem:[#allocation105_spill] sm:$0xff] }
 0x3b4   : > { %v1534_v0 = vpop.permute.xlu0 %1533 }
 0x3b5   : > { %v1581_v63 = vadd.f32 %v1534_v0, %v1357_v15  ;;  %v1582_v30 = vadd.f32 %v1534_v0, %v1358_v21 }
 0x3b6   : > { %1647 = vrot.lane.b32.xlu2 %v1576_v59, %s3348_s12  ;;  %1645 = vrot.lane.b32.xlu1 %v1575_v10, %s3348_s12  ;;  %v5776_v10 = vld [vmem:[#allocation102_spill] sm:$0xff]  ;;  %v1538_v59 = vpop.permute.xlu2 %1537 }
 0x3b7   : > { %1649 = vrot.lane.b32.xlu0 %v1577_v18, %s3348_s12  ;;  %v1009_v41 = vmul.f32 %v5775_v44, %v5776_v10  ;;  %v1361_v18 = vadd.f32 %v4304_v29, %v1008_v4  ;;  %v5785_v44 = vld [vmem:[#allocation101_spill] sm:$0xff] }
 0x3b9   : > { %v1362_v33 = vadd.f32 %v4304_v29, %v1009_v41  ;;  %v1585_v60 = vadd.f32 %v1538_v59, %v1361_v18  ;;  %v5781_v29 = vld [vmem:[#allocation121_spill] sm:$0xff] }
 0x3ba   : > { %v1012_v32 = vmul.f32 %v5781_v29, %v5780_v9 }
 0x3bb   : > { %v1586_v54 = vadd.f32 %v1538_v59, %v1362_v33 }
 0x3bc   : > { %v1540_v31 = vpop.permute.xlu0 %1539  ;;  %v1365_v0 = vadd.f32 %v4322_v24, %v1012_v32 }
 0x3bd   : > { %v1587_v15 = vadd.f32 %v1540_v31, %v1363_v53 }
 0x3be   : > { %1653 = vrot.lane.b32.xlu2 %v1579_v36, %s3348_s12  ;;  %1651 = vrot.lane.b32.xlu1 %v1578_v3, %s3348_s12  ;;  %v5779_v36 = vld [vmem:[#allocation106_spill] sm:$0xff]  ;;  %v1544_v4 = vpop.permute.xlu2 %1543 }
 0x3bf   : > { %1655 = vrot.lane.b32.xlu0 %v1580_v62, %s3348_s12  ;;  %v1011_v3 = vmul.f32 %v5778_v49, %v5779_v36  ;;  %v3352_v62 = vmov 7  }
 0x3c0   : > { %3173 = vset.pattern.permute.xlu0 %v3352_v62  ;;  %3174 = vset.pattern.permute.xlu1 %v3352_v62 }
 0x3c1   : > { %3175 = vset.pattern.permute.xlu2 %v3352_v62  ;;  %v1364_v34 = vadd.f32 %v4306_v22, %v1011_v3  ;;  %v5789_v62 = vld [vmem:[#allocation37_spill] sm:$0xff] }
 0x3c3   : > { %v1536_v11 = vpop.permute.xlu1 %1535  ;;  %v1588_v21 = vadd.f32 %v1540_v31, %v1364_v34 }
 0x3c4   : > { %v1583_v61 = vadd.f32 %v1536_v11, %v1359_v14  ;;  %v1584_v37 = vadd.f32 %v1536_v11, %v1360_v45  ;;  %v5782_v11 = vld [vmem:[#allocation95_spill] sm:$0xff]  ;;  %v1546_v32 = vpop.permute.xlu0 %1545 }
 0x3c6   : > { %1659 = vrot.lane.b32.xlu2 %v1582_v30, %s3348_s12  ;;  %1657 = vrot.lane.b32.xlu1 %v1581_v63, %s3348_s12  ;;  %v1013_v63 = vmul.f32 %v5781_v29, %v5782_v11  ;;  %v5783_v30 = vld [vmem:[#allocation27_spill] sm:$0xff] }
 0x3c7   : > { %1661 = vrot.lane.b32.xlu0 %v1583_v61, %s3348_s12  ;;  %v5784_v61 = vld [vmem:[#allocation125_spill] sm:$0xff]  ;;  %v5790_v29 = vld [vmem:[#allocation123_spill] sm:$0xff] }
 0x3c8   : > { %v1014_v35 = vmul.f32 %v5784_v61, %v5783_v30  ;;  %v1015_v22 = vmul.f32 %v5784_v61, %v5785_v44  ;;  %v1366_v59 = vadd.f32 %v4322_v24, %v1013_v63  ;;  %v1018_v24 = vmul.f32 %v5790_v29, %v5789_v62  ;;  %v5792_v63 = vld [vmem:[#allocation22_spill] sm:$0xff] }
 0x3c9   : > { %v5793_v61 = vld [vmem:[#allocation126_spill] sm:$0xff] }
 0x3ca   : > { %v1367_v41 = vadd.f32 %v4311_v40, %v1014_v35  ;;  %v1368_v18 = vadd.f32 %v4311_v40, %v1015_v22  ;;  %v1371_v34 = vadd.f32 %v4324_v20, %v1018_v24  ;;  %v1020_v35 = vmul.f32 %v5793_v61, %v5792_v63  ;;  %v5794_v22 = vld [vmem:[#allocation115_spill] sm:$0xff] }
 0x3cb   : > { %v1542_v12 = vpop.permute.xlu1 %1541 }
 0x3cc   : > { %v1589_v14 = vadd.f32 %v1542_v12, %v1365_v0  ;;  %v1591_v45 = vadd.f32 %v1544_v4, %v1367_v41  ;;  %v1590_v33 = vadd.f32 %v1542_v12, %v1366_v59  ;;  %v1373_v41 = vadd.f32 %v4318_v28, %v1020_v35  ;;  %v4540_v35 = vld [vmem:[%s5524_s3 + $0x70] sm:$0xff] }
 0x3ce   : > { %1665 = vrot.lane.b32.xlu2 %v1585_v60, %s3348_s12  ;;  %1663 = vrot.lane.b32.xlu1 %v1584_v37, %s3348_s12  ;;  %v1592_v60 = vadd.f32 %v1544_v4, %v1368_v18  ;;  %v5786_v37 = vld [vmem:[#allocation32_spill] sm:$0xff]  ;;  %v1550_v4 = vpop.permute.xlu2 %1549 }
 0x3cf   : > { %1667 = vrot.lane.b32.xlu0 %v1586_v54, %s3348_s12  ;;  %v5787_v54 = vld [vmem:[#allocation116_spill] sm:$0xff] }
 0x3d0   : > { %v1016_v49 = vmul.f32 %v5787_v54, %v5786_v37  ;;  %v1017_v3 = vmul.f32 %v5787_v54, %v5788_v47  ;;  %v5795_v54 = vld [vmem:[#allocation26_spill] sm:$0xff] }
 0x3d2   : > { %v1369_v40 = vadd.f32 %v4313_v39, %v1016_v49  ;;  %v1370_v31 = vadd.f32 %v4313_v39, %v1017_v3  ;;  %v1021_v39 = vmul.f32 %v5793_v61, %v5794_v22  ;;  %v5796_v49 = vld [vmem:[#allocation120_spill] sm:$0xff]  ;;  %v4534_v61 = vld [vmem:[%s5524_s3 + $0x50] sm:$0xff] }
 0x3d3   : > { %v1548_v53 = vpop.permute.xlu1 %1547  ;;  %v1022_v3 = vmul.f32 %v5796_v49, %v5795_v54 }
 0x3d4   : > { %v1593_v12 = vadd.f32 %v1546_v32, %v1369_v40  ;;  %v1594_v0 = vadd.f32 %v1546_v32, %v1370_v31  ;;  %v1374_v18 = vadd.f32 %v4318_v28, %v1021_v39  ;;  %v1552_v32 = vpop.permute.xlu0 %1551 }
 0x3d6   : > { %1669 = vrot.lane.b32.xlu1 %v1587_v15, %s3348_s12  ;;  %1671 = vrot.lane.b32.xlu2 %v1588_v21, %s3348_s12  ;;  %v1595_v15 = vadd.f32 %v1548_v53, %v1371_v34  ;;  %v5791_v21 = vld [vmem:[#allocation109_spill] sm:$0xff] }
 0x3d7   : > { %1673 = vrot.lane.b32.xlu0 %v1589_v14, %s3348_s12  ;;  %v1019_v14 = vmul.f32 %v5790_v29, %v5791_v21  ;;  %v5797_v29 = vld [vmem:[#allocation119_spill] sm:$0xff] }
 0x3d8   : > { %v1023_v24 = vmul.f32 %v5796_v49, %v5797_v29  ;;  %v4572_v49 = vld [vmem:[%s5524_s3 + $0x78] sm:$0xff] }
 0x3d9   : > { %v1372_v59 = vadd.f32 %v4324_v20, %v1019_v14  ;;  %v1375_v20 = vadd.f32 %v4320_v27, %v1022_v3  ;;  %v4528_v14 = vld [vmem:[%s5524_s3 + $0x48] sm:$0xff] }
 0x3da   : > { %v1376_v28 = vadd.f32 %v4320_v27, %v1023_v24  ;;  %v4505_v27 = vld [vmem:[%s5524_s3 + $0x40] sm:$0xff] }
 0x3db   : > { %v1599_v40 = vadd.f32 %v1552_v32, %v1375_v20 }
 0x3dc   : > { %v1600_v31 = vadd.f32 %v1552_v32, %v1376_v28 }
 0x3de   : > { %1675 = vrot.lane.b32.xlu1 %v1590_v33, %s3348_s12  ;;  %1677 = vrot.lane.b32.xlu2 %v1591_v45, %s3348_s12  ;;  %v1597_v45 = vadd.f32 %v1550_v4, %v1373_v41  ;;  %v1596_v33 = vadd.f32 %v1548_v53, %v1372_v59  ;;  %v4552_v59 = vld [vmem:[%s5524_s3 + $0x60] sm:$0xff] }
 0x3df   : > { %1679 = vrot.lane.b32.xlu0 %v1592_v60, %s3348_s12  ;;  %v1598_v60 = vadd.f32 %v1550_v4, %v1374_v18  ;;  %v4558_v18 = vld [vmem:[%s5524_s3 + $0x68] sm:$0xff] }
 0x3e6   : > { %1681 = vrot.lane.b32.xlu1 %v1593_v12, %s3348_s12  ;;  %1683 = vrot.lane.b32.xlu2 %v1594_v0, %s3348_s12  ;;  %v4514_v12 = vld [vmem:[%s5524_s3 + $0x38] sm:$0xff] }
 0x3e7   : > { %1685 = vrot.lane.b32.xlu0 %v1595_v15, %s3348_s12  ;;  %v4520_v0 = vld [vmem:[%s5524_s3 + $0x58] sm:$0xff] }
 0x3ee   : > { %1687 = vrot.lane.b32.xlu1 %v1596_v33, %s3348_s12  ;;  %1689 = vrot.lane.b32.xlu2 %v1597_v45, %s3348_s12 }
 0x3ef   : > { %1691 = vrot.lane.b32.xlu0 %v1598_v60, %s3348_s12 }
 0x3f6   : > { %1693 = vrot.lane.b32.xlu1 %v1599_v40, %s3348_s12  ;;  %1695 = vrot.lane.b32.xlu2 %v1600_v31, %s3348_s12  ;;  %s293_s12 = sand.u32 1, %s3316_s25  }
 0x3f7   : > { %1746 = vperm.xlu0 %3173, %v4234_v50   ;;  %s2963_s18 = sshll.u32 %s293_s12, 5  ;;  %s2858_s28 = scalar_lea.sflag [#allocation3], %s293_s12 }
 0x3fe   : > { %1750 = vperm.xlu1 %3174, %v4271_v26   ;;  %1754 = vperm.xlu2 %3175, %v4265_v8  }
 0x3ff   : > { %1766 = vperm.xlu0 %3173, %v4254_v56  }
 0x400   : > { %v4498_v53 = vpop.permute.xlu2 %1635 }
 0x401   : > { %5798 = vst [vmem:[#allocation107_spill] sm:$0xff] %v4498_v53 }
 0x406   : > { %1758 = vperm.xlu1 %3174, %v4244_v55   ;;  %1762 = vperm.xlu2 %3175, %v4281_v16  }
 0x407   : > { %1778 = vperm.xlu0 %3173, %v4505_v27  }
 0x408   : > { %v4508_v34 = vpop.permute.xlu2 %1641 }
 0x409   : > { %5799 = vst [vmem:[#allocation122_spill] sm:$0xff] %v4508_v34 }
 0x40e   : > { %1770 = vperm.xlu1 %3174, %v4293_v25   ;;  %1774 = vperm.xlu2 %3175, %v4514_v12  }
 0x40f   : > { %1790 = vperm.xlu0 %3173, %v4520_v0  }
 0x410   : > { %v4523_v15 = vpop.permute.xlu2 %1647 }
 0x411   : > { %5800 = vst [vmem:[#allocation110_spill] sm:$0xff] %v4523_v15 }
 0x416   : > { %1782 = vperm.xlu1 %3174, %v4528_v14   ;;  %1786 = vperm.xlu2 %3175, %v4534_v61  }
 0x417   : > { %1802 = vperm.xlu0 %3173, %v4540_v35  }
 0x418   : > { %v4543_v39 = vpop.permute.xlu2 %1653  ;;  %v4545_v4 = vpop.permute.xlu1 %1633 }
 0x419   : > { %5801 = vst [vmem:[#allocation117_spill] sm:$0xff] %v4543_v39  ;;  %v4547_v41 = vpop.permute.xlu0 %1637 }
 0x41a   : > { %5802 = vst [vmem:[#allocation124_spill] sm:$0xff] %v4545_v4 }
 0x41b   : > { %5803 = vst [vmem:[#allocation112_spill] sm:$0xff] %v4547_v41 }
 0x41e   : > { %1794 = vperm.xlu1 %3174, %v4552_v59   ;;  %1798 = vperm.xlu2 %3175, %v4558_v18  }
 0x41f   : > { %1843 = vrot.lane.b32.xlu0 %v3855_v58, %s3353_s22 }
 0x420   : > { %v4563_v45 = vpop.permute.xlu2 %1659  ;;  %v4565_v33 = vpop.permute.xlu1 %1639 }
 0x421   : > { %5804 = vst [vmem:[#allocation121_spill] sm:$0xff] %v4563_v45  ;;  %v4567_v60 = vpop.permute.xlu0 %1643 }
 0x422   : > { %5805 = vst [vmem:[#allocation125_spill] sm:$0xff] %v4565_v33 }
 0x423   : > { %5806 = vst [vmem:[#allocation32_spill] sm:$0xff] %v4567_v60 }
 0x426   : > { %1806 = vperm.xlu1 %3174, %v4572_v49   ;;  %1841 = vrot.lane.b32.xlu2 %v3696_v57, %s3353_s22 }
 0x427   : > { %1849 = vrot.lane.b32.xlu0 %v3743_v13, %s3353_s22 }
 0x428   : > { %v4579_v3 = vpop.permute.xlu2 %1665  ;;  %v4581_v24 = vpop.permute.xlu1 %1645 }
 0x429   : > { %5807 = vst [vmem:[#allocation116_spill] sm:$0xff] %v4579_v3  ;;  %v4583_v32 = vpop.permute.xlu0 %1649 }
 0x42a   : > { %5808 = vst [vmem:[#allocation105_spill] sm:$0xff] %v4581_v24 }
 0x42b   : > { %5809 = vst [vmem:[#allocation37_spill] sm:$0xff] %v4583_v32 }
 0x42e   : > { %1845 = vrot.lane.b32.xlu1 %v3721_v2, %s3353_s22  ;;  %1847 = vrot.lane.b32.xlu2 %v3867_v43, %s3353_s22 }
 0x42f   : > { %1855 = vrot.lane.b32.xlu0 %v5761_v19, %s3353_s22 }
 0x430   : > { %v4591_v20 = vpop.permute.xlu1 %1651  ;;  %v4593_v28 = vpop.permute.xlu2 %1671 }
 0x431   : > { %5810 = vst [vmem:[#allocation123_spill] sm:$0xff] %v4591_v20  ;;  %v4595_v40 = vpop.permute.xlu0 %1655 }
 0x432   : > { %5811 = vst [vmem:[#allocation22_spill] sm:$0xff] %v4593_v28 }
 0x433   : > { %5812 = vst [vmem:[#allocation126_spill] sm:$0xff] %v4595_v40 }
 0x436   : > { %1851 = vrot.lane.b32.xlu1 %v3878_v46, %s3353_s22  ;;  %1853 = vrot.lane.b32.xlu2 %v3759_v23, %s3353_s22 }
 0x437   : > { %1861 = vrot.lane.b32.xlu0 %v5765_v17, %s3353_s22 }
 0x438   : > { %v4603_v31 = vpop.permute.xlu1 %1657  ;;  %v4605_v41 = vpop.permute.xlu2 %1677 }
 0x439   : > { %5813 = vst [vmem:[#allocation115_spill] sm:$0xff] %v4603_v31  ;;  %v4607_v33 = vpop.permute.xlu0 %1661 }
 0x43a   : > { %5814 = vst [vmem:[#allocation26_spill] sm:$0xff] %v4605_v41 }
 0x43b   : > { %5815 = vst [vmem:[#allocation120_spill] sm:$0xff] %v4607_v33 }
 0x43e   : > { %1857 = vrot.lane.b32.xlu1 %v5762_v6, %s3353_s22  ;;  %1859 = vrot.lane.b32.xlu2 %v5764_v51, %s3353_s22 }
 0x43f   : > { %1867 = vrot.lane.b32.xlu0 %v5770_v38, %s3353_s22 }
 0x440   : > { %v4615_v4 = vpop.permute.xlu1 %1663  ;;  %v4617_v53 = vpop.permute.xlu2 %1683 }
 0x441   : > { %5816 = vst [vmem:[#allocation119_spill] sm:$0xff] %v4615_v4  ;;  %v4619_v24 = vpop.permute.xlu0 %1667 }
 0x442   : > { %5817 = vst [vmem:[#allocation127_spill] sm:$0xff] %v4617_v53 }
 0x443   : > { %5818 = vst [vmem:[#allocation128_spill] sm:$0xff] %v4619_v24 }
 0x446   : > { %1863 = vrot.lane.b32.xlu1 %v5767_v48, %s3353_s22  ;;  %1865 = vrot.lane.b32.xlu2 %v5768_v52, %s3353_s22 }
 0x447   : > { %1873 = vrot.lane.b32.xlu0 %v5774_v5, %s3353_s22 }
 0x448   : > { %v4627_v15 = vpop.permute.xlu1 %1669  ;;  %v4629_v34 = vpop.permute.xlu2 %1689 }
 0x449   : > { %5819 = vst [vmem:[#allocation129_spill] sm:$0xff] %v4627_v15  ;;  %v4631_v60 = vpop.permute.xlu0 %1673 }
 0x44a   : > { %5820 = vst [vmem:[#allocation130_spill] sm:$0xff] %v4629_v34 }
 0x44b   : > { %5821 = vst [vmem:[#allocation131_spill] sm:$0xff] %v4631_v60 }
 0x44e   : > { %1869 = vrot.lane.b32.xlu1 %v5771_v7, %s3353_s22  ;;  %1871 = vrot.lane.b32.xlu2 %v5773_v42, %s3353_s22 }
 0x44f   : > { %1879 = vrot.lane.b32.xlu0 %v5779_v36, %s3353_s22 }
 0x450   : > { %v4639_v39 = vpop.permute.xlu1 %1675  ;;  %v4641_v40 = vpop.permute.xlu2 %1695 }
 0x451   : > { %5822 = vst [vmem:[#allocation132_spill] sm:$0xff] %v4639_v39  ;;  %v4643_v32 = vpop.permute.xlu0 %1679 }
 0x452   : > { %5823 = vst [vmem:[#allocation133_spill] sm:$0xff] %v4641_v40 }
 0x453   : > { %5824 = vst [vmem:[#allocation134_spill] sm:$0xff] %v4643_v32 }
 0x456   : > { %1875 = vrot.lane.b32.xlu1 %v5776_v10, %s3353_s22  ;;  %1877 = vrot.lane.b32.xlu2 %v5777_v1, %s3353_s22 }
 0x457   : > { %1885 = vrot.lane.b32.xlu0 %v5783_v30, %s3353_s22 }
 0x458   : > { %v4651_v20 = vpop.permute.xlu1 %1681  ;;  %v4653_v33 = vpop.permute.xlu2 %1754 }
 0x459   : > { %5825 = vst [vmem:[#allocation135_spill] sm:$0xff] %v4651_v20  ;;  %v4655_v4 = vpop.permute.xlu0 %1685 }
 0x45a   : > { %5826 = vst [vmem:[#allocation136_spill] sm:$0xff] %v4653_v33 }
 0x45b   : > { %5827 = vst [vmem:[#allocation137_spill] sm:$0xff] %v4655_v4 }
 0x45e   : > { %1881 = vrot.lane.b32.xlu1 %v5780_v9, %s3353_s22  ;;  %1883 = vrot.lane.b32.xlu2 %v5782_v11, %s3353_s22 }
 0x45f   : > { %1891 = vrot.lane.b32.xlu0 %v5788_v47, %s3353_s22 }
 0x460   : > { %v4663_v31 = vpop.permute.xlu1 %1687  ;;  %v4665_v45 = vpop.permute.xlu2 %1762 }
 0x461   : > { %5828 = vst [vmem:[#allocation138_spill] sm:$0xff] %v4663_v31  ;;  %v4667_v15 = vpop.permute.xlu0 %1691 }
 0x462   : > { %5829 = vst [vmem:[#allocation139_spill] sm:$0xff] %v4665_v45 }
 0x463   : > { %5830 = vst [vmem:[#allocation140_spill] sm:$0xff] %v4667_v15 }
 0x466   : > { %1887 = vrot.lane.b32.xlu1 %v5785_v44, %s3353_s22  ;;  %1889 = vrot.lane.b32.xlu2 %v5786_v37, %s3353_s22 }
 0x467   : > { %1897 = vrot.lane.b32.xlu0 %v5792_v63, %s3353_s22 }
 0x468   : > { %v4675_v28 = vpop.permute.xlu1 %1693  ;;  %v4677_v3 = vpop.permute.xlu2 %1774 }
 0x469   : > { %5831 = vst [vmem:[#allocation141_spill] sm:$0xff] %v4675_v28  ;;  %v4679_v24 = vpop.permute.xlu0 %1746 }
 0x46a   : > { %5832 = vst [vmem:[#allocation142_spill] sm:$0xff] %v4677_v3 }
 0x46b   : > { %5833 = vst [vmem:[#allocation143_spill] sm:$0xff] %v4679_v24 }
 0x46e   : > { %1893 = vrot.lane.b32.xlu1 %v5789_v62, %s3353_s22  ;;  %1895 = vrot.lane.b32.xlu2 %v5791_v21, %s3353_s22 }
 0x46f   : > { %1903 = vrot.lane.b32.xlu0 %v5797_v29, %s3353_s22 }
 0x470   : > { %v4687_v41 = vpop.permute.xlu1 %1750  ;;  %v4689_v32 = vpop.permute.xlu2 %1786 }
 0x471   : > { %5834 = vst [vmem:[#allocation144_spill] sm:$0xff] %v4687_v41  ;;  %v4691_v60 = vpop.permute.xlu0 %1766 }
 0x472   : > { %5835 = vst [vmem:[#allocation145_spill] sm:$0xff] %v4689_v32 }
 0x473   : > { %5836 = vst [vmem:[#allocation146_spill] sm:$0xff] %v4691_v60 }
 0x476   : > { %1899 = vrot.lane.b32.xlu1 %v5794_v22, %s3353_s22  ;;  %1901 = vrot.lane.b32.xlu2 %v5795_v54, %s3353_s22 }
 0x478   : > { %v4697_v39 = vpop.permute.xlu1 %1758  ;;  %v4699_v4 = vpop.permute.xlu2 %1798 }
 0x479   : > { %5837 = vst [vmem:[#allocation147_spill] sm:$0xff] %v4697_v39  ;;  %v4701_v31 = vpop.permute.xlu0 %1778 }
 0x47a   : > { %5838 = vst [vmem:[#allocation148_spill] sm:$0xff] %v4701_v31 }
 0x480   : > { %v4703_v20 = vpop.permute.xlu1 %1770  ;;  %v1842_v53 = vpop.permute.xlu2 %1841 }
 0x481   : > { %5839 = vst [vmem:[#allocation149_spill] sm:$0xff] %v4703_v20  ;;  %v4705_v43 = vpop.permute.xlu0 %1790 }
 0x482   : > { %5840 = vst [vmem:[#allocation150_spill] sm:$0xff] %v4705_v43 }
 0x488   : > { %v4707_v28 = vpop.permute.xlu1 %1782  ;;  %v1848_v40 = vpop.permute.xlu2 %1847 }
 0x489   : > { %5841 = vst [vmem:[#allocation151_spill] sm:$0xff] %v4707_v28  ;;  %v4709_v41 = vpop.permute.xlu0 %1802 }
 0x490   : > { %v4711_v2 = vpop.permute.xlu1 %1794  ;;  %v1854_v24 = vpop.permute.xlu2 %1853 }
 0x491   : > { %v1844_v58 = vpop.permute.xlu0 %1843 }
 0x492   : > { %v4714_v57 = vsel %vm1905_vm3, %v1842_v53, %v1844_v58 }
 0x493   : > { %1938 = vrot.lane.b32.xlu1 %v4714_v57, %s3345_s30 }
 0x498   : > { %v4718_v19 = vpop.permute.xlu1 %1806  ;;  %v1860_v15 = vpop.permute.xlu2 %1859 }
 0x499   : > { %v1850_v34 = vpop.permute.xlu0 %1849 }
 0x4a0   : > { %v1846_v39 = vpop.permute.xlu1 %1845  ;;  %v1866_v58 = vpop.permute.xlu2 %1865 }
 0x4a1   : > { %v1856_v23 = vpop.permute.xlu0 %1855  ;;  %v4721_v46 = vsel %vm1905_vm3, %v1846_v39, %v1848_v40 }
 0x4a2   : > { %v4724_v33 = vsel %vm1905_vm3, %v1854_v24, %v1856_v23  ;;  %1940 = vrot.lane.b32.xlu2 %v4721_v46, %s3345_s30 }
 0x4a3   : > { %1944 = vrot.lane.b32.xlu1 %v4724_v33, %s3345_s30 }
 0x4a8   : > { %v1852_v53 = vpop.permute.xlu1 %1851  ;;  %v1872_v39 = vpop.permute.xlu2 %1871 }
 0x4a9   : > { %v1862_v13 = vpop.permute.xlu0 %1861  ;;  %v4731_v48 = vsel %vm1905_vm3, %v1850_v34, %v1852_v53 }
 0x4aa   : > { %1942 = vrot.lane.b32.xlu0 %v4731_v48, %s3345_s30 }
 0x4b0   : > { %v1858_v40 = vpop.permute.xlu1 %1857  ;;  %v1878_v53 = vpop.permute.xlu2 %1877 }
 0x4b1   : > { %v1868_v60 = vpop.permute.xlu0 %1867  ;;  %v4736_v23 = vsel %vm1905_vm3, %v1858_v40, %v1860_v15 }
 0x4b2   : > { %v4739_v24 = vsel %vm1905_vm3, %v1866_v58, %v1868_v60  ;;  %1946 = vrot.lane.b32.xlu2 %v4736_v23, %s3345_s30 }
 0x4b3   : > { %1950 = vrot.lane.b32.xlu1 %v4739_v24, %s3345_s30 }
 0x4b8   : > { %v1864_v34 = vpop.permute.xlu1 %1863  ;;  %v1884_v45 = vpop.permute.xlu2 %1883 }
 0x4b9   : > { %v1874_v17 = vpop.permute.xlu0 %1873  ;;  %v4746_v51 = vsel %vm1905_vm3, %v1862_v13, %v1864_v34 }
 0x4ba   : > { %1948 = vrot.lane.b32.xlu0 %v4746_v51, %s3345_s30 }
 0x4c0   : > { %v1870_v15 = vpop.permute.xlu1 %1869 }
 0x4c1   : > { %v1880_v40 = vpop.permute.xlu0 %1879  ;;  %v4751_v60 = vsel %vm1905_vm3, %v1870_v15, %v1872_v39  ;;  %v3354_v39 = vmov 6  }
 0x4c2   : > { %v4754_v58 = vsel %vm1905_vm3, %v1878_v53, %v1880_v40  ;;  %1952 = vrot.lane.b32.xlu2 %v4751_v60, %s3345_s30  ;;  %3178 = vset.pattern.permute.xlu1 %v3354_v39  ;;  %v1890_v53 = vpop.permute.xlu2 %1889 }
 0x4c3   : > { %1956 = vrot.lane.b32.xlu1 %v4754_v58, %s3345_s30  ;;  %3176 = vset.pattern.permute.xlu2 %v3354_v39 }
 0x4c4   : > { %3177 = vset.pattern.permute.xlu0 %v3354_v39 }
 0x4c8   : > { %v1876_v13 = vpop.permute.xlu1 %1875 }
 0x4c9   : > { %v1886_v34 = vpop.permute.xlu0 %1885  ;;  %v4761_v6 = vsel %vm1905_vm3, %v1874_v17, %v1876_v13 }
 0x4ca   : > { %1954 = vrot.lane.b32.xlu0 %v4761_v6, %s3345_s30  ;;  %v1896_v17 = vpop.permute.xlu2 %1895 }
 0x4d0   : > { %v1882_v15 = vpop.permute.xlu1 %1881 }
 0x4d1   : > { %v1892_v40 = vpop.permute.xlu0 %1891  ;;  %v4766_v42 = vsel %vm1905_vm3, %v1882_v15, %v1884_v45 }
 0x4d2   : > { %v4769_v3 = vsel %vm1905_vm3, %v1890_v53, %v1892_v40  ;;  %1958 = vrot.lane.b32.xlu2 %v4766_v42, %s3345_s30  ;;  %v1902_v15 = vpop.permute.xlu2 %1901 }
 0x4d3   : > { %1962 = vrot.lane.b32.xlu1 %v4769_v3, %s3345_s30 }
 0x4d8   : > { %v1888_v13 = vpop.permute.xlu1 %1887 }
 0x4d9   : > { %v1898_v7 = vpop.permute.xlu0 %1897  ;;  %v4776_v39 = vsel %vm1905_vm3, %v1886_v34, %v1888_v13 }
 0x4da   : > { %1960 = vrot.lane.b32.xlu0 %v4776_v39, %s3345_s30 }
 0x4e0   : > { %v1894_v45 = vpop.permute.xlu1 %1893 }
 0x4e1   : > { %v1904_v38 = vpop.permute.xlu0 %1903  ;;  %v4781_v53 = vsel %vm1905_vm3, %v1894_v45, %v1896_v17  ;;  %v4816_v17 = vld [vmem:[%s5522_s1] ss:$0 sm:$0xff] }
 0x4e2   : > { %v4784_v40 = vsel %vm1905_vm3, %v1902_v15, %v1904_v38  ;;  %1964 = vrot.lane.b32.xlu2 %v4781_v53, %s3345_s30 }
 0x4e3   : > { %1968 = vrot.lane.b32.xlu1 %v4784_v40, %s3345_s30 }
 0x4e8   : > { %v1900_v34 = vpop.permute.xlu1 %1899 }
 0x4e9   : > { %v4791_v13 = vsel %vm1905_vm3, %v1898_v7, %v1900_v34 }
 0x4ea   : > { %1966 = vrot.lane.b32.xlu0 %v4791_v13, %s3345_s30  ;;  %1987 = vperm.xlu2 %3176, %v4234_v50  }
 0x4eb   : > { %1995 = vperm.xlu1 %3178, %v4265_v8  }
 0x4f2   : > { %1991 = vperm.xlu0 %3177, %v4271_v26   ;;  %1999 = vperm.xlu2 %3176, %v4244_v55  }
 0x4f3   : > { %2003 = vperm.xlu1 %3178, %v4281_v16  }
 0x4fa   : > { %2011 = vperm.xlu0 %3177, %v4293_v25   ;;  %2007 = vperm.xlu2 %3176, %v4254_v56  }
 0x4fb   : > { %2015 = vperm.xlu1 %3178, %v4514_v12  }
 0x4fc   : > { %v1941_v50 = vpop.permute.xlu2 %1940 }
 0x502   : > { %2023 = vperm.xlu0 %3177, %v4528_v14   ;;  %2019 = vperm.xlu2 %3176, %v4505_v27  }
 0x503   : > { %2027 = vperm.xlu1 %3178, %v4534_v61  }
 0x505   : > { %v1939_v8 = vpop.permute.xlu1 %1938 }
 0x506   : > { %v1970_v45 = vmul.f32 %v4816_v17, %v1939_v8 }
 0x50a   : > { %2035 = vperm.xlu0 %3177, %v4552_v59   ;;  %2031 = vperm.xlu2 %3176, %v4520_v0  }
 0x50b   : > { %2039 = vperm.xlu1 %3178, %v4558_v18  }
 0x50c   : > { %v1947_v55 = vpop.permute.xlu2 %1946 }
 0x512   : > { %2047 = vperm.xlu0 %3177, %v4572_v49   ;;  %2043 = vperm.xlu2 %3176, %v4540_v35  }
 0x515   : > { %v1945_v16 = vpop.permute.xlu1 %1944 }
 0x516   : > { %v1973_v36 = vmul.f32 %v4816_v17, %v1945_v16 }
 0x51c   : > { %v1953_v56 = vpop.permute.xlu2 %1952  ;;  %v1943_v25 = vpop.permute.xlu0 %1942 }
 0x51d   : > { %v1972_v43 = vmul.f32 %v4816_v17, %v1943_v25 }
 0x525   : > { %v1951_v7 = vpop.permute.xlu1 %1950 }
 0x526   : > { %v1976_v25 = vmul.f32 %v4816_v17, %v1951_v7 }
 0x52c   : > { %v1959_v26 = vpop.permute.xlu2 %1958  ;;  %v1949_v15 = vpop.permute.xlu0 %1948 }
 0x52d   : > { %v1975_v16 = vmul.f32 %v4816_v17, %v1949_v15 }
 0x535   : > { %v1957_v20 = vpop.permute.xlu1 %1956 }
 0x53c   : > { %v4811_v38 = vpop.permute.xlu2 %1964  ;;  %v1955_v28 = vpop.permute.xlu0 %1954 }
 0x544   : > { %v1988_v34 = vpop.permute.xlu2 %1987 }
 0x545   : > { %v2050_v52 = vmul.f32 %v1988_v34, %v1970_v45  ;;  %v1963_v10 = vpop.permute.xlu1 %1962 }
 0x547   : > { %2082 = vrot.lane.b32.xlu1 %v2050_v52, %s3355_s13  ;;  %v1971_v52 = vmul.f32 %v4816_v17, %v1941_v50 }
 0x54c   : > { %v2000_v1 = vpop.permute.xlu2 %1999  ;;  %v1961_v5 = vpop.permute.xlu0 %1960 }
 0x54d   : > { %v2053_v31 = vmul.f32 %v2000_v1, %v1973_v36  ;;  %v1981_v7 = vmul.f32 %v4816_v17, %v1961_v5 }
 0x54f   : > { %2088 = vrot.lane.b32.xlu1 %v2053_v31, %s3355_s13  ;;  %v1974_v31 = vmul.f32 %v4816_v17, %v1947_v55  ;;  %v1979_v55 = vmul.f32 %v4816_v17, %v1957_v20 }
 0x554   : > { %v2008_v30 = vpop.permute.xlu2 %2007 }
 0x555   : > { %v1969_v44 = vpop.permute.xlu1 %1968  ;;  %v2055_v1 = vmul.f32 %v2008_v30, %v1975_v16 }
 0x55c   : > { %v1967_v8 = vpop.permute.xlu0 %1966  ;;  %v2020_v36 = vpop.permute.xlu2 %2019 }
 0x55d   : > { %v1996_v11 = vpop.permute.xlu1 %1995  ;;  %v1984_v20 = vmul.f32 %v4816_v17, %v1967_v8  ;;  %v3356_v8 = vmov 8  }
 0x55e   : > { %v2052_v32 = vmul.f32 %v1996_v11, %v1972_v43  ;;  %v1978_v43 = vmul.f32 %v4816_v17, %v1955_v28  ;;  %3179 = vset.pattern.permute.xlu0 %v3356_v8  ;;  %3180 = vset.pattern.permute.xlu1 %v3356_v8 }
 0x55f   : > { %3181 = vset.pattern.permute.xlu2 %v3356_v8 }
 0x560   : > { %2086 = vrot.lane.b32.xlu0 %v2052_v32, %s3355_s13  ;;  %v2058_v21 = vmul.f32 %v2020_v36, %v1978_v43 }
 0x564   : > { %v1992_v45 = vpop.permute.xlu0 %1991  ;;  %v2032_v30 = vpop.permute.xlu2 %2031 }
 0x565   : > { %v2051_v34 = vmul.f32 %v1992_v45, %v1971_v52  ;;  %v2004_v9 = vpop.permute.xlu1 %2003  ;;  %v1977_v52 = vmul.f32 %v4816_v17, %v1953_v56 }
 0x566   : > { %v2054_v32 = vmul.f32 %v2004_v9, %v1974_v31  ;;  %v2061_v9 = vmul.f32 %v2032_v30, %v1981_v7 }
 0x567   : > { %2084 = vrot.lane.b32.xlu2 %v2051_v34, %s3355_s13 }
 0x568   : > { %2092 = vrot.lane.b32.xlu0 %v2055_v1, %s3355_s13  ;;  %v1982_v1 = vmul.f32 %v4816_v17, %v1963_v10 }
 0x56c   : > { %v2012_v11 = vpop.permute.xlu0 %2011  ;;  %v2044_v56 = vpop.permute.xlu2 %2043 }
 0x56d   : > { %v2056_v50 = vmul.f32 %v2012_v11, %v1976_v25  ;;  %v2016_v15 = vpop.permute.xlu1 %2015  ;;  %v2064_v25 = vmul.f32 %v2044_v56, %v1984_v20  ;;  %v1983_v11 = vmul.f32 %v4816_v17, %v4811_v38 }
 0x56e   : > { %v2057_v28 = vmul.f32 %v2016_v15, %v1977_v52 }
 0x56f   : > { %2090 = vrot.lane.b32.xlu2 %v2054_v32, %s3355_s13  ;;  %2094 = vrot.lane.b32.xlu1 %v2056_v50, %s3355_s13 }
 0x570   : > { %2098 = vrot.lane.b32.xlu0 %v2058_v21, %s3355_s13  ;;  %v1980_v21 = vmul.f32 %v4816_v17, %v1959_v26  ;;  %v1985_v26 = vmul.f32 %v4816_v17, %v1969_v44 }
 0x574   : > { %v2024_v16 = vpop.permute.xlu0 %2023 }
 0x575   : > { %v2059_v45 = vmul.f32 %v2024_v16, %v1979_v55  ;;  %v2028_v34 = vpop.permute.xlu1 %2027 }
 0x576   : > { %v2060_v5 = vmul.f32 %v2028_v34, %v1980_v21 }
 0x577   : > { %2096 = vrot.lane.b32.xlu2 %v2057_v28, %s3355_s13  ;;  %2100 = vrot.lane.b32.xlu1 %v2059_v45, %s3355_s13 }
 0x578   : > { %2104 = vrot.lane.b32.xlu0 %v2061_v9, %s3355_s13 }
 0x57c   : > { %v2036_v36 = vpop.permute.xlu0 %2035 }
 0x57d   : > { %v2062_v31 = vmul.f32 %v2036_v36, %v1982_v1  ;;  %v2040_v43 = vpop.permute.xlu1 %2039 }
 0x57e   : > { %v2063_v32 = vmul.f32 %v2040_v43, %v1983_v11 }
 0x57f   : > { %2102 = vrot.lane.b32.xlu2 %v2060_v5, %s3355_s13  ;;  %2106 = vrot.lane.b32.xlu1 %v2062_v31, %s3355_s13  ;;  %v4962_v5 = vld [vmem:[%s5522_s1 + $0x1] ss:$0 sm:$0xff] }
 0x580   : > { %2110 = vrot.lane.b32.xlu0 %v2064_v25, %s3355_s13 }
 0x584   : > { %v2048_v10 = vpop.permute.xlu0 %2047 }
 0x585   : > { %v2065_v50 = vmul.f32 %v2048_v10, %v1985_v26 }
 0x587   : > { %2108 = vrot.lane.b32.xlu2 %v2063_v32, %s3355_s13  ;;  %2112 = vrot.lane.b32.xlu1 %v2065_v50, %s3355_s13 }
 0x588   : > { %2164 = vrot.lane.b32.xlu0 %v4721_v46, %s3346_s11  ;;  %v3236_v46 = vld [vmem:[%s5524_s3] sm:$0xff] }
 0x58f   : > { %2162 = vrot.lane.b32.xlu2 %v4714_v57, %s3346_s11  ;;  %2166 = vrot.lane.b32.xlu1 %v4731_v48, %s3346_s11  ;;  %v3237_v57 = vld [vmem:[%s5524_s3 + $0x8] sm:$0xff] }
 0x590   : > { %2170 = vrot.lane.b32.xlu0 %v4736_v23, %s3346_s11  ;;  %v5842_v23 = vmov 0  }
 0x597   : > { %2168 = vrot.lane.b32.xlu2 %v4724_v33, %s3346_s11  ;;  %2172 = vrot.lane.b32.xlu1 %v4746_v51, %s3346_s11  ;;  %v3239_v51 = vld [vmem:[%s5524_s3 + $0x18] sm:$0xff] }
 0x598   : > { %2176 = vrot.lane.b32.xlu0 %v4751_v60, %s3346_s11 }
 0x59f   : > { %2174 = vrot.lane.b32.xlu2 %v4739_v24, %s3346_s11  ;;  %2178 = vrot.lane.b32.xlu1 %v4761_v6, %s3346_s11  ;;  %v3238_v6 = vld [vmem:[%s5524_s3 + $0x10] sm:$0xff] }
 0x5a0   : > { %2182 = vrot.lane.b32.xlu0 %v4766_v42, %s3346_s11 }
 0x5a7   : > { %2180 = vrot.lane.b32.xlu2 %v4754_v58, %s3346_s11  ;;  %2184 = vrot.lane.b32.xlu1 %v4776_v39, %s3346_s11 }
 0x5a8   : > { %2188 = vrot.lane.b32.xlu0 %v4781_v53, %s3346_s11 }
 0x5af   : > { %2186 = vrot.lane.b32.xlu2 %v4769_v3, %s3346_s11  ;;  %2190 = vrot.lane.b32.xlu1 %v4791_v13, %s3346_s11  ;;  %v3241_v3 = vld [vmem:[%s5524_s3 + $0x30] sm:$0xff] }
 0x5b0   : > { %2211 = vperm.xlu0 %3179, %v3236_v46  }
 0x5b7   : > { %2192 = vrot.lane.b32.xlu2 %v4784_v40, %s3346_s11  ;;  %2215 = vperm.xlu1 %3180, %v3237_v57  }
 0x5b8   : > { %2271 = vperm.xlu0 %3179, %v4572_v49  }
 0x5b9   : > { %v4904_v44 = vpop.permute.xlu1 %2082 }
 0x5bf   : > { %2219 = vperm.xlu2 %3181, %v3238_v6   ;;  %2223 = vperm.xlu1 %3180, %v3239_v51  }
 0x5c0   : > { %2251 = vperm.xlu0 %3179, %v4534_v61   ;;  %v3240_v61 = vld [vmem:[%s5524_s3 + $0x20] sm:$0xff] }
 0x5c1   : > { %v4897_v48 = vpop.permute.xlu2 %2084 }
 0x5c7   : > { %2267 = vperm.xlu2 %3181, %v4540_v35   ;;  %2259 = vperm.xlu1 %3180, %v4552_v59  }
 0x5c8   : > { %2247 = vperm.xlu0 %3179, %v4528_v14  }
 0x5c9   : > { %v4902_v42 = vpop.permute.xlu2 %2090 }
 0x5cf   : > { %2263 = vperm.xlu2 %3181, %v4558_v18   ;;  %2255 = vperm.xlu1 %3180, %v4520_v0   ;;  %v4920_v18 = vpop.permute.xlu1 %2088 }
 0x5d0   : > { %2227 = vperm.xlu0 %3179, %v3240_v61  }
 0x5d1   : > { %v4911_v33 = vpop.permute.xlu2 %2096 }
 0x5d2   : > { %v4913_v35 = vpop.permute.xlu0 %2086 }
 0x5d7   : > { %2243 = vperm.xlu2 %3181, %v4505_v27   ;;  %2235 = vperm.xlu1 %3180, %v3241_v3   ;;  %v3242_v27 = vld [vmem:[%s5524_s3 + $0x28] sm:$0xff] }
 0x5d8   : > { %3182 = vset.pattern.permute.xlu0 %v5842_v23 }
 0x5d9   : > { %692 = vperm.xlu0 %3182, %v3237_v57   ;;  %v4922_v0 = vpop.permute.xlu2 %2102 }
 0x5da   : > { %v4924_v24 = vpop.permute.xlu0 %2092 }
 0x5df   : > { %2239 = vperm.xlu2 %3181, %v4514_v12   ;;  %2231 = vperm.xlu1 %3180, %v3242_v27  }
 0x5e1   : > { %712 = vperm.xlu0 %3182, %v3241_v3   ;;  %v4930_v60 = vpop.permute.xlu1 %2094  ;;  %v4932_v58 = vpop.permute.xlu2 %2108 }
 0x5e2   : > { %v4934_v39 = vpop.permute.xlu0 %2098 }
 0x5e7   : > { %3183 = vset.pattern.permute.xlu1 %v5842_v23  ;;  %3184 = vset.pattern.permute.xlu2 %v5842_v23 }
 0x5e9   : > { %724 = vperm.xlu0 %3182, %v4528_v14   ;;  %v4939_v53 = vpop.permute.xlu1 %2100  ;;  %v4941_v12 = vpop.permute.xlu2 %2162 }
 0x5ea   : > { %v4943_v40 = vpop.permute.xlu0 %2104 }
 0x5f1   : > { %736 = vperm.xlu0 %3182, %v4552_v59   ;;  %v4946_v13 = vpop.permute.xlu1 %2106  ;;  %v4948_v38 = vpop.permute.xlu2 %2168 }
 0x5f2   : > { %v4950_v15 = vpop.permute.xlu0 %2110 }
 0x5f9   : > { %748 = vperm.xlu0 %3182, %v4572_v49   ;;  %v4953_v30 = vpop.permute.xlu1 %2112  ;;  %v2175_v52 = vpop.permute.xlu2 %2174 }
 0x5fa   : > { %v4955_v14 = vpop.permute.xlu0 %2164 }
 0x601   : > { %v2167_v55 = vpop.permute.xlu1 %2166  ;;  %v2181_v7 = vpop.permute.xlu2 %2180 }
 0x602   : > { %v2171_v16 = vpop.permute.xlu0 %2170 }
 0x609   : > { %v4957_v28 = vpop.permute.xlu1 %2172  ;;  %v2187_v45 = vpop.permute.xlu2 %2186 }
 0x60a   : > { %v2177_v59 = vpop.permute.xlu0 %2176 }
 0x611   : > { %v2179_v9 = vpop.permute.xlu1 %2178  ;;  %v2193_v34 = vpop.permute.xlu2 %2192 }
 0x612   : > { %v2183_v21 = vpop.permute.xlu0 %2182  ;;  %v2209_v11 = vmul.f32 %v4962_v5, %v2193_v34  ;;  %v2202_v61 = vmul.f32 %v4962_v5, %v2179_v9  ;;  %v2206_v34 = vmul.f32 %v4962_v5, %v2187_v45  ;;  %v2198_v45 = vmul.f32 %v4962_v5, %v2171_v16 }
 0x613   : > { %v2204_v57 = vmul.f32 %v4962_v5, %v2183_v21  ;;  %v2195_v16 = vmul.f32 %v4962_v5, %v4955_v14 }
 0x619   : > { %v2185_v1 = vpop.permute.xlu1 %2184  ;;  %v2220_v56 = vpop.permute.xlu2 %2219 }
 0x61a   : > { %v2189_v20 = vpop.permute.xlu0 %2188  ;;  %v2205_v9 = vmul.f32 %v4962_v5, %v2185_v1  ;;  %v2197_v1 = vmul.f32 %v4962_v5, %v4948_v38  ;;  %v2194_v38 = vmul.f32 %v4962_v5, %v4941_v12 }
 0x61b   : > { %v2207_v32 = vmul.f32 %v4962_v5, %v2189_v20  ;;  %v2203_v20 = vmul.f32 %v4962_v5, %v2181_v7  ;;  %v2196_v7 = vmul.f32 %v4962_v5, %v2167_v55 }
 0x621   : > { %v2191_v36 = vpop.permute.xlu1 %2190  ;;  %v2268_v49 = vpop.permute.xlu2 %2267 }
 0x622   : > { %v2208_v31 = vmul.f32 %v4962_v5, %v2191_v36  ;;  %v2212_v25 = vpop.permute.xlu0 %2211 }
 0x623   : > { %v2274_v14 = vmul.f32 %v2212_v25, %v2194_v38  ;;  %v5848_v38 = vld [vmem:[#allocation150_spill] sm:$0xff] }
 0x624   : > { %v2288_v43 = vmul.f32 %v2268_v49, %v2208_v31  ;;  %v2201_v31 = vmul.f32 %v4962_v5, %v2177_v59 }
 0x626   : > { %2334 = vrot.lane.b32.xlu2 %v2288_v43, %s3355_s13 }
 0x629   : > { %v2216_v26 = vpop.permute.xlu1 %2215  ;;  %v2264_v10 = vpop.permute.xlu2 %2263 }
 0x62a   : > { %v2272_v50 = vpop.permute.xlu0 %2271  ;;  %v2287_v46 = vmul.f32 %v2264_v10, %v2207_v32 }
 0x62b   : > { %v2289_v8 = vmul.f32 %v2272_v50, %v2209_v11 }
 0x62d   : > { %2336 = vrot.lane.b32.xlu0 %v2289_v8, %s3355_s13 }
 0x62e   : > { %2332 = vrot.lane.b32.xlu2 %v2287_v46, %s3355_s13  ;;  %v2276_v46 = vmul.f32 %v2220_v56, %v2196_v7  ;;  %v2199_v56 = vmul.f32 %v4962_v5, %v4957_v28  ;;  %v1838_v28 = vmul.f32 %v4709_v41, %v5794_v22  ;;  %v1833_v7 = vmul.f32 %v4711_v2, %v5786_v37 }
 0x631   : > { %v2224_v6 = vpop.permute.xlu1 %2223  ;;  %v2244_v51 = vpop.permute.xlu2 %2243 }
 0x632   : > { %v2252_v3 = vpop.permute.xlu0 %2251  ;;  %v2282_v27 = vmul.f32 %v2244_v51, %v2202_v61  ;;  %v2277_v61 = vmul.f32 %v2224_v6, %v2197_v1 }
 0x633   : > { %v2284_v23 = vmul.f32 %v2252_v3, %v2204_v57  ;;  %v2200_v57 = vmul.f32 %v4962_v5, %v2175_v52  ;;  %v2275_v3 = vmul.f32 %v2216_v26, %v2195_v16 }
 0x635   : > { %2326 = vrot.lane.b32.xlu0 %v2284_v23, %s3355_s13 }
 0x636   : > { %2322 = vrot.lane.b32.xlu2 %v2282_v27, %s3355_s13  ;;  %v1837_v27 = vmul.f32 %v4709_v41, %v5792_v63  ;;  %v1839_v41 = vmul.f32 %v4718_v19, %v5795_v54 }
 0x639   : > { %v2260_v36 = vpop.permute.xlu1 %2259  ;;  %v2240_v49 = vpop.permute.xlu2 %2239 }
 0x63a   : > { %v2286_v21 = vmul.f32 %v2260_v36, %v2206_v34  ;;  %v2248_v43 = vpop.permute.xlu0 %2247  ;;  %v2281_v10 = vmul.f32 %v2240_v49, %v2201_v31  ;;  %v2158_v34 = vadd.f32 %v4950_v15, %v1837_v27  ;;  %v2544_v31 = vld [vmem:[%s5525_s4 + $0x70] sm:$0xff] }
 0x63b   : > { %v2283_v11 = vmul.f32 %v2248_v43, %v2203_v20  ;;  %v2159_v20 = vadd.f32 %v4950_v15, %v1838_v28  ;;  %v1840_v15 = vmul.f32 %v4718_v19, %v5797_v29  ;;  %v2160_v43 = vadd.f32 %v4953_v30, %v1839_v41  ;;  %v5849_v41 = vld [vmem:[#allocation101_spill] sm:$0xff] }
 0x63c   : > { %2330 = vrot.lane.b32.xlu1 %v2286_v21, %s3355_s13  ;;  %v1834_v19 = vmul.f32 %v4711_v2, %v5788_v47  ;;  %v1835_v29 = vmul.f32 %v4699_v4, %v5789_v62  ;;  %v5843_v2 = vld [vmem:[#allocation109_spill] sm:$0xff] }
 0x63d   : > { %2324 = vrot.lane.b32.xlu0 %v2283_v11, %s3355_s13  ;;  %v2161_v11 = vadd.f32 %v4953_v30, %v1840_v15  ;;  %v2154_v30 = vadd.f32 %v4946_v13, %v1833_v7  ;;  %v1836_v47 = vmul.f32 %v4699_v4, %v5843_v2  ;;  %v1832_v15 = vmul.f32 %v5848_v38, %v5849_v41  ;;  %v5852_v7 = vld [vmem:[#allocation102_spill] sm:$0xff] }
 0x63e   : > { %2320 = vrot.lane.b32.xlu2 %v2281_v10, %s3355_s13 }
 0x63f   : > { %v2157_v16 = vadd.f32 %v4932_v58, %v1836_v47  ;;  %v5855_v47 = vld [vmem:[#allocation106_spill] sm:$0xff] }
 0x641   : > { %v2256_v32 = vpop.permute.xlu1 %2255 }
 0x642   : > { %v2285_v50 = vmul.f32 %v2256_v32, %v2205_v9  ;;  %v2228_v8 = vpop.permute.xlu0 %2227  ;;  %v2545_v32 = vld [vmem:[%s5525_s4 + $0x78] sm:$0xff] }
 0x643   : > { %v2278_v59 = vmul.f32 %v2228_v8, %v2198_v45 }
 0x644   : > { %2328 = vrot.lane.b32.xlu1 %v2285_v50, %s3355_s13  ;;  %v2155_v50 = vadd.f32 %v4946_v13, %v1834_v19  ;;  %v2542_v13 = vld [vmem:[%s5525_s4 + $0x60] sm:$0xff] }
 0x645   : > { %2314 = vrot.lane.b32.xlu0 %v2278_v59, %s3355_s13  ;;  %v2156_v59 = vadd.f32 %v4932_v58, %v1835_v29  ;;  %v5847_v58 = vld [vmem:[#allocation27_spill] sm:$0xff] }
 0x646   : > { %2310 = vrot.lane.b32.xlu2 %v2276_v46, %s3355_s13  ;;  %v5854_v29 = vld [vmem:[#allocation151_spill] sm:$0xff] }
 0x649   : > { %v2236_v51 = vpop.permute.xlu1 %2235 }
 0x64a   : > { %v2280_v55 = vmul.f32 %v2236_v51, %v2200_v57 }
 0x64b   : > { %v5000_v26 = vpop.permute.xlu0 %692 }
 0x64c   : > { %2318 = vrot.lane.b32.xlu1 %v2280_v55, %s3355_s13 }
 0x64d   : > { %2312 = vrot.lane.b32.xlu0 %v2277_v61, %s3355_s13  ;;  %v2543_v61 = vld [vmem:[%s5525_s4 + $0x68] sm:$0xff] }
 0x64e   : > { %2308 = vrot.lane.b32.xlu2 %v2275_v3, %s3355_s13  ;;  %v5844_v3 = vld [vmem:[#allocation21_spill] sm:$0xff] }
 0x651   : > { %v2232_v52 = vpop.permute.xlu1 %2231 }
 0x652   : > { %v2279_v23 = vmul.f32 %v2232_v52, %v2199_v56  ;;  %v5845_v56 = vld [vmem:[#allocation145_spill] sm:$0xff] }
 0x653   : > { %v5002_v6 = vpop.permute.xlu0 %712  ;;  %v1829_v52 = vmul.f32 %v5845_v56, %v5844_v3 }
 0x654   : > { %2316 = vrot.lane.b32.xlu1 %v2279_v23, %s3355_s13  ;;  %v5846_v23 = vld [vmem:[#allocation95_spill] sm:$0xff] }
 0x655   : > { %v1830_v4 = vmul.f32 %v5845_v56, %v5846_v23  ;;  %v2150_v28 = vadd.f32 %v4922_v0, %v1829_v52  ;;  %v5856_v56 = vld [vmem:[#allocation49_spill] sm:$0xff] }
 0x656   : > { %v5857_v52 = vld [vmem:[#allocation149_spill] sm:$0xff] }
 0x657   : > { %v1821_v23 = vmul.f32 %v5857_v52, %v5856_v56 }
 0x65b   : > { %v5010_v25 = vpop.permute.xlu0 %724 }
 0x65c   : > { %2306 = vrot.lane.b32.xlu1 %v2274_v14, %s3355_s13  ;;  %v1831_v14 = vmul.f32 %v5848_v38, %v5847_v58  ;;  %s295_s13 = scalar_lea.vmem [#allocation2], %s2963_s18 }
 0x65d   : > { %s2871_s16 = sshll.u32 %s295_s13, 4  ;;  %s2872_s16 = int_to_ptr.vmem [resolvable:$true] %s2871_s16 }
 0x663   : > { %v5017_v21 = vpop.permute.xlu0 %736 }
 0x66b   : > { %v5019_v22 = vpop.permute.xlu0 %748 }
 0x680   : > { %v2335_v36 = vpop.permute.xlu2 %2334 }
 0x681   : > { %v2382_v49 = vadd.f32 %v2335_v36, %v2158_v34  ;;  %v2383_v12 = vadd.f32 %v2335_v36, %v2159_v20  ;;  %v2151_v34 = vadd.f32 %v4922_v0, %v1830_v4  ;;  %v2152_v36 = vadd.f32 %v4943_v40, %v1831_v14  ;;  %v2540_v0 = vld [vmem:[%s5525_s4 + $0x50] sm:$0xff] }
 0x682   : > { %v5858_v4 = vld [vmem:[#allocation90_spill] sm:$0xff] }
 0x683   : > { %2476 = vrot.lane.b32.xlu1 %v2383_v12, %s3353_s22  ;;  %2474 = vrot.lane.b32.xlu0 %v2382_v49, %s3353_s22  ;;  %v1822_v38 = vmul.f32 %v5857_v52, %v5858_v4  ;;  %v5860_v14 = vld [vmem:[#allocation142_spill] sm:$0xff]  ;;  %v2535_v4 = vld [vmem:[%s5525_s4 + $0x28] sm:$0xff] }
 0x688   : > { %v2333_v8 = vpop.permute.xlu2 %2332 }
 0x689   : > { %v2380_v51 = vadd.f32 %v2333_v8, %v2156_v59  ;;  %v2381_v55 = vadd.f32 %v2333_v8, %v2157_v16  ;;  %v1828_v16 = vmul.f32 %v5854_v29, %v5855_v47 }
 0x68b   : > { %2618 = vperm.xlu1 %3183, %v2544_v31  }
 0x69f   : > { %v2337_v10 = vpop.permute.xlu0 %2336 }
 0x6a0   : > { %v2384_v9 = vadd.f32 %v2337_v10, %v2160_v43  ;;  %v2385_v45 = vadd.f32 %v2337_v10, %v2161_v11  ;;  %v2153_v43 = vadd.f32 %v4943_v40, %v1832_v15  ;;  %v2541_v10 = vld [vmem:[%s5525_s4 + $0x58] sm:$0xff]  ;;  %v5853_v40 = vld [vmem:[#allocation61_spill] sm:$0xff]  ;;  %v5861_v15 = vld [vmem:[#allocation94_spill] sm:$0xff] }
 0x6a2   : > { %2478 = vrot.lane.b32.xlu2 %v2384_v9, %s3353_s22  ;;  %2480 = vrot.lane.b32.xlu0 %v2385_v45, %s3353_s22  ;;  %v5850_v9 = vld [vmem:[#allocation57_spill] sm:$0xff]  ;;  %v5851_v45 = vld [vmem:[#allocation148_spill] sm:$0xff] }
 0x6a3   : > { %v1826_v19 = vmul.f32 %v5851_v45, %v5852_v7  ;;  %v5862_v7 = vld [vmem:[#allocation41_spill] sm:$0xff] }
 0x6a5   : > { %v2147_v59 = vadd.f32 %v4934_v39, %v1826_v19  ;;  %v5863_v19 = vld [vmem:[#allocation139_spill] sm:$0xff] }
 0x6a7   : > { %v2327_v27 = vpop.permute.xlu0 %2326 }
 0x6a8   : > { %v2374_v49 = vadd.f32 %v2327_v27, %v2150_v28  ;;  %v2375_v12 = vadd.f32 %v2327_v27, %v2151_v34  ;;  %v2142_v34 = vadd.f32 %v4930_v60, %v1821_v23 }
 0x6aa   : > { %2623 = vperm.xlu2 %3184, %v2545_v32   ;;  %v1825_v32 = vmul.f32 %v5851_v45, %v5850_v9 }
 0x6ac   : > { %v2146_v8 = vadd.f32 %v4934_v39, %v1825_v32  ;;  %v2538_v39 = vld [vmem:[%s5525_s4 + $0x40] sm:$0xff] }
 0x6ae   : > { %v2331_v46 = vpop.permute.xlu1 %2330 }
 0x6af   : > { %v2378_v57 = vadd.f32 %v2331_v46, %v2154_v30  ;;  %v2379_v1 = vadd.f32 %v2331_v46, %v2155_v50  ;;  %v1827_v30 = vmul.f32 %v5854_v29, %v5853_v40  ;;  %v2323_v50 = vpop.permute.xlu2 %2322  ;;  %v2325_v46 = vpop.permute.xlu0 %2324  ;;  %v1817_v29 = vmul.f32 %v5863_v19, %v5862_v7 }
 0x6b1   : > { %2468 = vrot.lane.b32.xlu1 %v2379_v1, %s3353_s22  ;;  %2466 = vrot.lane.b32.xlu0 %v2378_v57, %s3353_s22  ;;  %v2148_v57 = vadd.f32 %v4939_v53, %v1827_v30  ;;  %v2370_v1 = vadd.f32 %v2323_v50, %v2146_v8  ;;  %v5864_v30 = vld [vmem:[#allocation79_spill] sm:$0xff]  ;;  %v5866_v8 = vld [vmem:[#allocation146_spill] sm:$0xff] }
 0x6b2   : > { %2470 = vrot.lane.b32.xlu2 %v2380_v51, %s3353_s22  ;;  %v2371_v51 = vadd.f32 %v2323_v50, %v2147_v59  ;;  %v5865_v50 = vld [vmem:[#allocation45_spill] sm:$0xff] }
 0x6b3   : > { %v2372_v2 = vadd.f32 %v2325_v46, %v2148_v57  ;;  %v1819_v59 = vmul.f32 %v5866_v8, %v5865_v50  ;;  %v2138_v57 = vadd.f32 %v4902_v42, %v1817_v29 }
 0x6b6   : > { %v2329_v20 = vpop.permute.xlu1 %2328 }
 0x6b7   : > { %v2376_v31 = vadd.f32 %v2329_v20, %v2152_v36  ;;  %v2377_v11 = vadd.f32 %v2329_v20, %v2153_v43  ;;  %v2143_v20 = vadd.f32 %v4930_v60, %v1822_v38  ;;  %v2321_v36 = vpop.permute.xlu2 %2320  ;;  %v1824_v43 = vmul.f32 %v5860_v14, %v5861_v15  ;;  %v2536_v60 = vld [vmem:[%s5525_s4 + $0x30] sm:$0xff]  ;;  %v5868_v38 = vld [vmem:[#allocation73_spill] sm:$0xff] }
 0x6b9   : > { %2608 = vperm.xlu1 %3183, %v2542_v13   ;;  %2472 = vrot.lane.b32.xlu0 %v2381_v55, %s3353_s22  ;;  %v2149_v13 = vadd.f32 %v4939_v53, %v1828_v16  ;;  %v5859_v53 = vld [vmem:[#allocation53_spill] sm:$0xff] }
 0x6ba   : > { %2613 = vperm.xlu2 %3184, %v2543_v61   ;;  %v2539_v61 = vld [vmem:[%s5525_s4 + $0x48] sm:$0xff]  ;;  %v1823_v27 = vmul.f32 %v5860_v14, %v5859_v53  ;;  %v685_v14 = vmul.f32 %v4816_v17, %v5868_v38 }
 0x6bb   : > { %v2373_v55 = vadd.f32 %v2325_v46, %v2149_v13  ;;  %v2315_v46 = vpop.permute.xlu0 %2314  ;;  %v5867_v13 = vld [vmem:[#allocation85_spill] sm:$0xff] }
 0x6be   : > { %v2319_v28 = vpop.permute.xlu1 %2318 }
 0x6bf   : > { %v2311_v32 = vpop.permute.xlu2 %2310 }
 0x6c1   : > { %2460 = vrot.lane.b32.xlu1 %v2375_v12, %s3353_s22  ;;  %2458 = vrot.lane.b32.xlu0 %v2374_v49, %s3353_s22  ;;  %v2144_v49 = vadd.f32 %v4911_v33, %v1823_v27  ;;  %v2366_v12 = vadd.f32 %v2319_v28, %v2142_v34  ;;  %v5870_v34 = vld [vmem:[#allocation136_spill] sm:$0xff] }
 0x6c2   : > { %2462 = vrot.lane.b32.xlu2 %v2376_v31, %s3353_s22  ;;  %v2367_v31 = vadd.f32 %v2319_v28, %v2143_v20  ;;  %v5869_v28 = vld [vmem:[#allocation31_spill] sm:$0xff] }
 0x6c3   : > { %v2368_v41 = vadd.f32 %v2321_v36, %v2144_v49  ;;  %v2313_v27 = vpop.permute.xlu0 %2312  ;;  %v5871_v20 = vld [vmem:[#allocation71_spill] sm:$0xff] }
 0x6c6   : > { %v2317_v45 = vpop.permute.xlu1 %2316 }
 0x6c9   : > { %2598 = vperm.xlu1 %3183, %v2540_v0   ;;  %2464 = vrot.lane.b32.xlu0 %v2377_v11, %s3353_s22  ;;  %v2145_v0 = vadd.f32 %v4911_v33, %v1824_v43  ;;  %v1818_v33 = vmul.f32 %v5863_v19, %v5864_v30  ;;  %v5874_v43 = vld [vmem:[#allocation36_spill] sm:$0xff]  ;;  %v5876_v19 = vld [vmem:[#allocation14_spill] sm:$0xff]  ;;  %v5877_v30 = vld [vmem:[#allocation91_spill] sm:$0xff] }
 0x6ca   : > { %2603 = vperm.xlu2 %3184, %v2541_v10   ;;  %v2537_v10 = vld [vmem:[%s5525_s4 + $0x38] sm:$0xff]  ;;  %v636_v29 = vmul.f32 %v5876_v19, %v5792_v63 }
 0x6cb   : > { %v2369_v11 = vadd.f32 %v2321_v36, %v2145_v0  ;;  %v1814_v36 = vmul.f32 %v5870_v34, %v5871_v20  ;;  %v5875_v0 = vld [vmem:[#allocation147_spill] sm:$0xff] }
 0x6cc   : > { %v5880_v63 = vld [vmem:[#allocation75_spill] sm:$0xff] }
 0x6cd   : > { %v2533_v20 = vld [vmem:[%s5525_s4 + $0x18] sm:$0xff] }
 0x6d1   : > { %2452 = vrot.lane.b32.xlu1 %v2371_v51, %s3353_s22  ;;  %2450 = vrot.lane.b32.xlu0 %v2370_v1, %s3353_s22  ;;  %v2139_v1 = vadd.f32 %v4902_v42, %v1818_v33  ;;  %v2140_v51 = vadd.f32 %v4924_v24, %v1819_v59  ;;  %v2534_v42 = vld [vmem:[%s5525_s4 + $0x20] sm:$0xff] }
 0x6d2   : > { %2454 = vrot.lane.b32.xlu2 %v2372_v2, %s3353_s22  ;;  %v2362_v2 = vadd.f32 %v2315_v46, %v2138_v57 }
 0x6d3   : > { %v2363_v47 = vadd.f32 %v2315_v46, %v2139_v1  ;;  %v2364_v16 = vadd.f32 %v2317_v45, %v2140_v51 }
 0x6d9   : > { %2588 = vperm.xlu1 %3183, %v2538_v39   ;;  %2456 = vrot.lane.b32.xlu0 %v2373_v55, %s3353_s22  ;;  %v1820_v39 = vmul.f32 %v5866_v8, %v5867_v13  ;;  %v2307_v55 = vpop.permute.xlu1 %2306  ;;  %v1816_v13 = vmul.f32 %v5875_v0, %v5880_v63  ;;  %v5891_v63 = vld [vmem:[#allocation141_spill] sm:$0xff] }
 0x6da   : > { %2593 = vperm.xlu2 %3184, %v2539_v61   ;;  %v5134_v61 = vpop.permute.xlu2 %2308 }
 0x6db   : > { %v2141_v52 = vadd.f32 %v4924_v24, %v1820_v39  ;;  %v1813_v24 = vmul.f32 %v5870_v34, %v5869_v28  ;;  %v2532_v34 = vld [vmem:[%s5525_s4 + $0x10] sm:$0xff] }
 0x6dd   : > { %v2365_v23 = vadd.f32 %v2317_v45, %v2141_v52  ;;  %v2135_v45 = vadd.f32 %v4913_v35, %v1814_v36 }
 0x6df   : > { %v2359_v46 = vadd.f32 %v2311_v32, %v2135_v45  ;;  %v5887_v45 = vld [vmem:[#allocation25_spill] sm:$0xff] }
 0x6e1   : > { %2444 = vrot.lane.b32.xlu1 %v2367_v31, %s3353_s22  ;;  %2442 = vrot.lane.b32.xlu0 %v2366_v12, %s3353_s22  ;;  %v5872_v12 = vld [vmem:[#allocation38_spill] sm:$0xff] }
 0x6e2   : > { %2446 = vrot.lane.b32.xlu2 %v2368_v41, %s3353_s22  ;;  %v765_v31 = vmul.f32 %v5872_v12, %v685_v14  ;;  %v5873_v41 = vld [vmem:[#allocation77_spill] sm:$0xff] }
 0x6e3   : > { %v830_v15 = vmul.f32 %v4962_v5, %v5873_v41  ;;  %v5884_v41 = vld [vmem:[#allocation143_spill] sm:$0xff] }
 0x6e4   : > { %v781_v57 = vadd.f32 %v765_v31, %v636_v29  ;;  %v5883_v31 = vld [vmem:[#allocation18_spill] sm:$0xff] }
 0x6e5   : > { %v910_v33 = vmul.f32 %v5877_v30, %v830_v15  ;;  %v1809_v15 = vmul.f32 %v5884_v41, %v5883_v31 }
 0x6e9   : > { %2578 = vperm.xlu1 %3183, %v2536_v60   ;;  %2448 = vrot.lane.b32.xlu0 %v2369_v11, %s3353_s22  ;;  %v1815_v60 = vmul.f32 %v5875_v0, %v5874_v43  ;;  %v5885_v0 = vld [vmem:[#allocation63_spill] sm:$0xff] }
 0x6ea   : > { %2583 = vperm.xlu2 %3184, %v2537_v10   ;;  %v2134_v10 = vadd.f32 %v4913_v35, %v1813_v24  ;;  %v926_v35 = vadd.f32 %v910_v33, %v781_v57 }
 0x6eb   : > { %v2136_v8 = vadd.f32 %v4920_v18, %v1815_v60  ;;  %v5886_v60 = vld [vmem:[#allocation82_spill] sm:$0xff] }
 0x6ec   : > { %v2358_v59 = vadd.f32 %v2311_v32, %v2134_v10  ;;  %v831_v10 = vmul.f32 %v4962_v5, %v5886_v60  ;;  %v5895_v60 = vld [vmem:[#allocation47_spill] sm:$0xff] }
 0x6ed   : > { %v2360_v1 = vadd.f32 %v2313_v27, %v2136_v8 }
 0x6f1   : > { %2436 = vrot.lane.b32.xlu1 %v2363_v47, %s3353_s22  ;;  %2434 = vrot.lane.b32.xlu0 %v2362_v2, %s3353_s22  ;;  %v5878_v2 = vld [vmem:[#allocation140_spill] sm:$0xff]  ;;  %v5879_v47 = vld [vmem:[#allocation130_spill] sm:$0xff] }
 0x6f2   : > { %2438 = vrot.lane.b32.xlu2 %v2364_v16, %s3353_s22  ;;  %v1711_v16 = vsel %vm1120_vm2, %v5879_v47, %v5878_v2 }
 0x6f3   : > { %v1743_v32 = vadd.f32 %v1711_v16, %v926_v35  ;;  %v5890_v35 = vld [vmem:[#allocation133_spill] sm:$0xff] }
 0x6f5   : > { %v2477_v49 = vpop.permute.xlu1 %2476  ;;  %v2475_v51 = vpop.permute.xlu0 %2474 }
 0x6f6   : > { %v2496_v39 = vsel %vm1905_vm3, %v2475_v51, %v2477_v49 }
 0x6f7   : > { %v2528_v14 = vadd.f32 %v2496_v39, %v1743_v32 }
 0x6f9   : > { %2568 = vperm.xlu1 %3183, %v2534_v42   ;;  %2440 = vrot.lane.b32.xlu0 %v2365_v23, %s3353_s22  ;;  %v2137_v42 = vadd.f32 %v4920_v18, %v1816_v13  ;;  %v5882_v18 = vld [vmem:[#allocation51_spill] sm:$0xff] }
 0x6fa   : > { %2573 = vperm.xlu2 %3184, %v2535_v4   ;;  %v5881_v4 = vld [vmem:[#allocation78_spill] sm:$0xff]  ;;  %v637_v12 = vmul.f32 %v5882_v18, %v5795_v54  ;;  %v2130_v54 = vadd.f32 %v4904_v44, %v1809_v15  ;;  %v5892_v13 = vld [vmem:[#allocation67_spill] sm:$0xff] }
 0x6fb   : > { %v686_v38 = vmul.f32 %v4816_v17, %v5881_v4  ;;  %v2361_v24 = vadd.f32 %v2313_v27, %v2137_v42  ;;  %v1810_v27 = vmul.f32 %v5884_v41, %v5885_v0 }
 0x6fc   : > { %v2479_v11 = vpop.permute.xlu2 %2478 }
 0x6fd   : > { %v2619_v23 = vpop.permute.xlu1 %2618  ;;  %v766_v36 = vmul.f32 %v5019_v22, %v686_v38  ;;  %v5888_v22 = vld [vmem:[#allocation144_spill] sm:$0xff]  ;;  %v2131_v8 = vadd.f32 %v4904_v44, %v1810_v27  ;;  %v1712_v44 = vsel %vm1120_vm2, %v5891_v63, %v5890_v35 }
 0x6fe   : > { %v5180_v49 = vadd.f32 %v2619_v23, %v2528_v14  ;;  %v1811_v19 = vmul.f32 %v5888_v22, %v5887_v45  ;;  %v1812_v39 = vmul.f32 %v5888_v22, %v5892_v13  ;;  %v2798_v22 = vld [vmem:[%s5527_s6] sm:$0xff] }
 0x6ff   : > { %v782_v29 = vadd.f32 %v766_v36, %v637_v12  ;;  %v2355_v51 = vadd.f32 %v2307_v55, %v2131_v8 }
 0x700   : > { %v2672_v30 = vmul.f32 0.044715, %v5180_v49  ;;  %v2132_v57 = vadd.f32 %v4897_v48, %v1811_v19  ;;  %v2133_v23 = vadd.f32 %v4897_v48, %v1812_v39  ;;  %v5893_v48 = vld [vmem:[#allocation86_spill] sm:$0xff] }
 0x701   : > { %2428 = vrot.lane.b32.xlu1 %v2359_v46, %s3353_s22  ;;  %2426 = vrot.lane.b32.xlu0 %v2358_v59, %s3353_s22  ;;  %v5889_v59 = vld [vmem:[#allocation97_spill] sm:$0xff]  ;;  %v5901_v39 = vld [vmem:[#allocation66_spill] sm:$0xff] }
 0x702   : > { %2430 = vrot.lane.b32.xlu2 %v2360_v1, %s3353_s22  ;;  %v911_v46 = vmul.f32 %v5889_v59, %v831_v10  ;;  %v2354_v1 = vadd.f32 %v2307_v55, %v2130_v54  ;;  %v2356_v47 = vadd.f32 %v5134_v61, %v2132_v57  ;;  %v2688_v16 = vmul.f32 %v2672_v30, %v5180_v49  ;;  %v2799_v10 = vld [vmem:[%s5527_s6 + $0x8] sm:$0xff]  ;;  %v2800_v30 = vld [vmem:[%s5527_s6 + $0x10] sm:$0xff]  ;;  %v5897_v59 = vld [vmem:[#allocation80_spill] sm:$0xff] }
 0x703   : > { %v5898_v57 = vld [vmem:[#allocation69_spill] sm:$0xff] }
 0x704   : > { %v2624_v52 = vpop.permute.xlu2 %2623  ;;  %v927_v2 = vadd.f32 %v911_v46, %v782_v29  ;;  %v2704_v42 = vmul.f32 %v2688_v16, %v5180_v49  ;;  %v5896_v29 = vld [vmem:[#allocation76_spill] sm:$0xff]  ;;  %v829_v46 = vmul.f32 %v4962_v5, %v5897_v59 }
 0x706   : > { %v1744_v32 = vadd.f32 %v1712_v44, %v927_v2  ;;  %v2720_v18 = vadd.f32 %v2704_v42, %v5180_v49  ;;  %v5899_v2 = vld [vmem:[#allocation44_spill] sm:$0xff]  ;;  %v2801_v42 = vld [vmem:[%s5527_s6 + $0x18] sm:$0xff] }
 0x707   : > { %v5900_v44 = vld [vmem:[#allocation20_spill] sm:$0xff] }
 0x708   : > { %v2736_v0 = vmul.f32 0.7978846, %v2720_v18  ;;  %v635_v13 = vmul.f32 %v5900_v44, %v5789_v62  ;;  %v5905_v18 = vld [vmem:[#allocation137_spill] sm:$0xff] }
 0x709   : > { %2558 = vperm.xlu1 %3183, %v2532_v34   ;;  %2432 = vrot.lane.b32.xlu0 %v2361_v24, %s3353_s22  ;;  %v2530_v34 = vld [vmem:[%s5525_s4] sm:$0xff]  ;;  %v2357_v24 = vadd.f32 %v5134_v61, %v2133_v23  ;;  %v5894_v61 = vld [vmem:[#allocation89_spill] sm:$0xff] }
 0x70a   : > { %2563 = vperm.xlu2 %3184, %v2533_v20   ;;  %v2531_v20 = vld [vmem:[%s5525_s4 + $0x8] sm:$0xff]  ;;  %v828_v27 = vmul.f32 %v4962_v5, %v5894_v61  ;;  %3187 = vtanh.f32 %v2736_v0 }
 0x70c   : > { %v5194_v33 = vpop.permute.xlu2 %2470 }
 0x711   : > { %2420 = vrot.lane.b32.xlu1 %v2355_v51, %s3353_s22  ;;  %2418 = vrot.lane.b32.xlu0 %v2354_v1, %s3353_s22  ;;  %v908_v1 = vmul.f32 %v5898_v57, %v828_v27 }
 0x712   : > { %2422 = vrot.lane.b32.xlu2 %v2356_v47, %s3353_s22 }
 0x714   : > { %v2481_v55 = vpop.permute.xlu0 %2480  ;;  %v5213_v14 = vpop.permute.xlu2 %2613 }
 0x715   : > { %v2497_v4 = vsel %vm1905_vm3, %v2479_v11, %v2481_v55  ;;  %v683_v11 = vmul.f32 %v4816_v17, %v5893_v48  ;;  %v3188_v55 = vpop.eup %3187 }
 0x716   : > { %v2529_v38 = vadd.f32 %v2497_v4, %v1744_v32  ;;  %v909_v32 = vmul.f32 %v5901_v39, %v829_v46  ;;  %v5902_v4 = vld [vmem:[#allocation127_spill] sm:$0xff]  ;;  %v5907_v46 = vld [vmem:[#allocation65_spill] sm:$0xff] }
 0x717   : > { %v763_v41 = vmul.f32 %v5017_v21, %v683_v11  ;;  %v684_v21 = vmul.f32 %v4816_v17, %v5896_v29  ;;  %v826_v57 = vmul.f32 %v4962_v5, %v5907_v46 }
 0x718   : > { %v2641_v36 = vadd.f32 %v2624_v52, %v2529_v38  ;;  %v634_v52 = vmul.f32 %v5895_v60, %v5786_v37  ;;  %v5903_v38 = vld [vmem:[#allocation135_spill] sm:$0xff] }
 0x719   : > { %2548 = vperm.xlu1 %3183, %v2530_v34   ;;  %2424 = vrot.lane.b32.xlu0 %v2357_v24, %s3353_s22  ;;  %v764_v47 = vmul.f32 %v5899_v2, %v684_v21  ;;  %v1709_v34 = vsel %vm1120_vm2, %v5903_v38, %v5902_v4 }
 0x71a   : > { %2553 = vperm.xlu2 %3184, %v2531_v20   ;;  %v2673_v12 = vmul.f32 0.044715, %v2641_v36  ;;  %v779_v54 = vadd.f32 %v763_v41, %v634_v52  ;;  %v5904_v20 = vld [vmem:[#allocation138_spill] sm:$0xff]  ;;  %v2656_v52 = vmul.f32 0.5, %v5180_v49 }
 0x71b   : > { %v780_v23 = vadd.f32 %v764_v47, %v635_v13  ;;  %v1710_v48 = vsel %vm1120_vm2, %v5905_v18, %v5904_v20  ;;  %v5909_v47 = vld [vmem:[#allocation40_spill] sm:$0xff]  ;;  %v5911_v13 = vld [vmem:[#allocation17_spill] sm:$0xff] }
 0x71c   : > { %v2689_v15 = vmul.f32 %v2673_v12, %v2641_v36  ;;  %v5242_v8 = vpop.permute.xlu2 %2462  ;;  %v924_v63 = vadd.f32 %v908_v1, %v779_v54  ;;  %v2768_v12 = vadd.f32 1.0, %v3188_v55  ;;  %v632_v39 = vmul.f32 %v5911_v13, %v5844_v3  ;;  %v5914_v18 = vld [vmem:[#allocation12_spill] sm:$0xff] }
 0x71d   : > { %v925_v62 = vadd.f32 %v909_v32, %v780_v23  ;;  %v5912_v32 = vld [vmem:[#allocation60_spill] sm:$0xff] }
 0x71e   : > { %v2705_v19 = vmul.f32 %v2689_v15, %v2641_v36  ;;  %v1741_v11 = vadd.f32 %v1709_v34, %v924_v63  ;;  %v5910_v63 = vld [vmem:[#allocation84_spill] sm:$0xff]  ;;  %v906_v55 = vmul.f32 %v5912_v32, %v826_v57 }
 0x71f   : > { %v1742_v61 = vadd.f32 %v1710_v48, %v925_v62  ;;  %v633_v48 = vmul.f32 %v5914_v18, %v5847_v58  ;;  %v5916_v3 = vld [vmem:[#allocation132_spill] sm:$0xff] }
 0x720   : > { %v2721_v37 = vadd.f32 %v2705_v19, %v2641_v36  ;;  %v5906_v19 = vld [vmem:[#allocation62_spill] sm:$0xff] }
 0x721   : > { %2809 = vperm.xlu1 %3183, %v2799_v10   ;;  %2804 = vperm.xlu0 %3182, %v2798_v22   ;;  %v2657_v10 = vmul.f32 0.5, %v2641_v36  ;;  %v681_v29 = vmul.f32 %v4816_v17, %v5906_v19  ;;  %v5919_v19 = vld [vmem:[#allocation26_spill] sm:$0xff] }
 0x722   : > { %2814 = vperm.xlu2 %3184, %v2800_v30   ;;  %v2737_v51 = vmul.f32 0.7978846, %v2721_v37  ;;  %v2784_v37 = vmul.f32 %v2768_v12, %v2656_v52  ;;  %v5917_v12 = vld [vmem:[#allocation131_spill] sm:$0xff] }
 0x723   : > { %v2469_v16 = vpop.permute.xlu1 %2468  ;;  %v2467_v35 = vpop.permute.xlu0 %2466 }
 0x724   : > { %3189 = vtanh.f32 %v2737_v51  ;;  %v2494_v24 = vsel %vm1905_vm3, %v2467_v35, %v2469_v16  ;;  %v5261_v15 = vpop.permute.xlu2 %2603  ;;  %v5908_v51 = vld [vmem:[#allocation81_spill] sm:$0xff]  ;;  %v761_v16 = vmul.f32 %v5909_v47, %v681_v29 }
 0x725   : > { %v2526_v0 = vadd.f32 %v2494_v24, %v1741_v11  ;;  %v682_v49 = vmul.f32 %v4816_v17, %v5908_v51  ;;  %v5913_v17 = vld [vmem:[#allocation33_spill] sm:$0xff]  ;;  %v5915_v11 = vld [vmem:[#allocation58_spill] sm:$0xff]  ;;  %v5920_v51 = vld [vmem:[#allocation111_spill] sm:$0xff] }
 0x726   : > { %v777_v34 = vadd.f32 %v761_v16, %v632_v39  ;;  %v5921_v16 = vld [vmem:[#allocation113_spill] sm:$0xff] }
 0x727   : > { %v762_v23 = vmul.f32 %v5913_v17, %v682_v49  ;;  %v5923_v17 = vld [vmem:[#allocation10_spill] sm:$0xff] }
 0x729   : > { %2819 = vperm.xlu1 %3183, %v2801_v42  }
 0x72a   : > { %v3190_v41 = vpop.eup %3189 }
 0x72b   : > { %v2609_v27 = vpop.permute.xlu1 %2608  ;;  %v2473_v60 = vpop.permute.xlu0 %2472  ;;  %v2769_v22 = vadd.f32 1.0, %v3190_v41  ;;  %v1707_v41 = vsel %vm1120_vm2, %v5917_v12, %v5916_v3 }
 0x72c   : > { %v5266_v21 = vadd.f32 %v2609_v27, %v2526_v0  ;;  %v2495_v30 = vsel %vm1905_vm3, %v5194_v33, %v2473_v60  ;;  %v827_v33 = vmul.f32 %v4962_v5, %v5910_v63  ;;  %v5285_v24 = vpop.permute.xlu2 %2454  ;;  %v778_v60 = vadd.f32 %v762_v23, %v633_v48  ;;  %v5922_v63 = vld [vmem:[#allocation114_spill] sm:$0xff] }
 0x72d   : > { %v2527_v54 = vadd.f32 %v2495_v30, %v1742_v61  ;;  %v2785_v59 = vmul.f32 %v2769_v22, %v2657_v10  ;;  %v922_v61 = vadd.f32 %v906_v55, %v777_v34  ;;  %v5918_v22 = vld [vmem:[#allocation134_spill] sm:$0xff]  ;;  %v630_v23 = vmul.f32 %v5923_v17, %v5850_v9 }
 0x72e   : > { %v2670_v1 = vmul.f32 0.044715, %v5266_v21  ;;  %v907_v62 = vmul.f32 %v5915_v11, %v827_v33  ;;  %v1708_v29 = vsel %vm1120_vm2, %v5919_v19, %v5918_v22  ;;  %v5926_v48 = vld [vmem:[#allocation118_spill] sm:$0xff] }
 0x72f   : > { %v2639_v36 = vadd.f32 %v5213_v14, %v2527_v54  ;;  %v2797_v2 = vpack.c.bf16 %v2785_v59, %v2784_v37  ;;  %v1739_v30 = vadd.f32 %v1707_v41, %v922_v61  ;;  %v825_v11 = vmul.f32 %v4962_v5, %v5926_v48  ;;  %v5935_v48 = vld [vmem:[#allocation39_spill] sm:$0xff] }
 0x730   : > { %v2686_v35 = vmul.f32 %v2670_v1, %v5266_v21  ;;  %v923_v58 = vadd.f32 %v907_v62, %v778_v60  ;;  %v5301_v1 = vld [vmem:[%s5522_s1] ss:$0 sm:$0xff]  ;;  %v5927_v62 = vld [vmem:[#allocation43_spill] sm:$0xff] }
 0x731   : > { %2834 = vmatpush.bf16.msrb.mxu2 %v2797_v2  ;;  %v2671_v44 = vmul.f32 0.044715, %v2639_v36  ;;  %v679_v49 = vmul.f32 %v5301_v1, %v5920_v51  ;;  %v680_v33 = vmul.f32 %v5301_v1, %v5922_v63  ;;  %v631_v3 = vmul.f32 %v5927_v62, %v5853_v40  ;;  %v5930_v40 = vld [vmem:[#allocation116_spill] sm:$0xff] }
 0x732   : > { %v2702_v42 = vmul.f32 %v2686_v35, %v5266_v21  ;;  %v1740_v59 = vadd.f32 %v1708_v29, %v923_v58  ;;  %v824_v35 = vmul.f32 %v4962_v5, %v5921_v16  ;;  %v2655_v12 = vmul.f32 0.5, %v2639_v36  ;;  %v5928_v29 = vld [vmem:[#allocation64_spill] sm:$0xff] }
 0x733   : > { %v2461_v14 = vpop.permute.xlu1 %2460  ;;  %v2459_v4 = vpop.permute.xlu0 %2458  ;;  %v2687_v38 = vmul.f32 %v2671_v44, %v2639_v36  ;;  %v760_v55 = vmul.f32 %v5010_v25, %v680_v33  ;;  %v5929_v58 = vld [vmem:[#allocation128_spill] sm:$0xff]  ;;  %v5932_v33 = vld [vmem:[#allocation22_spill] sm:$0xff] }
 0x734   : > { %v2718_v20 = vadd.f32 %v2702_v42, %v5266_v21  ;;  %v2492_v52 = vsel %vm1905_vm3, %v2459_v4, %v2461_v14  ;;  %v2594_v39 = vpop.permute.xlu2 %2593  ;;  %v5924_v14 = vld [vmem:[#allocation28_spill] sm:$0xff] }
 0x735   : > { %v2703_v0 = vmul.f32 %v2687_v38, %v2639_v36  ;;  %v2524_v37 = vadd.f32 %v2492_v52, %v1739_v30  ;;  %v905_v30 = vmul.f32 %v5928_v29, %v825_v11  ;;  %v628_v11 = vmul.f32 %v5935_v48, %v5856_v56  ;;  %v5939_v29 = vld [vmem:[#allocation35_spill] sm:$0xff] }
 0x736   : > { %v2734_v27 = vmul.f32 0.7978846, %v2718_v20  ;;  %v5925_v20 = vld [vmem:[#allocation54_spill] sm:$0xff] }
 0x737   : > { %v2719_v10 = vadd.f32 %v2703_v0, %v2639_v36  ;;  %v904_v18 = vmul.f32 %v5925_v20, %v824_v35  ;;  %v776_v0 = vadd.f32 %v760_v55, %v631_v3  ;;  %v5931_v35 = vld [vmem:[#allocation104_spill] sm:$0xff] }
 0x738   : > { %3191 = vtanh.f32 %v2734_v27  ;;  %v677_v63 = vmul.f32 %v5301_v1, %v5931_v35  ;;  %v5936_v3 = vld [vmem:[#allocation96_spill] sm:$0xff]  ;;  %v5942_v35 = vld [vmem:[#allocation121_spill] sm:$0xff] }
 0x739   : > { %v2735_v54 = vmul.f32 0.7978846, %v2719_v10 }
 0x73b   : > { %v2599_v46 = vpop.permute.xlu1 %2598  ;;  %v2465_v57 = vpop.permute.xlu0 %2464  ;;  %3193 = vtanh.f32 %v2735_v54  ;;  %v1705_v54 = vsel %vm1120_vm2, %v5930_v40, %v5929_v58 }
 0x73c   : > { %v5305_v2 = vadd.f32 %v2599_v46, %v2524_v37  ;;  %v2493_v47 = vsel %vm1905_vm3, %v5242_v8, %v2465_v57  ;;  %v759_v8 = vmul.f32 %v5924_v14, %v679_v49  ;;  %v921_v46 = vadd.f32 %v905_v30, %v776_v0 }
 0x73d   : > { %v2525_v44 = vadd.f32 %v2493_v47, %v1740_v59  ;;  %v5333_v47 = vpop.permute.xlu2 %2446  ;;  %v757_v14 = vmul.f32 %v5002_v6, %v677_v63  ;;  %v5943_v63 = vld [vmem:[#allocation115_spill] sm:$0xff] }
 0x73e   : > { %v3192_v13 = vpop.eup %3191  ;;  %v2668_v32 = vmul.f32 0.044715, %v5305_v2  ;;  %v775_v52 = vadd.f32 %v759_v8, %v630_v23  ;;  %v2652_v56 = vmul.f32 0.5, %v5305_v2 }
 0x73f   : > { %v2637_v42 = vadd.f32 %v5261_v15, %v2525_v44  ;;  %v2766_v4 = vadd.f32 1.0, %v3192_v13  ;;  %v2654_v15 = vmul.f32 0.5, %v5266_v21  ;;  %v5933_v44 = vld [vmem:[#allocation129_spill] sm:$0xff]  ;;  %v773_v6 = vadd.f32 %v757_v14, %v628_v11 }
 0x740   : > { %v2684_v38 = vmul.f32 %v2668_v32, %v5305_v2  ;;  %v920_v36 = vadd.f32 %v904_v18, %v775_v52  ;;  %v1706_v13 = vsel %vm1120_vm2, %v5933_v44, %v5932_v33  ;;  %v1703_v33 = vsel %vm1120_vm2, %v5943_v63, %v5942_v35  ;;  %v5955_v35 = vld [vmem:[#allocation50_spill] sm:$0xff] }
 0x741   : > { %v3194_v34 = vpop.eup %3193  ;;  %v2669_v25 = vmul.f32 0.044715, %v2637_v42  ;;  %v2782_v10 = vmul.f32 %v2766_v4, %v2654_v15  ;;  %v1738_v17 = vadd.f32 %v1706_v13, %v921_v46 }
 0x742   : > { %v2767_v41 = vadd.f32 1.0, %v3194_v34  ;;  %v2700_v9 = vmul.f32 %v2684_v38, %v5305_v2  ;;  %v1737_v49 = vadd.f32 %v1705_v54, %v920_v36  ;;  %v5934_v38 = vld [vmem:[#allocation108_spill] sm:$0xff] }
 0x743   : > { %v2453_v61 = vpop.permute.xlu1 %2452  ;;  %v2451_v27 = vpop.permute.xlu0 %2450  ;;  %v2685_v60 = vmul.f32 %v2669_v25, %v2637_v42  ;;  %v822_v34 = vmul.f32 %v4962_v5, %v5934_v38  ;;  %v678_v25 = vmul.f32 %v5301_v1, %v5936_v3 }
 0x744   : > { %v2783_v22 = vmul.f32 %v2767_v41, %v2655_v12  ;;  %v2716_v19 = vadd.f32 %v2700_v9, %v5305_v2  ;;  %v2490_v57 = vsel %vm1905_vm3, %v2451_v27, %v2453_v61  ;;  %v5938_v61 = vld [vmem:[#allocation59_spill] sm:$0xff] }
 0x745   : > { %v2701_v21 = vmul.f32 %v2685_v60, %v2637_v42  ;;  %v2522_v32 = vadd.f32 %v2490_v57, %v1737_v49  ;;  %v902_v27 = vmul.f32 %v5938_v61, %v822_v34  ;;  %v2584_v52 = vpop.permute.xlu2 %2583  ;;  %v5941_v57 = vld [vmem:[#allocation56_spill] sm:$0xff] }
 0x746   : > { %v2796_v37 = vpack.c.bf16 %v2783_v22, %v2782_v10  ;;  %v2732_v59 = vmul.f32 0.7978846, %v2716_v19  ;;  %v2653_v10 = vmul.f32 0.5, %v2637_v42 }
 0x747   : > { %v2717_v51 = vadd.f32 %v2701_v21, %v2637_v42  ;;  %v918_v54 = vadd.f32 %v902_v27, %v773_v6  ;;  %v5949_v27 = vld [vmem:[#allocation30_spill] sm:$0xff] }
 0x748   : > { %2835 = vmatpush.bf16.msrb.mxu2 %v2796_v37  ;;  %3195 = vtanh.f32 %v2732_v59  ;;  %v5940_v59 = vld [vmem:[#allocation15_spill] sm:$0xff] }
 0x749   : > { %v2733_v16 = vmul.f32 0.7978846, %v2717_v51  ;;  %v629_v46 = vmul.f32 %v5940_v59, %v5859_v53 }
 0x74b   : > { %v2589_v55 = vpop.permute.xlu1 %2588  ;;  %v2457_v23 = vpop.permute.xlu0 %2456  ;;  %3197 = vtanh.f32 %v2733_v16 }
 0x74c   : > { %v5341_v8 = vadd.f32 %v2589_v55, %v2522_v32  ;;  %v2491_v4 = vsel %vm1905_vm3, %v5285_v24, %v2457_v23  ;;  %v5937_v24 = vld [vmem:[#allocation99_spill] sm:$0xff]  ;;  %v5945_v55 = vld [vmem:[#allocation120_spill] sm:$0xff]  ;;  %v1735_v23 = vadd.f32 %v1703_v33, %v918_v54 }
 0x74d   : > { %v2523_v20 = vadd.f32 %v2491_v4, %v1738_v17  ;;  %v823_v0 = vmul.f32 %v4962_v5, %v5937_v24  ;;  %v5944_v32 = vld [vmem:[#allocation119_spill] sm:$0xff]  ;;  %v2439_v11 = vpop.permute.xlu2 %2438  ;;  %v5948_v24 = vld [vmem:[#allocation100_spill] sm:$0xff] }
 0x74e   : > { %v3196_v18 = vpop.eup %3195  ;;  %v2666_v62 = vmul.f32 0.044715, %v5341_v8  ;;  %v1704_v17 = vsel %vm1120_vm2, %v5945_v55, %v5944_v32  ;;  %v2650_v54 = vmul.f32 0.5, %v5341_v8 }
 0x74f   : > { %v2635_v15 = vadd.f32 %v2594_v39, %v2523_v20  ;;  %v2764_v12 = vadd.f32 1.0, %v3196_v18  ;;  %v758_v39 = vmul.f32 %v5939_v29, %v678_v25  ;;  %v903_v51 = vmul.f32 %v5941_v57, %v823_v0  ;;  %v5946_v18 = vld [vmem:[#allocation83_spill] sm:$0xff]  ;;  %v5951_v29 = vld [vmem:[#allocation52_spill] sm:$0xff] }
 0x750   : > { %v2682_v41 = vmul.f32 %v2666_v62, %v5341_v8  ;;  %v675_v48 = vmul.f32 %v5301_v1, %v5946_v18  ;;  %v5947_v25 = vld [vmem:[#allocation87_spill] sm:$0xff]  ;;  %v676_v0 = vmul.f32 %v5301_v1, %v5948_v24 }
 0x751   : > { %v3198_v9 = vpop.eup %3197  ;;  %v2667_v60 = vmul.f32 0.044715, %v2635_v15  ;;  %v2780_v21 = vmul.f32 %v2764_v12, %v2652_v56  ;;  %v774_v16 = vadd.f32 %v758_v39, %v629_v46  ;;  %v820_v6 = vmul.f32 %v4962_v5, %v5947_v25 }
 0x752   : > { %v2765_v22 = vadd.f32 1.0, %v3198_v9  ;;  %v2698_v19 = vmul.f32 %v2682_v41, %v5341_v8 }
 0x753   : > { %v2445_v30 = vpop.permute.xlu1 %2444  ;;  %v2443_v58 = vpop.permute.xlu0 %2442  ;;  %v2683_v40 = vmul.f32 %v2667_v60, %v2635_v15  ;;  %v919_v53 = vadd.f32 %v903_v51, %v774_v16  ;;  %v755_v60 = vmul.f32 %v5949_v27, %v675_v48  ;;  %v900_v39 = vmul.f32 %v5951_v29, %v820_v6  ;;  %v5954_v16 = vld [vmem:[#allocation9_spill] sm:$0xff]  ;;  %v5961_v27 = vld [vmem:[#allocation92_spill] sm:$0xff] }
 0x754   : > { %v2781_v36 = vmul.f32 %v2765_v22, %v2653_v10  ;;  %v2714_v37 = vadd.f32 %v2698_v19, %v5341_v8  ;;  %v2488_v44 = vsel %vm1905_vm3, %v2443_v58, %v2445_v30  ;;  %v5950_v19 = vld [vmem:[#allocation8_spill] sm:$0xff]  ;;  %v5952_v30 = vld [vmem:[#allocation103_spill] sm:$0xff] }
 0x755   : > { %v2699_v2 = vmul.f32 %v2683_v40, %v2635_v15  ;;  %v2520_v4 = vadd.f32 %v2488_v44, %v1735_v23  ;;  %v1736_v38 = vadd.f32 %v1704_v17, %v919_v53  ;;  %v821_v58 = vmul.f32 %v4962_v5, %v5952_v30  ;;  %v5956_v8 = vld [vmem:[#allocation123_spill] sm:$0xff]  ;;  %v2574_v32 = vpop.permute.xlu2 %2573 }
 0x756   : > { %v2795_v42 = vpack.c.bf16 %v2781_v36, %v2780_v21  ;;  %v2730_v49 = vmul.f32 0.7978846, %v2714_v37  ;;  %v2651_v21 = vmul.f32 0.5, %v2635_v15  ;;  %v5953_v37 = vld [vmem:[#allocation23_spill] sm:$0xff]  ;;  %v627_v5 = vmul.f32 %v5954_v16, %v5865_v50 }
 0x757   : > { %v2715_v13 = vadd.f32 %v2699_v2, %v2635_v15  ;;  %v756_v59 = vmul.f32 %v5953_v37, %v676_v0  ;;  %v901_v63 = vmul.f32 %v5955_v35, %v821_v58  ;;  %v5957_v15 = vld [vmem:[#allocation37_spill] sm:$0xff]  ;;  %v5410_v0 = vld [vmem:[%s5522_s1 + $0x1] ss:$0 sm:$0xff] }
 0x758   : > { %2836 = vmatpush.bf16.msrb.mxu2 %v2795_v42  ;;  %3199 = vtanh.f32 %v2730_v49  ;;  %v1701_v33 = vsel %vm1120_vm2, %v5957_v15, %v5956_v8 }
 0x759   : > { %v2731_v14 = vmul.f32 0.7978846, %v2715_v13  ;;  %v772_v23 = vadd.f32 %v756_v59, %v627_v5  ;;  %v5966_v59 = vld [vmem:[#allocation98_spill] sm:$0xff] }
 0x75b   : > { %v2579_v34 = vpop.permute.xlu1 %2578  ;;  %v2449_v20 = vpop.permute.xlu0 %2448  ;;  %3201 = vtanh.f32 %v2731_v14 }
 0x75c   : > { %v5372_v62 = vadd.f32 %v2579_v34, %v2520_v4  ;;  %v2489_v3 = vsel %vm1905_vm3, %v5333_v47, %v2449_v20  ;;  %v626_v47 = vmul.f32 %v5950_v19, %v5862_v7  ;;  %v5958_v4 = vld [vmem:[#allocation126_spill] sm:$0xff]  ;;  %v917_v20 = vadd.f32 %v901_v63, %v772_v23  ;;  %v5962_v19 = vld [vmem:[#allocation93_spill] sm:$0xff] }
 0x75d   : > { %v2521_v12 = vadd.f32 %v2489_v3, %v1736_v38  ;;  %v5959_v38 = vld [vmem:[#allocation117_spill] sm:$0xff] }
 0x75e   : > { %v3200_v41 = vpop.eup %3199  ;;  %v2664_v9 = vmul.f32 0.044715, %v5372_v62  ;;  %v771_v2 = vadd.f32 %v755_v60, %v626_v47  ;;  %v1702_v34 = vsel %vm1120_vm2, %v5959_v38, %v5958_v4  ;;  %v818_v60 = vmul.f32 %v5410_v0, %v5961_v27 }
 0x75f   : > { %v2633_v61 = vadd.f32 %v2584_v52, %v2521_v12  ;;  %v2762_v56 = vadd.f32 1.0, %v3200_v41  ;;  %v1734_v3 = vadd.f32 %v1702_v34, %v917_v20  ;;  %v5960_v12 = vld [vmem:[#allocation88_spill] sm:$0xff]  ;;  %v674_v47 = vmul.f32 %v5301_v1, %v5962_v19 }
 0x760   : > { %v2680_v10 = vmul.f32 %v2664_v9, %v5372_v62  ;;  %v916_v13 = vadd.f32 %v900_v39, %v771_v2  ;;  %v673_v41 = vmul.f32 %v5301_v1, %v5960_v12  ;;  %v5963_v39 = vld [vmem:[#allocation24_spill] sm:$0xff] }
 0x761   : > { %v3202_v22 = vpop.eup %3201  ;;  %v2665_v40 = vmul.f32 0.044715, %v2633_v61  ;;  %v2778_v42 = vmul.f32 %v2762_v56, %v2650_v54  ;;  %v2649_v2 = vmul.f32 0.5, %v2633_v61  ;;  %v5975_v19 = vld [vmem:[#allocation68_spill] sm:$0xff] }
 0x762   : > { %v2763_v36 = vadd.f32 1.0, %v3202_v22  ;;  %v2696_v52 = vmul.f32 %v2680_v10, %v5372_v62  ;;  %v1733_v50 = vadd.f32 %v1701_v33, %v916_v13  ;;  %v753_v30 = vmul.f32 %v5963_v39, %v673_v41  ;;  %v5976_v39 = vld [vmem:[#allocation74_spill] sm:$0xff] }
 0x763   : > { %v2437_v46 = vpop.permute.xlu1 %2436  ;;  %v2435_v57 = vpop.permute.xlu0 %2434  ;;  %v2681_v51 = vmul.f32 %v2665_v40, %v2633_v61 }
 0x764   : > { %v2779_v7 = vmul.f32 %v2763_v36, %v2651_v21  ;;  %v2712_v49 = vadd.f32 %v2696_v52, %v5372_v62  ;;  %v2486_v53 = vsel %vm1905_vm3, %v2435_v57, %v2437_v46  ;;  %v5964_v21 = vld [vmem:[#allocation11_spill] sm:$0xff]  ;;  %v5965_v52 = vld [vmem:[#allocation48_spill] sm:$0xff]  ;;  %v819_v46 = vmul.f32 %v5410_v0, %v5966_v59 }
 0x765   : > { %v2697_v44 = vmul.f32 %v2681_v51, %v2633_v61  ;;  %v2518_v48 = vadd.f32 %v2486_v53, %v1733_v50  ;;  %v624_v36 = vmul.f32 %v5964_v21, %v5869_v28  ;;  %v898_v37 = vmul.f32 %v5965_v52, %v818_v60  ;;  %v5974_v60 = vld [vmem:[#allocation70_spill] sm:$0xff]  ;;  %v5977_v52 = vld [vmem:[#allocation29_spill] sm:$0xff]  ;;  %v5978_v59 = vld [vmem:[#allocation16_spill] sm:$0xff] }
 0x766   : > { %v2794_v55 = vpack.c.bf16 %v2779_v7, %v2778_v42  ;;  %v2728_v17 = vmul.f32 0.7978846, %v2712_v49  ;;  %v2648_v51 = vmul.f32 0.5, %v5372_v62  ;;  %v5967_v49 = vld [vmem:[#allocation19_spill] sm:$0xff] }
 0x767   : > { %v2713_v14 = vadd.f32 %v2697_v44, %v2633_v61  ;;  %v754_v16 = vmul.f32 %v5967_v49, %v674_v47  ;;  %v769_v28 = vadd.f32 %v753_v30, %v624_v36  ;;  %v5968_v44 = vld [vmem:[#allocation13_spill] sm:$0xff]  ;;  %v5970_v61 = vld [vmem:[#allocation32_spill] sm:$0xff]  ;;  %v672_v47 = vmul.f32 %v5301_v1, %v5975_v19  ;;  %v5981_v49 = vld [vmem:[#allocation34_spill] sm:$0xff] }
 0x768   : > { %2837 = vmatpush.bf16.msrb.mxu2 %v2794_v55  ;;  %3203 = vtanh.f32 %v2728_v17  ;;  %v625_v13 = vmul.f32 %v5968_v44, %v5874_v43  ;;  %v5971_v55 = vld [vmem:[#allocation122_spill] sm:$0xff]  ;;  %v816_v30 = vmul.f32 %v5410_v0, %v5976_v39 }
 0x769   : > { %v2729_v18 = vmul.f32 0.7978846, %v2713_v14  ;;  %v1699_v17 = vsel %vm1120_vm2, %v5971_v55, %v5970_v61  ;;  %v914_v53 = vadd.f32 %v898_v37, %v769_v28  ;;  %v752_v21 = vmul.f32 %v5000_v26, %v672_v47  ;;  %v5982_v61 = vld [vmem:[#allocation55_spill] sm:$0xff] }
 0x76a   : > { %v770_v38 = vadd.f32 %v754_v16, %v625_v13  ;;  %v622_v37 = vmul.f32 %v5977_v52, %v5883_v31  ;;  %v623_v16 = vmul.f32 %v5981_v49, %v5887_v45  ;;  %v5984_v45 = vld [vmem:[#allocation124_spill] sm:$0xff] }
 0x76b   : > { %v2569_v25 = vpop.permute.xlu1 %2568  ;;  %v2441_v6 = vpop.permute.xlu0 %2440  ;;  %3205 = vtanh.f32 %v2729_v18  ;;  %v1731_v20 = vadd.f32 %v1699_v17, %v914_v53  ;;  %v5972_v18 = vld [vmem:[#allocation110_spill] sm:$0xff]  ;;  %v5983_v17 = vld [vmem:[#allocation107_spill] sm:$0xff] }
 0x76c   : > { %v5404_v9 = vadd.f32 %v2569_v25, %v2518_v48  ;;  %v2487_v24 = vsel %vm1905_vm3, %v2439_v11, %v2441_v6  ;;  %v2431_v11 = vpop.permute.xlu2 %2430  ;;  %v5973_v48 = vld [vmem:[#allocation105_spill] sm:$0xff]  ;;  %v768_v28 = vadd.f32 %v752_v21, %v623_v16 }
 0x76d   : > { %v2519_v56 = vadd.f32 %v2487_v24, %v1734_v3  ;;  %v1700_v43 = vsel %vm1120_vm2, %v5973_v48, %v5972_v18  ;;  %v5985_v18 = vld [vmem:[#allocation125_spill] sm:$0xff]  ;;  %v5986_v48 = vld [vmem:[#allocation112_spill] sm:$0xff] }
 0x76e   : > { %v3204_v10 = vpop.eup %3203  ;;  %v2662_v22 = vmul.f32 0.044715, %v5404_v9  ;;  %v2646_v26 = vmul.f32 0.5, %v5404_v9 }
 0x76f   : > { %v5417_v29 = vadd.f32 %v2574_v32, %v2519_v56  ;;  %v2760_v58 = vadd.f32 1.0, %v3204_v10  ;;  %v5969_v32 = vld [vmem:[#allocation46_spill] sm:$0xff]  ;;  %v671_v56 = vmul.f32 %v5301_v1, %v5974_v60 }
 0x770   : > { %v2678_v40 = vmul.f32 %v2662_v22, %v5404_v9  ;;  %v899_v62 = vmul.f32 %v5969_v32, %v819_v46 }
 0x771   : > { %v3206_v54 = vpop.eup %3205  ;;  %v2663_v57 = vmul.f32 0.044715, %v5417_v29  ;;  %v2776_v8 = vmul.f32 %v2760_v58, %v2648_v51  ;;  %v751_v46 = vmul.f32 %v5978_v59, %v671_v56 }
 0x772   : > { %v2761_v42 = vadd.f32 1.0, %v3206_v54  ;;  %v2694_v7 = vmul.f32 %v2678_v40, %v5404_v9  ;;  %v915_v3 = vadd.f32 %v899_v62, %v770_v38 }
 0x773   : > { %v2429_v5 = vpop.permute.xlu1 %2428  ;;  %v2427_v35 = vpop.permute.xlu0 %2426  ;;  %v2679_v63 = vmul.f32 %v2663_v57, %v5417_v29  ;;  %v767_v44 = vadd.f32 %v751_v46, %v622_v37 }
 0x774   : > { %v2777_v15 = vmul.f32 %v2761_v42, %v2649_v2  ;;  %v2710_v33 = vadd.f32 %v2694_v7, %v5404_v9  ;;  %v2484_v34 = vsel %vm1905_vm3, %v2427_v35, %v2429_v5  ;;  %v2564_v6 = vpop.permute.xlu2 %2563  ;;  %v1732_v41 = vadd.f32 %v1700_v43, %v915_v3  ;;  %v5979_v2 = vld [vmem:[#allocation72_spill] sm:$0xff]  ;;  %v5980_v42 = vld [vmem:[#allocation42_spill] sm:$0xff] }
 0x775   : > { %v2695_v23 = vmul.f32 %v2679_v63, %v5417_v29  ;;  %v2516_v12 = vadd.f32 %v2484_v34, %v1731_v20  ;;  %v817_v1 = vmul.f32 %v5410_v0, %v5979_v2  ;;  %v896_v7 = vmul.f32 %v5980_v42, %v816_v30 }
 0x776   : > { %v2793_v14 = vpack.c.bf16 %v2777_v15, %v2776_v8  ;;  %v2726_v4 = vmul.f32 0.7978846, %v2710_v33  ;;  %v2647_v35 = vmul.f32 0.5, %v5417_v29  ;;  %v1698_v43 = vsel %vm1120_vm2, %v5986_v48, %v5985_v18 }
 0x777   : > { %v2711_v50 = vadd.f32 %v2695_v23, %v5417_v29  ;;  %v897_v55 = vmul.f32 %v5982_v61, %v817_v1  ;;  %v1697_v23 = vsel %vm1120_vm2, %v5984_v45, %v5983_v17  ;;  %v912_v53 = vadd.f32 %v896_v7, %v767_v44 }
 0x778   : > { %2838 = vmatpush.bf16.msrb.mxu2 %v2793_v14  ;;  %3207 = vtanh.f32 %v2726_v4 }
 0x779   : > { %v2727_v25 = vmul.f32 0.7978846, %v2711_v50  ;;  %v913_v4 = vadd.f32 %v897_v55, %v768_v28  ;;  %v1729_v50 = vadd.f32 %v1697_v23, %v912_v53  ;;  %v3055_v28 = vld [vmem:[%s5526_s5 + $0x8] sm:$0xff] }
 0x77b   : > { %v2559_v24 = vpop.permute.xlu1 %2558  ;;  %v2433_v27 = vpop.permute.xlu0 %2432  ;;  %3209 = vtanh.f32 %v2727_v25 }
 0x77c   : > { %v2628_v10 = vadd.f32 %v2559_v24, %v2516_v12  ;;  %v2485_v22 = vsel %vm1905_vm3, %v2431_v11, %v2433_v27  ;;  %v2423_v13 = vpop.permute.xlu2 %2422 }
 0x77d   : > { %v2517_v58 = vadd.f32 %v2485_v22, %v1732_v41 }
 0x77e   : > { %v3208_v40 = vpop.eup %3207  ;;  %v2660_v54 = vmul.f32 0.044715, %v2628_v10 }
 0x77f   : > { %v2629_v36 = vadd.f32 %v2564_v6, %v2517_v58  ;;  %v2758_v57 = vadd.f32 1.0, %v3208_v40  ;;  %v1730_v6 = vadd.f32 %v1698_v43, %v913_v4  ;;  %v2644_v40 = vmul.f32 0.5, %v2628_v10 }
 0x780   : > { %v2676_v51 = vmul.f32 %v2660_v54, %v2628_v10 }
 0x781   : > { %v3210_v11 = vpop.eup %3209  ;;  %v2661_v5 = vmul.f32 0.044715, %v2629_v36  ;;  %v2774_v32 = vmul.f32 %v2758_v57, %v2646_v26  ;;  %v2645_v54 = vmul.f32 0.5, %v2629_v36 }
 0x782   : > { %v2759_v63 = vadd.f32 1.0, %v3210_v11  ;;  %v2692_v31 = vmul.f32 %v2676_v51, %v2628_v10 }
 0x783   : > { %v2421_v8 = vpop.permute.xlu1 %2420  ;;  %v2419_v15 = vpop.permute.xlu0 %2418  ;;  %v2677_v33 = vmul.f32 %v2661_v5, %v2629_v36 }
 0x784   : > { %v2775_v0 = vmul.f32 %v2759_v63, %v2647_v35  ;;  %v2708_v62 = vadd.f32 %v2692_v31, %v2628_v10  ;;  %v2482_v38 = vsel %vm1905_vm3, %v2419_v15, %v2421_v8  ;;  %v2554_v56 = vpop.permute.xlu2 %2553  ;;  %v3054_v31 = vld [vmem:[%s5526_s5] sm:$0xff] }
 0x785   : > { %v2693_v9 = vmul.f32 %v2677_v33, %v2629_v36  ;;  %v2514_v3 = vadd.f32 %v2482_v38, %v1729_v50 }
 0x786   : > { %v2792_v29 = vpack.c.bf16 %v2775_v0, %v2774_v32  ;;  %v2724_v14 = vmul.f32 0.7978846, %v2708_v62 }
 0x787   : > { %v2709_v34 = vadd.f32 %v2693_v9, %v2629_v36 }
 0x788   : > { %2839 = vmatpush.bf16.msrb.mxu2 %v2792_v29  ;;  %3211 = vtanh.f32 %v2724_v14 }
 0x789   : > { %v2725_v20 = vmul.f32 0.7978846, %v2709_v34 }
 0x78b   : > { %v2549_v25 = vpop.permute.xlu1 %2548  ;;  %v2425_v12 = vpop.permute.xlu0 %2424  ;;  %3213 = vtanh.f32 %v2725_v20 }
 0x78c   : > { %v2626_v41 = vadd.f32 %v2549_v25, %v2514_v3  ;;  %v2483_v24 = vsel %vm1905_vm3, %v2423_v13, %v2425_v12  ;;  %v2815_v0 = vpop.permute.xlu2 %2814 }
 0x78d   : > { %v2515_v27 = vadd.f32 %v2483_v24, %v1730_v6 }
 0x78e   : > { %v3212_v60 = vpop.eup %3211  ;;  %v2658_v22 = vmul.f32 0.044715, %v2626_v41  ;;  %v2642_v10 = vmul.f32 0.5, %v2626_v41 }
 0x78f   : > { %v2627_v19 = vadd.f32 %v2554_v56, %v2515_v27  ;;  %v2756_v47 = vadd.f32 1.0, %v3212_v60 }
 0x790   : > { %v2674_v39 = vmul.f32 %v2658_v22, %v2626_v41 }
 0x791   : > { %v3214_v30 = vpop.eup %3213  ;;  %v2659_v58 = vmul.f32 0.044715, %v2627_v19  ;;  %v2772_v59 = vmul.f32 %v2756_v47, %v2644_v40  ;;  %v2643_v36 = vmul.f32 0.5, %v2627_v19 }
 0x792   : > { %v2757_v21 = vadd.f32 1.0, %v3214_v30  ;;  %v2690_v52 = vmul.f32 %v2674_v39, %v2626_v41 }
 0x793   : > { %v2675_v37 = vmul.f32 %v2659_v58, %v2627_v19  ;;  %v2805_v8 = vpop.permute.xlu0 %2804  ;;  %v2810_v44 = vpop.permute.xlu1 %2809 }
 0x794   : > { %v2773_v46 = vmul.f32 %v2757_v21, %v2645_v54  ;;  %v2706_v57 = vadd.f32 %v2690_v52, %v2626_v41 }
 0x795   : > { %v2691_v51 = vmul.f32 %v2675_v37, %v2627_v19 }
 0x796   : > { %v2791_v11 = vpack.c.bf16 %v2773_v46, %v2772_v59  ;;  %v2722_v2 = vmul.f32 0.7978846, %v2706_v57 }
 0x797   : > { %v2707_v1 = vadd.f32 %v2691_v51, %v2627_v19 }
 0x798   : > { %2840 = vmatpush.bf16.msrb.mxu2 %v2791_v11  ;;  %3215 = vtanh.f32 %v2722_v2 }
 0x799   : > { %v2723_v42 = vmul.f32 0.7978846, %v2707_v1 }
 0x79b   : > { %3217 = vtanh.f32 %v2723_v42  ;;  %v2820_v55 = vpop.permute.xlu1 %2819 }
 0x79e   : > { %v3216_v7 = vpop.eup %3215 }
 0x79f   : > { %v2754_v49 = vadd.f32 1.0, %v3216_v7 }
 0x7a1   : > { %v3218_v16 = vpop.eup %3217  ;;  %v2770_v26 = vmul.f32 %v2754_v49, %v2642_v10 }
 0x7a2   : > { %v2755_v5 = vadd.f32 1.0, %v3218_v16 }
 0x7a4   : > { %v2771_v35 = vmul.f32 %v2755_v5, %v2643_v36 }
 0x7a6   : > { %v2790_v63 = vpack.c.bf16 %v2771_v35, %v2770_v26 }
 0x7a8   : > { %2841 = vmatpush.bf16.msrb.mxu2 %v2790_v63 }
 0x7ab   : > { %2842 = vmatmul.bf16.vlgmr.msrb.gmra.mxu2 %v3054_v31 }
 0x7bb   : > { %2847 = vmatmul.bf16.gmra.mxu2 %v3055_v28 }
 0x82e   : > { %v2843_v15 = vpop.f32.mrf.mxu2 }
 0x82f   : > { %v2844_v33 = vadd.f32 %v2843_v15, %v2805_v8 }
 0x831   : > { %2853 = vst [vmem:[%s295_s13] sm:$0xff] %v2844_v33 }
 0x836   : > { %v2845_v13 = vpop.f32.mrf.mxu2 }
 0x837   : > { %v2846_v32 = vadd.f32 %v2845_v13, %v2810_v44 }
 0x839   : > { %2854 = vst [vmem:[%s295_s13 + $0x8] sm:$0xff] %v2846_v32 }
 0x83e   : > { %v2848_v62 = vpop.f32.mrf.mxu2 }
 0x83f   : > { %v2849_v61 = vadd.f32 %v2848_v62, %v2815_v0 }
 0x841   : > { %2855 = vst [vmem:[%s295_s13 + $0x10] sm:$0xff] %v2849_v61 }
 0x846   : > { %v2850_v17 = vpop.f32.mrf.mxu2 }
 0x847   : > { %v2851_v45 = vadd.f32 %v2850_v17, %v2820_v55 }
 0x849   : > { %2856 = vst [vmem:[%s295_s13 + $0x18] sm:$0xff] %v2851_v45 }
 0x84a   : > { %3273 = shalt.err (!%p3270_p7)
}
 0x84b   : > { %s3357_s12 = smov 128   ;;  %s3358_s13 = smov 256  }
 0x84c   : > { %s3359_s11 = smov 8  }
 0x84d   : > { %3067 = dma.vmem_to_hbm [thread:$0]  (%p3451_p3), %s2872_s16, 512, %s2874_s20, %s2858_s28, %s3357_s12, %s3358_s13, %s3359_s11  }
 0x84e PF: > { %p3073_p9 = scmp.ge.s32.totalorder %s3340_s8, 2  ;;  %s2888_s30 = sand.u32 1, %s3312_s24  }
 0x84f   : > { %s2889_s10 = scalar_lea.sflag [#allocation3], %s2888_s30 }
 0x850   : > { %p3070_p10 = pnand %p3073_p9, %p3460_p8 }
 0x852   : > { %p3071_p11 = pneg %p3070_p10 }
 0x854   : > { %3307 = dma.done.wait (%p3071_p11), %s2889_s10, 512  }
 0x855   : > { %3309 = vsyncadd (%p3071_p11), %s2889_s10, 4294966784  ;;  %s20_s8 = sadd.s32 1, %s3340_s8   ;;  %s5987_s28 = sld [smem:[#allocation5_spill]] }
 0x856   : > { %p17_p12 = scmp.ge.s32.totalorder %s20_s8, 6   ;;  %s5988_s14 = sld [smem:[#allocation6_spill]] }
 0x857   : > { %s5989_s30 = sld [smem:[#allocation7_spill]]  ;;  %s5990_s24 = smov %s3316_s25 }
 0x858   : > { %s5991_s25 = smov %s3320_s26  ;;  %s5992_s26 = smov %s3469_s19 }
 0x859   : > { %s5993_s27 = smov %s3332_s29  ;;  %19 = sbr.rel (!%p17_p12) target bundleno = 5 (0x5), region = 83 }
 0x85c   : > { %s5994_s29 = smov %s5988_s14 }
 0x85e   :  { %2895 = vsyncpa [#allocation3], 1 }
 0x85f   :  { %2897 = vsyncpa [#allocation3 + $0x1], 1 }

</bundles_post_ra>
